<compile_context>
chip_gen: v6e
topology: v6e:2x2x1
jax: 0.10.0
libtpu: 0.0.40
codegen_flags: <defaults>
</compile_context>

<pallas_src>
import functools

import jax
import jax.numpy as jnp
from jax import lax
from jax.experimental import pallas as pl
from jax.experimental.pallas import tpu as pltpu


def _rup8(n):
    return (n + 7) // 8 * 8


# ----------------------------------------------------------------------------
# Kernel
# ----------------------------------------------------------------------------

def _dilated_conv3x3(x, w_ref, sh_ref, row, col, *, d, relu, H, W):
    """Dilated 3x3 conv (stride 1, pad == dilation == d) in (C, HW) layout.

    x      : (Cin_p, L) activation; padded channel rows are zero.
    w_ref  : (Cout_p, 9*Cin_p) weights, K index = (kh*3 + kw)*Cin_p + ci, BN folded.
    sh_ref : (Cout_p, 1) folded BN shift.
    row/col: (1, L) int32 spatial row / column of each lane position.
    """
    L = x.shape[-1]
    taps = []
    for kh in range(3):
        for kw in range(3):
            dh = (kh - 1) * d
            dw = (kw - 1) * d
            if dh == 0 and dw == 0:
                taps.append(x)
                continue
            s = dh * W + dw                                   # flat lane shift
            shifted = pltpu.roll(x, shift=(-s) % L, axis=1)   # result[i] = x[i + s]
            valid = ((row + dh >= 0) & (row + dh < H)
                     & (col + dw >= 0) & (col + dw < W))
            taps.append(jnp.where(valid, shifted, 0.0))
    slab = jnp.concatenate(taps, axis=0)                      # (9*Cin_p, L) 8-aligned
    y = jnp.dot(w_ref[...], slab, preferred_element_type=jnp.float32) + sh_ref[...]
    return jnp.maximum(y, 0.0) if relu else y


def _rfam_kernel(x_ref, row_ref, col_ref,
                 wh_ref, shh_ref,
                 w01_ref, sh01_ref,
                 w11_ref, sh11_ref, w12_ref, sh12_ref,
                 w21_ref, sh21_ref, w22_ref, sh22_ref, w23_ref, sh23_ref,
                 wlin_ref, shlin_ref,
                 o_ref,
                 *, H, W, head_splits, scale, visual):
    x = x_ref[...]                                            # (Cin, L)
    row = row_ref[...]                                        # (1, L) int32
    col = col_ref[...]

    # Merged 1x1 convs: [branch0 head | branch1 head | branch2 head | shortcut].
    y = jnp.dot(wh_ref[...], x, preferred_element_type=jnp.float32) + shh_ref[...]
    a, b, c = head_splits
    x0 = jnp.maximum(y[0:a], 0.0)                             # (c0p, L)   ReLU
    x1 = jnp.maximum(y[a:a + b], 0.0)                         # (c1p, L)   ReLU
    x2 = jnp.maximum(y[a + b:a + b + c], 0.0)                 # (c2p, L)   ReLU
    short = y[a + b + c:]                                     # (Cout, L)  no ReLU

    conv = functools.partial(_dilated_conv3x3, row=row, col=col, H=H, W=W)
    # branch0
    x0 = conv(x0, w01_ref, sh01_ref, d=visual, relu=False)
    # branch1
    x1 = conv(x1, w11_ref, sh11_ref, d=1, relu=True)
    x1 = conv(x1, w12_ref, sh12_ref, d=visual + 1, relu=False)
    # branch2
    x2 = conv(x2, w21_ref, sh21_ref, d=1, relu=True)
    x2 = conv(x2, w22_ref, sh22_ref, d=1, relu=True)
    x2 = conv(x2, w23_ref, sh23_ref, d=2 * visual + 1, relu=False)

    # Sublane-aligned concat + ConvLinear (one K=3*ct matmul) + shortcut + ReLU.
    cat = jnp.concatenate([x0, x1, x2], axis=0)               # (3*ct, L)
    out = jnp.dot(wlin_ref[...], cat, preferred_element_type=jnp.float32) + shlin_ref[...]
    o_ref[...] = jnp.maximum(out * scale + short, 0.0).astype(o_ref.dtype)


# ----------------------------------------------------------------------------
# Host-side weight preparation (BN scale folding, layout flip, channel padding)
# ----------------------------------------------------------------------------

def _pad_to(a, axis, size):
    pads = [(0, 0)] * a.ndim
    pads[axis] = (0, size - a.shape[axis])
    return jnp.pad(a, pads)


def _head_block(q, rows):
    w = (q["w"][0, 0] * q["scale"]).T                         # (Cout, Cin)
    s = q["shift"].reshape(-1, 1)                             # (Cout, 1)
    return _pad_to(w, 0, rows), _pad_to(s, 0, rows)


def _tap_block(q, cin_p, cout_p):
    w = q["w"]                                                # (3,3,Cin,Cout) HWIO
    ci, co = w.shape[2], w.shape[3]
    wt = (w * q["scale"]).transpose(3, 0, 1, 2)               # (Cout,3,3,Cin)
    wt = jnp.pad(wt, ((0, cout_p - co), (0, 0), (0, 0), (0, cin_p - ci)))
    wt = wt.reshape(cout_p, 9 * cin_p)                        # K = (kh*3+kw)*cin_p + ci
    sh = _pad_to(q["shift"].reshape(-1, 1), 0, cout_p)
    return wt, sh


def _tensorcores_per_chip():
    """Best-effort TensorCores per chip (v4/v5p megacore, v7x -> 2; v5e/v6e -> 1)."""
    try:
        kind = jax.devices()[0].device_kind.lower()
    except Exception:
        return 1
    return 2 if any(t in kind for t in ("v7", "v5p", "v4")) else 1


def rfam_forward(x_nchw, p, *, scale=0.1, visual=1):
    """Fused RFAM forward. Input NCHW, output NCHW (PyTorch layout)."""
    # TODO(synk): stride > 1 is not implemented; this matches the default RFAM(stride=1).
    N, Cin, H, W_ = x_nchw.shape
    inter = Cin // 8
    i2 = 2 * inter
    HW = H * W_
    out_planes = int(p["short"]["w"].shape[-1])

    # Grid: one batch slab per TensorCore on dual-core parts; fold whole batch into
    # the lane axis on single-core parts (amortizes ~0.35us/step, widens MXU N).
    tc = _tensorcores_per_chip()
    G = tc if (N % tc == 0) else 1
    B = N // G
    L = B * HW

    # Channel counts padded to the 8-sublane tile so every activation / tap-stack /
    # concat is sublane-aligned; padded rows carry exact zeros.
    c0p, c1p, c2p = _rup8(i2), _rup8(inter), _rup8(inter)
    c21p = _rup8(inter // 2 * 3)
    ct = _rup8(i2)

    # Merged 1x1 head: [branch0.0 | branch1.0 | branch2.0 | shortcut] rows.
    blocks = [_head_block(p["b0_0"], c0p), _head_block(p["b1_0"], c1p),
              _head_block(p["b2_0"], c2p), _head_block(p["short"], out_planes)]
    wh = jnp.concatenate([w for w, _ in blocks], axis=0)
    shh = jnp.concatenate([s for _, s in blocks], axis=0)

    # Dilated 3x3 convs as (Cout_p, 9*Cin_p) tap-stacked weights.
    w01, sh01 = _tap_block(p["b0_1"], c0p, ct)
    w11, sh11 = _tap_block(p["b1_1"], c1p, _rup8(i2))
    w12, sh12 = _tap_block(p["b1_2"], _rup8(i2), ct)
    w21, sh21 = _tap_block(p["b2_1"], c2p, c21p)
    w22, sh22 = _tap_block(p["b2_2"], c21p, _rup8(i2))
    w23, sh23 = _tap_block(p["b2_3"], _rup8(i2), ct)

    # ConvLinear tail: (out_planes, 3*ct) matching the [x0|x1|x2] concat layout.
    wl = (p["lin"]["w"][0, 0] * p["lin"]["scale"]).T          # (out_planes, 6*inter)
    wlin = jnp.concatenate(
        [_pad_to(wl[:, k * i2:(k + 1) * i2], 1, ct) for k in range(3)], axis=1)
    shlin = p["lin"]["shift"].reshape(-1, 1)

    # Channels on sublanes, (image, h, w) positions on lanes.
    x2d = jnp.transpose(x_nchw, (1, 0, 2, 3)).reshape(Cin, N * HW)
    hw_idx = jnp.arange(HW, dtype=jnp.int32)
    row_i = jnp.tile(hw_idx // W_, N).reshape(1, N * HW)
    col_i = jnp.tile(hw_idx % W_, N).reshape(1, N * HW)

    def _full(a):
        nd = a.ndim
        return pl.BlockSpec(a.shape, lambda g, _nd=nd: (0,) * _nd)

    weights = [wh, shh, w01, sh01, w11, sh11, w12, sh12,
               w21, sh21, w22, sh22, w23, sh23, wlin, shlin]
    in_specs = ([pl.BlockSpec((Cin, L), lambda g: (0, g)),
                 pl.BlockSpec((1, L), lambda g: (0, g)),
                 pl.BlockSpec((1, L), lambda g: (0, g))]
                + [_full(w) for w in weights])

    kern = functools.partial(_rfam_kernel, H=H, W=W_,
                             head_splits=(c0p, c1p, c2p),
                             scale=scale, visual=visual)

    flops = 2 * N * HW * (int(wh.shape[0] * wh.shape[1])
                          + sum(int(w.shape[0] * w.shape[1])
                                for w in (w01, w11, w12, w21, w22, w23))
                          + int(wlin.shape[0] * wlin.shape[1]))
    bytes_accessed = 4 * (int(x2d.size) + int(row_i.size) + int(col_i.size)
                          + sum(int(w.size) for w in weights)
                          + out_planes * N * HW)

    out = pl.pallas_call(
        kern,
        out_shape=jax.ShapeDtypeStruct((out_planes, N * HW), jnp.float32),
        grid=(G,),
        in_specs=in_specs,
        out_specs=pl.BlockSpec((out_planes, L), lambda g: (0, g)),
        compiler_params=pltpu.CompilerParams(dimension_semantics=("parallel",)),
        cost_estimate=pl.CostEstimate(flops=int(flops), transcendentals=0,
                                      bytes_accessed=int(bytes_accessed)),
    )(x2d, row_i, col_i, *weights)

    # (Cout, N*HW) -> NCHW (PyTorch layout).
    return jnp.transpose(out.reshape(out_planes, N, H, W_), (1, 0, 2, 3))


# ----------------------------------------------------------------------------
# Deterministic parameter init (BasicConv = conv(no bias) + BN(eval) [+ ReLU])
# ----------------------------------------------------------------------------

def init_basic_conv(key, cin, cout, k):
    kw_, kg, kb, km, kv = jax.random.split(key, 5)
    fan_in = k * k * cin
    w = jax.random.normal(kw_, (k, k, cin, cout), jnp.float32) / jnp.sqrt(float(fan_in))
    gamma = 1.0 + 0.1 * jax.random.normal(kg, (cout,), jnp.float32)
    beta = 0.1 * jax.random.normal(kb, (cout,), jnp.float32)
    running_mean = 0.1 * jax.random.normal(km, (cout,), jnp.float32)
    running_var = 1.0 + 0.1 * jax.random.uniform(kv, (cout,), jnp.float32)
    s = gamma / jnp.sqrt(running_var + 1e-5)        # fold BN (eval mode)
    shift = beta - running_mean * s
    return dict(w=w, scale=s, shift=shift)


def init_rfam(key, in_planes, out_planes):
    inter = in_planes // 8
    specs = [
        ("b0_0", in_planes, 2 * inter, 1), ("b0_1", 2 * inter, 2 * inter, 3),
        ("b1_0", in_planes, inter, 1),     ("b1_1", inter, 2 * inter, 3),
        ("b1_2", 2 * inter, 2 * inter, 3),
        ("b2_0", in_planes, inter, 1),     ("b2_1", inter, inter // 2 * 3, 3),
        ("b2_2", inter // 2 * 3, 2 * inter, 3), ("b2_3", 2 * inter, 2 * inter, 3),
        ("lin", 6 * inter, out_planes, 1), ("short", in_planes, out_planes, 1),
    ]
    keys = jax.random.split(key, len(specs))
    return {name: init_basic_conv(k, ci, co, ks)
            for k, (name, ci, co, ks) in zip(keys, specs)}


# ----------------------------------------------------------------------------
# Pure-JAX reference (NHWC)
# ----------------------------------------------------------------------------

def _conv_bn_ref(x, w, scale, shift, *, pad=0, dil=1, relu=True):
    y = lax.conv_general_dilated(
        x, w, window_strides=(1, 1), padding=[(pad, pad), (pad, pad)],
        rhs_dilation=(dil, dil), dimension_numbers=("NHWC", "HWIO", "NHWC"))
    y = y * scale + shift
    return jnp.maximum(y, 0.0) if relu else y


def rfam_ref(x, p, *, scale=0.1, visual=1):
    x0 = _conv_bn_ref(x, **p["b0_0"])
    x0 = _conv_bn_ref(x0, **p["b0_1"], pad=visual, dil=visual, relu=False)
    x1 = _conv_bn_ref(x, **p["b1_0"])
    x1 = _conv_bn_ref(x1, **p["b1_1"], pad=1)
    x1 = _conv_bn_ref(x1, **p["b1_2"], pad=visual + 1, dil=visual + 1, relu=False)
    x2 = _conv_bn_ref(x, **p["b2_0"])
    x2 = _conv_bn_ref(x2, **p["b2_1"], pad=1)
    x2 = _conv_bn_ref(x2, **p["b2_2"], pad=1)
    x2 = _conv_bn_ref(x2, **p["b2_3"], pad=2 * visual + 1, dil=2 * visual + 1, relu=False)
    out = jnp.concatenate([x0, x1, x2], axis=-1)
    out = _conv_bn_ref(out, **p["lin"], relu=False)
    short = _conv_bn_ref(x, **p["short"], relu=False)
    return jnp.maximum(out * scale + short, 0.0)


# ----------------------------------------------------------------------------

if __name__ == "__main__":
    key = jax.random.PRNGKey(0)
    k_x, k_p = jax.random.split(key)

    # PyTorch-style NCHW input; in_planes must be divisible by 8 (inter = C // 8).
    N, C, H, W_ = 2, 32, 16, 16
    in_planes = out_planes = C

    x_nchw = jax.random.normal(k_x, (N, C, H, W_), jnp.float32)
    params = init_rfam(k_p, in_planes, out_planes)

    fwd = jax.jit(functools.partial(rfam_forward, scale=0.1, visual=1))
    out = jax.block_until_ready(fwd(x_nchw, params))          # NCHW output

    x_nhwc = jnp.transpose(x_nchw, (0, 2, 3, 1))
    ref = jnp.transpose(rfam_ref(x_nhwc, params, scale=0.1, visual=1), (0, 3, 1, 2))
    err = float(jnp.max(jnp.abs(out - ref)))
    denom = float(jnp.max(jnp.abs(ref))) + 1e-6
    assert err / denom < 5e-3, f"mismatch: rel err = {err / denom}"

    print("KERNEL_OK")
</pallas_src>

<mosaic_0001>
module attributes {stable_mosaic.version = 11 : i64} {
  func.func @_rfam_kernel(%arg0: i32, %arg1: memref<32x512xf32, #tpu.memory_space<vmem>>, %arg2: memref<1x512xi32, #tpu.memory_space<vmem>>, %arg3: memref<1x512xi32, #tpu.memory_space<vmem>>, %arg4: memref<56x32xf32, #tpu.memory_space<vmem>>, %arg5: memref<56x1xf32, #tpu.memory_space<vmem>>, %arg6: memref<8x72xf32, #tpu.memory_space<vmem>>, %arg7: memref<8x1xf32, #tpu.memory_space<vmem>>, %arg8: memref<8x72xf32, #tpu.memory_space<vmem>>, %arg9: memref<8x1xf32, #tpu.memory_space<vmem>>, %arg10: memref<8x72xf32, #tpu.memory_space<vmem>>, %arg11: memref<8x1xf32, #tpu.memory_space<vmem>>, %arg12: memref<8x72xf32, #tpu.memory_space<vmem>>, %arg13: memref<8x1xf32, #tpu.memory_space<vmem>>, %arg14: memref<8x72xf32, #tpu.memory_space<vmem>>, %arg15: memref<8x1xf32, #tpu.memory_space<vmem>>, %arg16: memref<8x72xf32, #tpu.memory_space<vmem>>, %arg17: memref<8x1xf32, #tpu.memory_space<vmem>>, %arg18: memref<32x24xf32, #tpu.memory_space<vmem>>, %arg19: memref<32x1xf32, #tpu.memory_space<vmem>>, %arg20: memref<32x512xf32, #tpu.memory_space<vmem>>) attributes {dimension_semantics = [#tpu.dimension_semantics<parallel>], iteration_bounds = array<i64: 1>, scalar_prefetch = 0 : i64, scratch_operands = 0 : i64, tpu.core_type = #tpu.core_type<tc>, window_params = [{transform_indices = @transform_0, window_bounds = array<i64: 32, 512>}, {transform_indices = @transform_1, window_bounds = array<i64: 1, 512>}, {transform_indices = @transform_2, window_bounds = array<i64: 1, 512>}, {pipeline_mode = #tpu.pipeline_mode<synchronous>, transform_indices = @transform_3, window_bounds = array<i64: 56, 32>}, {pipeline_mode = #tpu.pipeline_mode<synchronous>, transform_indices = @transform_4, window_bounds = array<i64: 56, 1>}, {pipeline_mode = #tpu.pipeline_mode<synchronous>, transform_indices = @transform_5, window_bounds = array<i64: 8, 72>}, {pipeline_mode = #tpu.pipeline_mode<synchronous>, transform_indices = @transform_6, window_bounds = array<i64: 8, 1>}, {pipeline_mode = #tpu.pipeline_mode<synchronous>, transform_indices = @transform_7, window_bounds = array<i64: 8, 72>}, {pipeline_mode = #tpu.pipeline_mode<synchronous>, transform_indices = @transform_8, window_bounds = array<i64: 8, 1>}, {pipeline_mode = #tpu.pipeline_mode<synchronous>, transform_indices = @transform_9, window_bounds = array<i64: 8, 72>}, {pipeline_mode = #tpu.pipeline_mode<synchronous>, transform_indices = @transform_10, window_bounds = array<i64: 8, 1>}, {pipeline_mode = #tpu.pipeline_mode<synchronous>, transform_indices = @transform_11, window_bounds = array<i64: 8, 72>}, {pipeline_mode = #tpu.pipeline_mode<synchronous>, transform_indices = @transform_12, window_bounds = array<i64: 8, 1>}, {pipeline_mode = #tpu.pipeline_mode<synchronous>, transform_indices = @transform_13, window_bounds = array<i64: 8, 72>}, {pipeline_mode = #tpu.pipeline_mode<synchronous>, transform_indices = @transform_14, window_bounds = array<i64: 8, 1>}, {pipeline_mode = #tpu.pipeline_mode<synchronous>, transform_indices = @transform_15, window_bounds = array<i64: 8, 72>}, {pipeline_mode = #tpu.pipeline_mode<synchronous>, transform_indices = @transform_16, window_bounds = array<i64: 8, 1>}, {pipeline_mode = #tpu.pipeline_mode<synchronous>, transform_indices = @transform_17, window_bounds = array<i64: 32, 24>}, {pipeline_mode = #tpu.pipeline_mode<synchronous>, transform_indices = @transform_18, window_bounds = array<i64: 32, 1>}, {transform_indices = @transform_19, window_bounds = array<i64: 32, 512>}]} {
    %c0 = arith.constant 0 : index
    %c0_0 = arith.constant 0 : index
    %0 = vector.load %arg1[%c0, %c0_0] : memref<32x512xf32, #tpu.memory_space<vmem>>, vector<32x512xf32>
    %c0_1 = arith.constant 0 : index
    %c0_2 = arith.constant 0 : index
    %1 = vector.load %arg2[%c0_1, %c0_2] : memref<1x512xi32, #tpu.memory_space<vmem>>, vector<1x512xi32>
    %c0_3 = arith.constant 0 : index
    %c0_4 = arith.constant 0 : index
    %2 = vector.load %arg3[%c0_3, %c0_4] : memref<1x512xi32, #tpu.memory_space<vmem>>, vector<1x512xi32>
    %c0_5 = arith.constant 0 : index
    %c0_6 = arith.constant 0 : index
    %3 = vector.load %arg4[%c0_5, %c0_6] : memref<56x32xf32, #tpu.memory_space<vmem>>, vector<56x32xf32>
    %cst = arith.constant dense<0.000000e+00> : vector<56x512xf32>
    %4 = tpu.matmul %3, %0, %cst {dimension_numbers = #tpu.dot_dimension_numbers<[1], [0], [0], [1], [0, 0, 1, 1], [], []>} : vector<56x32xf32>, vector<32x512xf32>, vector<56x512xf32> -> vector<56x512xf32>
    %c0_7 = arith.constant 0 : index
    %c0_8 = arith.constant 0 : index
    %5 = vector.load %arg5[%c0_7, %c0_8] : memref<56x1xf32, #tpu.memory_space<vmem>>, vector<56x1xf32>
    %6 = vector.broadcast %5 : vector<56x1xf32> to vector<56x512xf32>
    %7 = arith.addf %4, %6 : vector<56x512xf32>
    %8 = vector.extract_strided_slice %7 {offsets = [0, 0], sizes = [8, 512], strides = [1, 1]} : vector<56x512xf32> to vector<8x512xf32>
    %cst_9 = arith.constant 0.000000e+00 : f32
    %9 = vector.broadcast %cst_9 : f32 to vector<8x512xf32>
    %10 = arith.maximumf %8, %9 : vector<8x512xf32>
    %11 = vector.extract_strided_slice %7 {offsets = [8, 0], sizes = [8, 512], strides = [1, 1]} : vector<56x512xf32> to vector<8x512xf32>
    %cst_10 = arith.constant 0.000000e+00 : f32
    %12 = vector.broadcast %cst_10 : f32 to vector<8x512xf32>
    %13 = arith.maximumf %11, %12 : vector<8x512xf32>
    %14 = vector.extract_strided_slice %7 {offsets = [16, 0], sizes = [8, 512], strides = [1, 1]} : vector<56x512xf32> to vector<8x512xf32>
    %cst_11 = arith.constant 0.000000e+00 : f32
    %15 = vector.broadcast %cst_11 : f32 to vector<8x512xf32>
    %16 = arith.maximumf %14, %15 : vector<8x512xf32>
    %17 = vector.extract_strided_slice %7 {offsets = [24, 0], sizes = [32, 512], strides = [1, 1]} : vector<56x512xf32> to vector<32x512xf32>
    %c17_i32 = arith.constant 17 : i32
    %18 = tpu.dynamic_rotate %10 by %c17_i32 dim 1 : vector<8x512xf32>, i32 -> vector<8x512xf32>
    %c-1_i32 = arith.constant -1 : i32
    %19 = vector.broadcast %c-1_i32 : i32 to vector<1x512xi32>
    %20 = arith.addi %1, %19 : vector<1x512xi32>
    %c0_i32 = arith.constant 0 : i32
    %21 = vector.broadcast %c0_i32 : i32 to vector<1x512xi32>
    %22 = arith.cmpi sge, %20, %21 : vector<1x512xi32>
    %c-1_i32_12 = arith.constant -1 : i32
    %23 = vector.broadcast %c-1_i32_12 : i32 to vector<1x512xi32>
    %24 = arith.addi %1, %23 : vector<1x512xi32>
    %c16_i32 = arith.constant 16 : i32
    %25 = vector.broadcast %c16_i32 : i32 to vector<1x512xi32>
    %26 = arith.cmpi slt, %24, %25 : vector<1x512xi32>
    %27 = arith.andi %22, %26 : vector<1x512xi1>
    %c-1_i32_13 = arith.constant -1 : i32
    %28 = vector.broadcast %c-1_i32_13 : i32 to vector<1x512xi32>
    %29 = arith.addi %2, %28 : vector<1x512xi32>
    %c0_i32_14 = arith.constant 0 : i32
    %30 = vector.broadcast %c0_i32_14 : i32 to vector<1x512xi32>
    %31 = arith.cmpi sge, %29, %30 : vector<1x512xi32>
    %32 = arith.andi %27, %31 : vector<1x512xi1>
    %c-1_i32_15 = arith.constant -1 : i32
    %33 = vector.broadcast %c-1_i32_15 : i32 to vector<1x512xi32>
    %34 = arith.addi %2, %33 : vector<1x512xi32>
    %c16_i32_16 = arith.constant 16 : i32
    %35 = vector.broadcast %c16_i32_16 : i32 to vector<1x512xi32>
    %36 = arith.cmpi slt, %34, %35 : vector<1x512xi32>
    %37 = arith.andi %32, %36 : vector<1x512xi1>
    %cst_17 = arith.constant 0.000000e+00 : f32
    %38 = vector.shape_cast %37 : vector<1x512xi1> to vector<1x512xi1>
    %39 = vector.broadcast %38 : vector<1x512xi1> to vector<8x512xi1>
    %40 = vector.broadcast %cst_17 : f32 to vector<8x512xf32>
    %41 = arith.select %39, %18, %40 : vector<8x512xi1>, vector<8x512xf32>
    %c16_i32_18 = arith.constant 16 : i32
    %42 = tpu.dynamic_rotate %10 by %c16_i32_18 dim 1 : vector<8x512xf32>, i32 -> vector<8x512xf32>
    %c-1_i32_19 = arith.constant -1 : i32
    %43 = vector.broadcast %c-1_i32_19 : i32 to vector<1x512xi32>
    %44 = arith.addi %1, %43 : vector<1x512xi32>
    %c0_i32_20 = arith.constant 0 : i32
    %45 = vector.broadcast %c0_i32_20 : i32 to vector<1x512xi32>
    %46 = arith.cmpi sge, %44, %45 : vector<1x512xi32>
    %c-1_i32_21 = arith.constant -1 : i32
    %47 = vector.broadcast %c-1_i32_21 : i32 to vector<1x512xi32>
    %48 = arith.addi %1, %47 : vector<1x512xi32>
    %c16_i32_22 = arith.constant 16 : i32
    %49 = vector.broadcast %c16_i32_22 : i32 to vector<1x512xi32>
    %50 = arith.cmpi slt, %48, %49 : vector<1x512xi32>
    %51 = arith.andi %46, %50 : vector<1x512xi1>
    %c0_i32_23 = arith.constant 0 : i32
    %52 = vector.broadcast %c0_i32_23 : i32 to vector<1x512xi32>
    %53 = arith.addi %2, %52 : vector<1x512xi32>
    %c0_i32_24 = arith.constant 0 : i32
    %54 = vector.broadcast %c0_i32_24 : i32 to vector<1x512xi32>
    %55 = arith.cmpi sge, %53, %54 : vector<1x512xi32>
    %56 = arith.andi %51, %55 : vector<1x512xi1>
    %c0_i32_25 = arith.constant 0 : i32
    %57 = vector.broadcast %c0_i32_25 : i32 to vector<1x512xi32>
    %58 = arith.addi %2, %57 : vector<1x512xi32>
    %c16_i32_26 = arith.constant 16 : i32
    %59 = vector.broadcast %c16_i32_26 : i32 to vector<1x512xi32>
    %60 = arith.cmpi slt, %58, %59 : vector<1x512xi32>
    %61 = arith.andi %56, %60 : vector<1x512xi1>
    %cst_27 = arith.constant 0.000000e+00 : f32
    %62 = vector.shape_cast %61 : vector<1x512xi1> to vector<1x512xi1>
    %63 = vector.broadcast %62 : vector<1x512xi1> to vector<8x512xi1>
    %64 = vector.broadcast %cst_27 : f32 to vector<8x512xf32>
    %65 = arith.select %63, %42, %64 : vector<8x512xi1>, vector<8x512xf32>
    %c15_i32 = arith.constant 15 : i32
    %66 = tpu.dynamic_rotate %10 by %c15_i32 dim 1 : vector<8x512xf32>, i32 -> vector<8x512xf32>
    %c-1_i32_28 = arith.constant -1 : i32
    %67 = vector.broadcast %c-1_i32_28 : i32 to vector<1x512xi32>
    %68 = arith.addi %1, %67 : vector<1x512xi32>
    %c0_i32_29 = arith.constant 0 : i32
    %69 = vector.broadcast %c0_i32_29 : i32 to vector<1x512xi32>
    %70 = arith.cmpi sge, %68, %69 : vector<1x512xi32>
    %c-1_i32_30 = arith.constant -1 : i32
    %71 = vector.broadcast %c-1_i32_30 : i32 to vector<1x512xi32>
    %72 = arith.addi %1, %71 : vector<1x512xi32>
    %c16_i32_31 = arith.constant 16 : i32
    %73 = vector.broadcast %c16_i32_31 : i32 to vector<1x512xi32>
    %74 = arith.cmpi slt, %72, %73 : vector<1x512xi32>
    %75 = arith.andi %70, %74 : vector<1x512xi1>
    %c1_i32 = arith.constant 1 : i32
    %76 = vector.broadcast %c1_i32 : i32 to vector<1x512xi32>
    %77 = arith.addi %2, %76 : vector<1x512xi32>
    %c0_i32_32 = arith.constant 0 : i32
    %78 = vector.broadcast %c0_i32_32 : i32 to vector<1x512xi32>
    %79 = arith.cmpi sge, %77, %78 : vector<1x512xi32>
    %80 = arith.andi %75, %79 : vector<1x512xi1>
    %c1_i32_33 = arith.constant 1 : i32
    %81 = vector.broadcast %c1_i32_33 : i32 to vector<1x512xi32>
    %82 = arith.addi %2, %81 : vector<1x512xi32>
    %c16_i32_34 = arith.constant 16 : i32
    %83 = vector.broadcast %c16_i32_34 : i32 to vector<1x512xi32>
    %84 = arith.cmpi slt, %82, %83 : vector<1x512xi32>
    %85 = arith.andi %80, %84 : vector<1x512xi1>
    %cst_35 = arith.constant 0.000000e+00 : f32
    %86 = vector.shape_cast %85 : vector<1x512xi1> to vector<1x512xi1>
    %87 = vector.broadcast %86 : vector<1x512xi1> to vector<8x512xi1>
    %88 = vector.broadcast %cst_35 : f32 to vector<8x512xf32>
    %89 = arith.select %87, %66, %88 : vector<8x512xi1>, vector<8x512xf32>
    %c1_i32_36 = arith.constant 1 : i32
    %90 = tpu.dynamic_rotate %10 by %c1_i32_36 dim 1 : vector<8x512xf32>, i32 -> vector<8x512xf32>
    %c0_i32_37 = arith.constant 0 : i32
    %91 = vector.broadcast %c0_i32_37 : i32 to vector<1x512xi32>
    %92 = arith.addi %1, %91 : vector<1x512xi32>
    %c0_i32_38 = arith.constant 0 : i32
    %93 = vector.broadcast %c0_i32_38 : i32 to vector<1x512xi32>
    %94 = arith.cmpi sge, %92, %93 : vector<1x512xi32>
    %c0_i32_39 = arith.constant 0 : i32
    %95 = vector.broadcast %c0_i32_39 : i32 to vector<1x512xi32>
    %96 = arith.addi %1, %95 : vector<1x512xi32>
    %c16_i32_40 = arith.constant 16 : i32
    %97 = vector.broadcast %c16_i32_40 : i32 to vector<1x512xi32>
    %98 = arith.cmpi slt, %96, %97 : vector<1x512xi32>
    %99 = arith.andi %94, %98 : vector<1x512xi1>
    %c-1_i32_41 = arith.constant -1 : i32
    %100 = vector.broadcast %c-1_i32_41 : i32 to vector<1x512xi32>
    %101 = arith.addi %2, %100 : vector<1x512xi32>
    %c0_i32_42 = arith.constant 0 : i32
    %102 = vector.broadcast %c0_i32_42 : i32 to vector<1x512xi32>
    %103 = arith.cmpi sge, %101, %102 : vector<1x512xi32>
    %104 = arith.andi %99, %103 : vector<1x512xi1>
    %c-1_i32_43 = arith.constant -1 : i32
    %105 = vector.broadcast %c-1_i32_43 : i32 to vector<1x512xi32>
    %106 = arith.addi %2, %105 : vector<1x512xi32>
    %c16_i32_44 = arith.constant 16 : i32
    %107 = vector.broadcast %c16_i32_44 : i32 to vector<1x512xi32>
    %108 = arith.cmpi slt, %106, %107 : vector<1x512xi32>
    %109 = arith.andi %104, %108 : vector<1x512xi1>
    %cst_45 = arith.constant 0.000000e+00 : f32
    %110 = vector.shape_cast %109 : vector<1x512xi1> to vector<1x512xi1>
    %111 = vector.broadcast %110 : vector<1x512xi1> to vector<8x512xi1>
    %112 = vector.broadcast %cst_45 : f32 to vector<8x512xf32>
    %113 = arith.select %111, %90, %112 : vector<8x512xi1>, vector<8x512xf32>
    %c511_i32 = arith.constant 511 : i32
    %114 = tpu.dynamic_rotate %10 by %c511_i32 dim 1 : vector<8x512xf32>, i32 -> vector<8x512xf32>
    %c0_i32_46 = arith.constant 0 : i32
    %115 = vector.broadcast %c0_i32_46 : i32 to vector<1x512xi32>
    %116 = arith.addi %1, %115 : vector<1x512xi32>
    %c0_i32_47 = arith.constant 0 : i32
    %117 = vector.broadcast %c0_i32_47 : i32 to vector<1x512xi32>
    %118 = arith.cmpi sge, %116, %117 : vector<1x512xi32>
    %c0_i32_48 = arith.constant 0 : i32
    %119 = vector.broadcast %c0_i32_48 : i32 to vector<1x512xi32>
    %120 = arith.addi %1, %119 : vector<1x512xi32>
    %c16_i32_49 = arith.constant 16 : i32
    %121 = vector.broadcast %c16_i32_49 : i32 to vector<1x512xi32>
    %122 = arith.cmpi slt, %120, %121 : vector<1x512xi32>
    %123 = arith.andi %118, %122 : vector<1x512xi1>
    %c1_i32_50 = arith.constant 1 : i32
    %124 = vector.broadcast %c1_i32_50 : i32 to vector<1x512xi32>
    %125 = arith.addi %2, %124 : vector<1x512xi32>
    %c0_i32_51 = arith.constant 0 : i32
    %126 = vector.broadcast %c0_i32_51 : i32 to vector<1x512xi32>
    %127 = arith.cmpi sge, %125, %126 : vector<1x512xi32>
    %128 = arith.andi %123, %127 : vector<1x512xi1>
    %c1_i32_52 = arith.constant 1 : i32
    %129 = vector.broadcast %c1_i32_52 : i32 to vector<1x512xi32>
    %130 = arith.addi %2, %129 : vector<1x512xi32>
    %c16_i32_53 = arith.constant 16 : i32
    %131 = vector.broadcast %c16_i32_53 : i32 to vector<1x512xi32>
    %132 = arith.cmpi slt, %130, %131 : vector<1x512xi32>
    %133 = arith.andi %128, %132 : vector<1x512xi1>
    %cst_54 = arith.constant 0.000000e+00 : f32
    %134 = vector.shape_cast %133 : vector<1x512xi1> to vector<1x512xi1>
    %135 = vector.broadcast %134 : vector<1x512xi1> to vector<8x512xi1>
    %136 = vector.broadcast %cst_54 : f32 to vector<8x512xf32>
    %137 = arith.select %135, %114, %136 : vector<8x512xi1>, vector<8x512xf32>
    %c497_i32 = arith.constant 497 : i32
    %138 = tpu.dynamic_rotate %10 by %c497_i32 dim 1 : vector<8x512xf32>, i32 -> vector<8x512xf32>
    %c1_i32_55 = arith.constant 1 : i32
    %139 = vector.broadcast %c1_i32_55 : i32 to vector<1x512xi32>
    %140 = arith.addi %1, %139 : vector<1x512xi32>
    %c0_i32_56 = arith.constant 0 : i32
    %141 = vector.broadcast %c0_i32_56 : i32 to vector<1x512xi32>
    %142 = arith.cmpi sge, %140, %141 : vector<1x512xi32>
    %c1_i32_57 = arith.constant 1 : i32
    %143 = vector.broadcast %c1_i32_57 : i32 to vector<1x512xi32>
    %144 = arith.addi %1, %143 : vector<1x512xi32>
    %c16_i32_58 = arith.constant 16 : i32
    %145 = vector.broadcast %c16_i32_58 : i32 to vector<1x512xi32>
    %146 = arith.cmpi slt, %144, %145 : vector<1x512xi32>
    %147 = arith.andi %142, %146 : vector<1x512xi1>
    %c-1_i32_59 = arith.constant -1 : i32
    %148 = vector.broadcast %c-1_i32_59 : i32 to vector<1x512xi32>
    %149 = arith.addi %2, %148 : vector<1x512xi32>
    %c0_i32_60 = arith.constant 0 : i32
    %150 = vector.broadcast %c0_i32_60 : i32 to vector<1x512xi32>
    %151 = arith.cmpi sge, %149, %150 : vector<1x512xi32>
    %152 = arith.andi %147, %151 : vector<1x512xi1>
    %c-1_i32_61 = arith.constant -1 : i32
    %153 = vector.broadcast %c-1_i32_61 : i32 to vector<1x512xi32>
    %154 = arith.addi %2, %153 : vector<1x512xi32>
    %c16_i32_62 = arith.constant 16 : i32
    %155 = vector.broadcast %c16_i32_62 : i32 to vector<1x512xi32>
    %156 = arith.cmpi slt, %154, %155 : vector<1x512xi32>
    %157 = arith.andi %152, %156 : vector<1x512xi1>
    %cst_63 = arith.constant 0.000000e+00 : f32
    %158 = vector.shape_cast %157 : vector<1x512xi1> to vector<1x512xi1>
    %159 = vector.broadcast %158 : vector<1x512xi1> to vector<8x512xi1>
    %160 = vector.broadcast %cst_63 : f32 to vector<8x512xf32>
    %161 = arith.select %159, %138, %160 : vector<8x512xi1>, vector<8x512xf32>
    %c496_i32 = arith.constant 496 : i32
    %162 = tpu.dynamic_rotate %10 by %c496_i32 dim 1 : vector<8x512xf32>, i32 -> vector<8x512xf32>
    %c1_i32_64 = arith.constant 1 : i32
    %163 = vector.broadcast %c1_i32_64 : i32 to vector<1x512xi32>
    %164 = arith.addi %1, %163 : vector<1x512xi32>
    %c0_i32_65 = arith.constant 0 : i32
    %165 = vector.broadcast %c0_i32_65 : i32 to vector<1x512xi32>
    %166 = arith.cmpi sge, %164, %165 : vector<1x512xi32>
    %c1_i32_66 = arith.constant 1 : i32
    %167 = vector.broadcast %c1_i32_66 : i32 to vector<1x512xi32>
    %168 = arith.addi %1, %167 : vector<1x512xi32>
    %c16_i32_67 = arith.constant 16 : i32
    %169 = vector.broadcast %c16_i32_67 : i32 to vector<1x512xi32>
    %170 = arith.cmpi slt, %168, %169 : vector<1x512xi32>
    %171 = arith.andi %166, %170 : vector<1x512xi1>
    %c0_i32_68 = arith.constant 0 : i32
    %172 = vector.broadcast %c0_i32_68 : i32 to vector<1x512xi32>
    %173 = arith.addi %2, %172 : vector<1x512xi32>
    %c0_i32_69 = arith.constant 0 : i32
    %174 = vector.broadcast %c0_i32_69 : i32 to vector<1x512xi32>
    %175 = arith.cmpi sge, %173, %174 : vector<1x512xi32>
    %176 = arith.andi %171, %175 : vector<1x512xi1>
    %c0_i32_70 = arith.constant 0 : i32
    %177 = vector.broadcast %c0_i32_70 : i32 to vector<1x512xi32>
    %178 = arith.addi %2, %177 : vector<1x512xi32>
    %c16_i32_71 = arith.constant 16 : i32
    %179 = vector.broadcast %c16_i32_71 : i32 to vector<1x512xi32>
    %180 = arith.cmpi slt, %178, %179 : vector<1x512xi32>
    %181 = arith.andi %176, %180 : vector<1x512xi1>
    %cst_72 = arith.constant 0.000000e+00 : f32
    %182 = vector.shape_cast %181 : vector<1x512xi1> to vector<1x512xi1>
    %183 = vector.broadcast %182 : vector<1x512xi1> to vector<8x512xi1>
    %184 = vector.broadcast %cst_72 : f32 to vector<8x512xf32>
    %185 = arith.select %183, %162, %184 : vector<8x512xi1>, vector<8x512xf32>
    %c495_i32 = arith.constant 495 : i32
    %186 = tpu.dynamic_rotate %10 by %c495_i32 dim 1 : vector<8x512xf32>, i32 -> vector<8x512xf32>
    %c1_i32_73 = arith.constant 1 : i32
    %187 = vector.broadcast %c1_i32_73 : i32 to vector<1x512xi32>
    %188 = arith.addi %1, %187 : vector<1x512xi32>
    %c0_i32_74 = arith.constant 0 : i32
    %189 = vector.broadcast %c0_i32_74 : i32 to vector<1x512xi32>
    %190 = arith.cmpi sge, %188, %189 : vector<1x512xi32>
    %c1_i32_75 = arith.constant 1 : i32
    %191 = vector.broadcast %c1_i32_75 : i32 to vector<1x512xi32>
    %192 = arith.addi %1, %191 : vector<1x512xi32>
    %c16_i32_76 = arith.constant 16 : i32
    %193 = vector.broadcast %c16_i32_76 : i32 to vector<1x512xi32>
    %194 = arith.cmpi slt, %192, %193 : vector<1x512xi32>
    %195 = arith.andi %190, %194 : vector<1x512xi1>
    %c1_i32_77 = arith.constant 1 : i32
    %196 = vector.broadcast %c1_i32_77 : i32 to vector<1x512xi32>
    %197 = arith.addi %2, %196 : vector<1x512xi32>
    %c0_i32_78 = arith.constant 0 : i32
    %198 = vector.broadcast %c0_i32_78 : i32 to vector<1x512xi32>
    %199 = arith.cmpi sge, %197, %198 : vector<1x512xi32>
    %200 = arith.andi %195, %199 : vector<1x512xi1>
    %c1_i32_79 = arith.constant 1 : i32
    %201 = vector.broadcast %c1_i32_79 : i32 to vector<1x512xi32>
    %202 = arith.addi %2, %201 : vector<1x512xi32>
    %c16_i32_80 = arith.constant 16 : i32
    %203 = vector.broadcast %c16_i32_80 : i32 to vector<1x512xi32>
    %204 = arith.cmpi slt, %202, %203 : vector<1x512xi32>
    %205 = arith.andi %200, %204 : vector<1x512xi1>
    %cst_81 = arith.constant 0.000000e+00 : f32
    %206 = vector.shape_cast %205 : vector<1x512xi1> to vector<1x512xi1>
    %207 = vector.broadcast %206 : vector<1x512xi1> to vector<8x512xi1>
    %208 = vector.broadcast %cst_81 : f32 to vector<8x512xf32>
    %209 = arith.select %207, %186, %208 : vector<8x512xi1>, vector<8x512xf32>
    %210 = tpu.concatenate %41, %65, %89, %113, %10, %137, %161, %185, %209 in 0 : vector<8x512xf32>, vector<8x512xf32>, vector<8x512xf32>, vector<8x512xf32>, vector<8x512xf32>, vector<8x512xf32>, vector<8x512xf32>, vector<8x512xf32>, vector<8x512xf32> -> vector<72x512xf32>
    %c0_82 = arith.constant 0 : index
    %c0_83 = arith.constant 0 : index
    %211 = vector.load %arg6[%c0_82, %c0_83] : memref<8x72xf32, #tpu.memory_space<vmem>>, vector<8x72xf32>
    %cst_84 = arith.constant dense<0.000000e+00> : vector<8x512xf32>
    %212 = tpu.matmul %211, %210, %cst_84 {dimension_numbers = #tpu.dot_dimension_numbers<[1], [0], [0], [1], [0, 0, 1, 1], [], []>} : vector<8x72xf32>, vector<72x512xf32>, vector<8x512xf32> -> vector<8x512xf32>
    %c0_85 = arith.constant 0 : index
    %c0_86 = arith.constant 0 : index
    %213 = vector.load %arg7[%c0_85, %c0_86] : memref<8x1xf32, #tpu.memory_space<vmem>>, vector<8x1xf32>
    %214 = vector.broadcast %213 : vector<8x1xf32> to vector<8x512xf32>
    %215 = arith.addf %212, %214 : vector<8x512xf32>
    %c17_i32_87 = arith.constant 17 : i32
    %216 = tpu.dynamic_rotate %13 by %c17_i32_87 dim 1 : vector<8x512xf32>, i32 -> vector<8x512xf32>
    %c-1_i32_88 = arith.constant -1 : i32
    %217 = vector.broadcast %c-1_i32_88 : i32 to vector<1x512xi32>
    %218 = arith.addi %1, %217 : vector<1x512xi32>
    %c0_i32_89 = arith.constant 0 : i32
    %219 = vector.broadcast %c0_i32_89 : i32 to vector<1x512xi32>
    %220 = arith.cmpi sge, %218, %219 : vector<1x512xi32>
    %c-1_i32_90 = arith.constant -1 : i32
    %221 = vector.broadcast %c-1_i32_90 : i32 to vector<1x512xi32>
    %222 = arith.addi %1, %221 : vector<1x512xi32>
    %c16_i32_91 = arith.constant 16 : i32
    %223 = vector.broadcast %c16_i32_91 : i32 to vector<1x512xi32>
    %224 = arith.cmpi slt, %222, %223 : vector<1x512xi32>
    %225 = arith.andi %220, %224 : vector<1x512xi1>
    %c-1_i32_92 = arith.constant -1 : i32
    %226 = vector.broadcast %c-1_i32_92 : i32 to vector<1x512xi32>
    %227 = arith.addi %2, %226 : vector<1x512xi32>
    %c0_i32_93 = arith.constant 0 : i32
    %228 = vector.broadcast %c0_i32_93 : i32 to vector<1x512xi32>
    %229 = arith.cmpi sge, %227, %228 : vector<1x512xi32>
    %230 = arith.andi %225, %229 : vector<1x512xi1>
    %c-1_i32_94 = arith.constant -1 : i32
    %231 = vector.broadcast %c-1_i32_94 : i32 to vector<1x512xi32>
    %232 = arith.addi %2, %231 : vector<1x512xi32>
    %c16_i32_95 = arith.constant 16 : i32
    %233 = vector.broadcast %c16_i32_95 : i32 to vector<1x512xi32>
    %234 = arith.cmpi slt, %232, %233 : vector<1x512xi32>
    %235 = arith.andi %230, %234 : vector<1x512xi1>
    %cst_96 = arith.constant 0.000000e+00 : f32
    %236 = vector.shape_cast %235 : vector<1x512xi1> to vector<1x512xi1>
    %237 = vector.broadcast %236 : vector<1x512xi1> to vector<8x512xi1>
    %238 = vector.broadcast %cst_96 : f32 to vector<8x512xf32>
    %239 = arith.select %237, %216, %238 : vector<8x512xi1>, vector<8x512xf32>
    %c16_i32_97 = arith.constant 16 : i32
    %240 = tpu.dynamic_rotate %13 by %c16_i32_97 dim 1 : vector<8x512xf32>, i32 -> vector<8x512xf32>
    %c-1_i32_98 = arith.constant -1 : i32
    %241 = vector.broadcast %c-1_i32_98 : i32 to vector<1x512xi32>
    %242 = arith.addi %1, %241 : vector<1x512xi32>
    %c0_i32_99 = arith.constant 0 : i32
    %243 = vector.broadcast %c0_i32_99 : i32 to vector<1x512xi32>
    %244 = arith.cmpi sge, %242, %243 : vector<1x512xi32>
    %c-1_i32_100 = arith.constant -1 : i32
    %245 = vector.broadcast %c-1_i32_100 : i32 to vector<1x512xi32>
    %246 = arith.addi %1, %245 : vector<1x512xi32>
    %c16_i32_101 = arith.constant 16 : i32
    %247 = vector.broadcast %c16_i32_101 : i32 to vector<1x512xi32>
    %248 = arith.cmpi slt, %246, %247 : vector<1x512xi32>
    %249 = arith.andi %244, %248 : vector<1x512xi1>
    %c0_i32_102 = arith.constant 0 : i32
    %250 = vector.broadcast %c0_i32_102 : i32 to vector<1x512xi32>
    %251 = arith.addi %2, %250 : vector<1x512xi32>
    %c0_i32_103 = arith.constant 0 : i32
    %252 = vector.broadcast %c0_i32_103 : i32 to vector<1x512xi32>
    %253 = arith.cmpi sge, %251, %252 : vector<1x512xi32>
    %254 = arith.andi %249, %253 : vector<1x512xi1>
    %c0_i32_104 = arith.constant 0 : i32
    %255 = vector.broadcast %c0_i32_104 : i32 to vector<1x512xi32>
    %256 = arith.addi %2, %255 : vector<1x512xi32>
    %c16_i32_105 = arith.constant 16 : i32
    %257 = vector.broadcast %c16_i32_105 : i32 to vector<1x512xi32>
    %258 = arith.cmpi slt, %256, %257 : vector<1x512xi32>
    %259 = arith.andi %254, %258 : vector<1x512xi1>
    %cst_106 = arith.constant 0.000000e+00 : f32
    %260 = vector.shape_cast %259 : vector<1x512xi1> to vector<1x512xi1>
    %261 = vector.broadcast %260 : vector<1x512xi1> to vector<8x512xi1>
    %262 = vector.broadcast %cst_106 : f32 to vector<8x512xf32>
    %263 = arith.select %261, %240, %262 : vector<8x512xi1>, vector<8x512xf32>
    %c15_i32_107 = arith.constant 15 : i32
    %264 = tpu.dynamic_rotate %13 by %c15_i32_107 dim 1 : vector<8x512xf32>, i32 -> vector<8x512xf32>
    %c-1_i32_108 = arith.constant -1 : i32
    %265 = vector.broadcast %c-1_i32_108 : i32 to vector<1x512xi32>
    %266 = arith.addi %1, %265 : vector<1x512xi32>
    %c0_i32_109 = arith.constant 0 : i32
    %267 = vector.broadcast %c0_i32_109 : i32 to vector<1x512xi32>
    %268 = arith.cmpi sge, %266, %267 : vector<1x512xi32>
    %c-1_i32_110 = arith.constant -1 : i32
    %269 = vector.broadcast %c-1_i32_110 : i32 to vector<1x512xi32>
    %270 = arith.addi %1, %269 : vector<1x512xi32>
    %c16_i32_111 = arith.constant 16 : i32
    %271 = vector.broadcast %c16_i32_111 : i32 to vector<1x512xi32>
    %272 = arith.cmpi slt, %270, %271 : vector<1x512xi32>
    %273 = arith.andi %268, %272 : vector<1x512xi1>
    %c1_i32_112 = arith.constant 1 : i32
    %274 = vector.broadcast %c1_i32_112 : i32 to vector<1x512xi32>
    %275 = arith.addi %2, %274 : vector<1x512xi32>
    %c0_i32_113 = arith.constant 0 : i32
    %276 = vector.broadcast %c0_i32_113 : i32 to vector<1x512xi32>
    %277 = arith.cmpi sge, %275, %276 : vector<1x512xi32>
    %278 = arith.andi %273, %277 : vector<1x512xi1>
    %c1_i32_114 = arith.constant 1 : i32
    %279 = vector.broadcast %c1_i32_114 : i32 to vector<1x512xi32>
    %280 = arith.addi %2, %279 : vector<1x512xi32>
    %c16_i32_115 = arith.constant 16 : i32
    %281 = vector.broadcast %c16_i32_115 : i32 to vector<1x512xi32>
    %282 = arith.cmpi slt, %280, %281 : vector<1x512xi32>
    %283 = arith.andi %278, %282 : vector<1x512xi1>
    %cst_116 = arith.constant 0.000000e+00 : f32
    %284 = vector.shape_cast %283 : vector<1x512xi1> to vector<1x512xi1>
    %285 = vector.broadcast %284 : vector<1x512xi1> to vector<8x512xi1>
    %286 = vector.broadcast %cst_116 : f32 to vector<8x512xf32>
    %287 = arith.select %285, %264, %286 : vector<8x512xi1>, vector<8x512xf32>
    %c1_i32_117 = arith.constant 1 : i32
    %288 = tpu.dynamic_rotate %13 by %c1_i32_117 dim 1 : vector<8x512xf32>, i32 -> vector<8x512xf32>
    %c0_i32_118 = arith.constant 0 : i32
    %289 = vector.broadcast %c0_i32_118 : i32 to vector<1x512xi32>
    %290 = arith.addi %1, %289 : vector<1x512xi32>
    %c0_i32_119 = arith.constant 0 : i32
    %291 = vector.broadcast %c0_i32_119 : i32 to vector<1x512xi32>
    %292 = arith.cmpi sge, %290, %291 : vector<1x512xi32>
    %c0_i32_120 = arith.constant 0 : i32
    %293 = vector.broadcast %c0_i32_120 : i32 to vector<1x512xi32>
    %294 = arith.addi %1, %293 : vector<1x512xi32>
    %c16_i32_121 = arith.constant 16 : i32
    %295 = vector.broadcast %c16_i32_121 : i32 to vector<1x512xi32>
    %296 = arith.cmpi slt, %294, %295 : vector<1x512xi32>
    %297 = arith.andi %292, %296 : vector<1x512xi1>
    %c-1_i32_122 = arith.constant -1 : i32
    %298 = vector.broadcast %c-1_i32_122 : i32 to vector<1x512xi32>
    %299 = arith.addi %2, %298 : vector<1x512xi32>
    %c0_i32_123 = arith.constant 0 : i32
    %300 = vector.broadcast %c0_i32_123 : i32 to vector<1x512xi32>
    %301 = arith.cmpi sge, %299, %300 : vector<1x512xi32>
    %302 = arith.andi %297, %301 : vector<1x512xi1>
    %c-1_i32_124 = arith.constant -1 : i32
    %303 = vector.broadcast %c-1_i32_124 : i32 to vector<1x512xi32>
    %304 = arith.addi %2, %303 : vector<1x512xi32>
    %c16_i32_125 = arith.constant 16 : i32
    %305 = vector.broadcast %c16_i32_125 : i32 to vector<1x512xi32>
    %306 = arith.cmpi slt, %304, %305 : vector<1x512xi32>
    %307 = arith.andi %302, %306 : vector<1x512xi1>
    %cst_126 = arith.constant 0.000000e+00 : f32
    %308 = vector.shape_cast %307 : vector<1x512xi1> to vector<1x512xi1>
    %309 = vector.broadcast %308 : vector<1x512xi1> to vector<8x512xi1>
    %310 = vector.broadcast %cst_126 : f32 to vector<8x512xf32>
    %311 = arith.select %309, %288, %310 : vector<8x512xi1>, vector<8x512xf32>
    %c511_i32_127 = arith.constant 511 : i32
    %312 = tpu.dynamic_rotate %13 by %c511_i32_127 dim 1 : vector<8x512xf32>, i32 -> vector<8x512xf32>
    %c0_i32_128 = arith.constant 0 : i32
    %313 = vector.broadcast %c0_i32_128 : i32 to vector<1x512xi32>
    %314 = arith.addi %1, %313 : vector<1x512xi32>
    %c0_i32_129 = arith.constant 0 : i32
    %315 = vector.broadcast %c0_i32_129 : i32 to vector<1x512xi32>
    %316 = arith.cmpi sge, %314, %315 : vector<1x512xi32>
    %c0_i32_130 = arith.constant 0 : i32
    %317 = vector.broadcast %c0_i32_130 : i32 to vector<1x512xi32>
    %318 = arith.addi %1, %317 : vector<1x512xi32>
    %c16_i32_131 = arith.constant 16 : i32
    %319 = vector.broadcast %c16_i32_131 : i32 to vector<1x512xi32>
    %320 = arith.cmpi slt, %318, %319 : vector<1x512xi32>
    %321 = arith.andi %316, %320 : vector<1x512xi1>
    %c1_i32_132 = arith.constant 1 : i32
    %322 = vector.broadcast %c1_i32_132 : i32 to vector<1x512xi32>
    %323 = arith.addi %2, %322 : vector<1x512xi32>
    %c0_i32_133 = arith.constant 0 : i32
    %324 = vector.broadcast %c0_i32_133 : i32 to vector<1x512xi32>
    %325 = arith.cmpi sge, %323, %324 : vector<1x512xi32>
    %326 = arith.andi %321, %325 : vector<1x512xi1>
    %c1_i32_134 = arith.constant 1 : i32
    %327 = vector.broadcast %c1_i32_134 : i32 to vector<1x512xi32>
    %328 = arith.addi %2, %327 : vector<1x512xi32>
    %c16_i32_135 = arith.constant 16 : i32
    %329 = vector.broadcast %c16_i32_135 : i32 to vector<1x512xi32>
    %330 = arith.cmpi slt, %328, %329 : vector<1x512xi32>
    %331 = arith.andi %326, %330 : vector<1x512xi1>
    %cst_136 = arith.constant 0.000000e+00 : f32
    %332 = vector.shape_cast %331 : vector<1x512xi1> to vector<1x512xi1>
    %333 = vector.broadcast %332 : vector<1x512xi1> to vector<8x512xi1>
    %334 = vector.broadcast %cst_136 : f32 to vector<8x512xf32>
    %335 = arith.select %333, %312, %334 : vector<8x512xi1>, vector<8x512xf32>
    %c497_i32_137 = arith.constant 497 : i32
    %336 = tpu.dynamic_rotate %13 by %c497_i32_137 dim 1 : vector<8x512xf32>, i32 -> vector<8x512xf32>
    %c1_i32_138 = arith.constant 1 : i32
    %337 = vector.broadcast %c1_i32_138 : i32 to vector<1x512xi32>
    %338 = arith.addi %1, %337 : vector<1x512xi32>
    %c0_i32_139 = arith.constant 0 : i32
    %339 = vector.broadcast %c0_i32_139 : i32 to vector<1x512xi32>
    %340 = arith.cmpi sge, %338, %339 : vector<1x512xi32>
    %c1_i32_140 = arith.constant 1 : i32
    %341 = vector.broadcast %c1_i32_140 : i32 to vector<1x512xi32>
    %342 = arith.addi %1, %341 : vector<1x512xi32>
    %c16_i32_141 = arith.constant 16 : i32
    %343 = vector.broadcast %c16_i32_141 : i32 to vector<1x512xi32>
    %344 = arith.cmpi slt, %342, %343 : vector<1x512xi32>
    %345 = arith.andi %340, %344 : vector<1x512xi1>
    %c-1_i32_142 = arith.constant -1 : i32
    %346 = vector.broadcast %c-1_i32_142 : i32 to vector<1x512xi32>
    %347 = arith.addi %2, %346 : vector<1x512xi32>
    %c0_i32_143 = arith.constant 0 : i32
    %348 = vector.broadcast %c0_i32_143 : i32 to vector<1x512xi32>
    %349 = arith.cmpi sge, %347, %348 : vector<1x512xi32>
    %350 = arith.andi %345, %349 : vector<1x512xi1>
    %c-1_i32_144 = arith.constant -1 : i32
    %351 = vector.broadcast %c-1_i32_144 : i32 to vector<1x512xi32>
    %352 = arith.addi %2, %351 : vector<1x512xi32>
    %c16_i32_145 = arith.constant 16 : i32
    %353 = vector.broadcast %c16_i32_145 : i32 to vector<1x512xi32>
    %354 = arith.cmpi slt, %352, %353 : vector<1x512xi32>
    %355 = arith.andi %350, %354 : vector<1x512xi1>
    %cst_146 = arith.constant 0.000000e+00 : f32
    %356 = vector.shape_cast %355 : vector<1x512xi1> to vector<1x512xi1>
    %357 = vector.broadcast %356 : vector<1x512xi1> to vector<8x512xi1>
    %358 = vector.broadcast %cst_146 : f32 to vector<8x512xf32>
    %359 = arith.select %357, %336, %358 : vector<8x512xi1>, vector<8x512xf32>
    %c496_i32_147 = arith.constant 496 : i32
    %360 = tpu.dynamic_rotate %13 by %c496_i32_147 dim 1 : vector<8x512xf32>, i32 -> vector<8x512xf32>
    %c1_i32_148 = arith.constant 1 : i32
    %361 = vector.broadcast %c1_i32_148 : i32 to vector<1x512xi32>
    %362 = arith.addi %1, %361 : vector<1x512xi32>
    %c0_i32_149 = arith.constant 0 : i32
    %363 = vector.broadcast %c0_i32_149 : i32 to vector<1x512xi32>
    %364 = arith.cmpi sge, %362, %363 : vector<1x512xi32>
    %c1_i32_150 = arith.constant 1 : i32
    %365 = vector.broadcast %c1_i32_150 : i32 to vector<1x512xi32>
    %366 = arith.addi %1, %365 : vector<1x512xi32>
    %c16_i32_151 = arith.constant 16 : i32
    %367 = vector.broadcast %c16_i32_151 : i32 to vector<1x512xi32>
    %368 = arith.cmpi slt, %366, %367 : vector<1x512xi32>
    %369 = arith.andi %364, %368 : vector<1x512xi1>
    %c0_i32_152 = arith.constant 0 : i32
    %370 = vector.broadcast %c0_i32_152 : i32 to vector<1x512xi32>
    %371 = arith.addi %2, %370 : vector<1x512xi32>
    %c0_i32_153 = arith.constant 0 : i32
    %372 = vector.broadcast %c0_i32_153 : i32 to vector<1x512xi32>
    %373 = arith.cmpi sge, %371, %372 : vector<1x512xi32>
    %374 = arith.andi %369, %373 : vector<1x512xi1>
    %c0_i32_154 = arith.constant 0 : i32
    %375 = vector.broadcast %c0_i32_154 : i32 to vector<1x512xi32>
    %376 = arith.addi %2, %375 : vector<1x512xi32>
    %c16_i32_155 = arith.constant 16 : i32
    %377 = vector.broadcast %c16_i32_155 : i32 to vector<1x512xi32>
    %378 = arith.cmpi slt, %376, %377 : vector<1x512xi32>
    %379 = arith.andi %374, %378 : vector<1x512xi1>
    %cst_156 = arith.constant 0.000000e+00 : f32
    %380 = vector.shape_cast %379 : vector<1x512xi1> to vector<1x512xi1>
    %381 = vector.broadcast %380 : vector<1x512xi1> to vector<8x512xi1>
    %382 = vector.broadcast %cst_156 : f32 to vector<8x512xf32>
    %383 = arith.select %381, %360, %382 : vector<8x512xi1>, vector<8x512xf32>
    %c495_i32_157 = arith.constant 495 : i32
    %384 = tpu.dynamic_rotate %13 by %c495_i32_157 dim 1 : vector<8x512xf32>, i32 -> vector<8x512xf32>
    %c1_i32_158 = arith.constant 1 : i32
    %385 = vector.broadcast %c1_i32_158 : i32 to vector<1x512xi32>
    %386 = arith.addi %1, %385 : vector<1x512xi32>
    %c0_i32_159 = arith.constant 0 : i32
    %387 = vector.broadcast %c0_i32_159 : i32 to vector<1x512xi32>
    %388 = arith.cmpi sge, %386, %387 : vector<1x512xi32>
    %c1_i32_160 = arith.constant 1 : i32
    %389 = vector.broadcast %c1_i32_160 : i32 to vector<1x512xi32>
    %390 = arith.addi %1, %389 : vector<1x512xi32>
    %c16_i32_161 = arith.constant 16 : i32
    %391 = vector.broadcast %c16_i32_161 : i32 to vector<1x512xi32>
    %392 = arith.cmpi slt, %390, %391 : vector<1x512xi32>
    %393 = arith.andi %388, %392 : vector<1x512xi1>
    %c1_i32_162 = arith.constant 1 : i32
    %394 = vector.broadcast %c1_i32_162 : i32 to vector<1x512xi32>
    %395 = arith.addi %2, %394 : vector<1x512xi32>
    %c0_i32_163 = arith.constant 0 : i32
    %396 = vector.broadcast %c0_i32_163 : i32 to vector<1x512xi32>
    %397 = arith.cmpi sge, %395, %396 : vector<1x512xi32>
    %398 = arith.andi %393, %397 : vector<1x512xi1>
    %c1_i32_164 = arith.constant 1 : i32
    %399 = vector.broadcast %c1_i32_164 : i32 to vector<1x512xi32>
    %400 = arith.addi %2, %399 : vector<1x512xi32>
    %c16_i32_165 = arith.constant 16 : i32
    %401 = vector.broadcast %c16_i32_165 : i32 to vector<1x512xi32>
    %402 = arith.cmpi slt, %400, %401 : vector<1x512xi32>
    %403 = arith.andi %398, %402 : vector<1x512xi1>
    %cst_166 = arith.constant 0.000000e+00 : f32
    %404 = vector.shape_cast %403 : vector<1x512xi1> to vector<1x512xi1>
    %405 = vector.broadcast %404 : vector<1x512xi1> to vector<8x512xi1>
    %406 = vector.broadcast %cst_166 : f32 to vector<8x512xf32>
    %407 = arith.select %405, %384, %406 : vector<8x512xi1>, vector<8x512xf32>
    %408 = tpu.concatenate %239, %263, %287, %311, %13, %335, %359, %383, %407 in 0 : vector<8x512xf32>, vector<8x512xf32>, vector<8x512xf32>, vector<8x512xf32>, vector<8x512xf32>, vector<8x512xf32>, vector<8x512xf32>, vector<8x512xf32>, vector<8x512xf32> -> vector<72x512xf32>
    %c0_167 = arith.constant 0 : index
    %c0_168 = arith.constant 0 : index
    %409 = vector.load %arg8[%c0_167, %c0_168] : memref<8x72xf32, #tpu.memory_space<vmem>>, vector<8x72xf32>
    %cst_169 = arith.constant dense<0.000000e+00> : vector<8x512xf32>
    %410 = tpu.matmul %409, %408, %cst_169 {dimension_numbers = #tpu.dot_dimension_numbers<[1], [0], [0], [1], [0, 0, 1, 1], [], []>} : vector<8x72xf32>, vector<72x512xf32>, vector<8x512xf32> -> vector<8x512xf32>
    %c0_170 = arith.constant 0 : index
    %c0_171 = arith.constant 0 : index
    %411 = vector.load %arg9[%c0_170, %c0_171] : memref<8x1xf32, #tpu.memory_space<vmem>>, vector<8x1xf32>
    %412 = vector.broadcast %411 : vector<8x1xf32> to vector<8x512xf32>
    %413 = arith.addf %410, %412 : vector<8x512xf32>
    %cst_172 = arith.constant 0.000000e+00 : f32
    %414 = vector.broadcast %cst_172 : f32 to vector<8x512xf32>
    %415 = arith.maximumf %413, %414 : vector<8x512xf32>
    %c34_i32 = arith.constant 34 : i32
    %416 = tpu.dynamic_rotate %415 by %c34_i32 dim 1 : vector<8x512xf32>, i32 -> vector<8x512xf32>
    %c-2_i32 = arith.constant -2 : i32
    %417 = vector.broadcast %c-2_i32 : i32 to vector<1x512xi32>
    %418 = arith.addi %1, %417 : vector<1x512xi32>
    %c0_i32_173 = arith.constant 0 : i32
    %419 = vector.broadcast %c0_i32_173 : i32 to vector<1x512xi32>
    %420 = arith.cmpi sge, %418, %419 : vector<1x512xi32>
    %c-2_i32_174 = arith.constant -2 : i32
    %421 = vector.broadcast %c-2_i32_174 : i32 to vector<1x512xi32>
    %422 = arith.addi %1, %421 : vector<1x512xi32>
    %c16_i32_175 = arith.constant 16 : i32
    %423 = vector.broadcast %c16_i32_175 : i32 to vector<1x512xi32>
    %424 = arith.cmpi slt, %422, %423 : vector<1x512xi32>
    %425 = arith.andi %420, %424 : vector<1x512xi1>
    %c-2_i32_176 = arith.constant -2 : i32
    %426 = vector.broadcast %c-2_i32_176 : i32 to vector<1x512xi32>
    %427 = arith.addi %2, %426 : vector<1x512xi32>
    %c0_i32_177 = arith.constant 0 : i32
    %428 = vector.broadcast %c0_i32_177 : i32 to vector<1x512xi32>
    %429 = arith.cmpi sge, %427, %428 : vector<1x512xi32>
    %430 = arith.andi %425, %429 : vector<1x512xi1>
    %c-2_i32_178 = arith.constant -2 : i32
    %431 = vector.broadcast %c-2_i32_178 : i32 to vector<1x512xi32>
    %432 = arith.addi %2, %431 : vector<1x512xi32>
    %c16_i32_179 = arith.constant 16 : i32
    %433 = vector.broadcast %c16_i32_179 : i32 to vector<1x512xi32>
    %434 = arith.cmpi slt, %432, %433 : vector<1x512xi32>
    %435 = arith.andi %430, %434 : vector<1x512xi1>
    %cst_180 = arith.constant 0.000000e+00 : f32
    %436 = vector.shape_cast %435 : vector<1x512xi1> to vector<1x512xi1>
    %437 = vector.broadcast %436 : vector<1x512xi1> to vector<8x512xi1>
    %438 = vector.broadcast %cst_180 : f32 to vector<8x512xf32>
    %439 = arith.select %437, %416, %438 : vector<8x512xi1>, vector<8x512xf32>
    %c32_i32 = arith.constant 32 : i32
    %440 = tpu.dynamic_rotate %415 by %c32_i32 dim 1 : vector<8x512xf32>, i32 -> vector<8x512xf32>
    %c-2_i32_181 = arith.constant -2 : i32
    %441 = vector.broadcast %c-2_i32_181 : i32 to vector<1x512xi32>
    %442 = arith.addi %1, %441 : vector<1x512xi32>
    %c0_i32_182 = arith.constant 0 : i32
    %443 = vector.broadcast %c0_i32_182 : i32 to vector<1x512xi32>
    %444 = arith.cmpi sge, %442, %443 : vector<1x512xi32>
    %c-2_i32_183 = arith.constant -2 : i32
    %445 = vector.broadcast %c-2_i32_183 : i32 to vector<1x512xi32>
    %446 = arith.addi %1, %445 : vector<1x512xi32>
    %c16_i32_184 = arith.constant 16 : i32
    %447 = vector.broadcast %c16_i32_184 : i32 to vector<1x512xi32>
    %448 = arith.cmpi slt, %446, %447 : vector<1x512xi32>
    %449 = arith.andi %444, %448 : vector<1x512xi1>
    %c0_i32_185 = arith.constant 0 : i32
    %450 = vector.broadcast %c0_i32_185 : i32 to vector<1x512xi32>
    %451 = arith.addi %2, %450 : vector<1x512xi32>
    %c0_i32_186 = arith.constant 0 : i32
    %452 = vector.broadcast %c0_i32_186 : i32 to vector<1x512xi32>
    %453 = arith.cmpi sge, %451, %452 : vector<1x512xi32>
    %454 = arith.andi %449, %453 : vector<1x512xi1>
    %c0_i32_187 = arith.constant 0 : i32
    %455 = vector.broadcast %c0_i32_187 : i32 to vector<1x512xi32>
    %456 = arith.addi %2, %455 : vector<1x512xi32>
    %c16_i32_188 = arith.constant 16 : i32
    %457 = vector.broadcast %c16_i32_188 : i32 to vector<1x512xi32>
    %458 = arith.cmpi slt, %456, %457 : vector<1x512xi32>
    %459 = arith.andi %454, %458 : vector<1x512xi1>
    %cst_189 = arith.constant 0.000000e+00 : f32
    %460 = vector.shape_cast %459 : vector<1x512xi1> to vector<1x512xi1>
    %461 = vector.broadcast %460 : vector<1x512xi1> to vector<8x512xi1>
    %462 = vector.broadcast %cst_189 : f32 to vector<8x512xf32>
    %463 = arith.select %461, %440, %462 : vector<8x512xi1>, vector<8x512xf32>
    %c30_i32 = arith.constant 30 : i32
    %464 = tpu.dynamic_rotate %415 by %c30_i32 dim 1 : vector<8x512xf32>, i32 -> vector<8x512xf32>
    %c-2_i32_190 = arith.constant -2 : i32
    %465 = vector.broadcast %c-2_i32_190 : i32 to vector<1x512xi32>
    %466 = arith.addi %1, %465 : vector<1x512xi32>
    %c0_i32_191 = arith.constant 0 : i32
    %467 = vector.broadcast %c0_i32_191 : i32 to vector<1x512xi32>
    %468 = arith.cmpi sge, %466, %467 : vector<1x512xi32>
    %c-2_i32_192 = arith.constant -2 : i32
    %469 = vector.broadcast %c-2_i32_192 : i32 to vector<1x512xi32>
    %470 = arith.addi %1, %469 : vector<1x512xi32>
    %c16_i32_193 = arith.constant 16 : i32
    %471 = vector.broadcast %c16_i32_193 : i32 to vector<1x512xi32>
    %472 = arith.cmpi slt, %470, %471 : vector<1x512xi32>
    %473 = arith.andi %468, %472 : vector<1x512xi1>
    %c2_i32 = arith.constant 2 : i32
    %474 = vector.broadcast %c2_i32 : i32 to vector<1x512xi32>
    %475 = arith.addi %2, %474 : vector<1x512xi32>
    %c0_i32_194 = arith.constant 0 : i32
    %476 = vector.broadcast %c0_i32_194 : i32 to vector<1x512xi32>
    %477 = arith.cmpi sge, %475, %476 : vector<1x512xi32>
    %478 = arith.andi %473, %477 : vector<1x512xi1>
    %c2_i32_195 = arith.constant 2 : i32
    %479 = vector.broadcast %c2_i32_195 : i32 to vector<1x512xi32>
    %480 = arith.addi %2, %479 : vector<1x512xi32>
    %c16_i32_196 = arith.constant 16 : i32
    %481 = vector.broadcast %c16_i32_196 : i32 to vector<1x512xi32>
    %482 = arith.cmpi slt, %480, %481 : vector<1x512xi32>
    %483 = arith.andi %478, %482 : vector<1x512xi1>
    %cst_197 = arith.constant 0.000000e+00 : f32
    %484 = vector.shape_cast %483 : vector<1x512xi1> to vector<1x512xi1>
    %485 = vector.broadcast %484 : vector<1x512xi1> to vector<8x512xi1>
    %486 = vector.broadcast %cst_197 : f32 to vector<8x512xf32>
    %487 = arith.select %485, %464, %486 : vector<8x512xi1>, vector<8x512xf32>
    %c2_i32_198 = arith.constant 2 : i32
    %488 = tpu.dynamic_rotate %415 by %c2_i32_198 dim 1 : vector<8x512xf32>, i32 -> vector<8x512xf32>
    %c0_i32_199 = arith.constant 0 : i32
    %489 = vector.broadcast %c0_i32_199 : i32 to vector<1x512xi32>
    %490 = arith.addi %1, %489 : vector<1x512xi32>
    %c0_i32_200 = arith.constant 0 : i32
    %491 = vector.broadcast %c0_i32_200 : i32 to vector<1x512xi32>
    %492 = arith.cmpi sge, %490, %491 : vector<1x512xi32>
    %c0_i32_201 = arith.constant 0 : i32
    %493 = vector.broadcast %c0_i32_201 : i32 to vector<1x512xi32>
    %494 = arith.addi %1, %493 : vector<1x512xi32>
    %c16_i32_202 = arith.constant 16 : i32
    %495 = vector.broadcast %c16_i32_202 : i32 to vector<1x512xi32>
    %496 = arith.cmpi slt, %494, %495 : vector<1x512xi32>
    %497 = arith.andi %492, %496 : vector<1x512xi1>
    %c-2_i32_203 = arith.constant -2 : i32
    %498 = vector.broadcast %c-2_i32_203 : i32 to vector<1x512xi32>
    %499 = arith.addi %2, %498 : vector<1x512xi32>
    %c0_i32_204 = arith.constant 0 : i32
    %500 = vector.broadcast %c0_i32_204 : i32 to vector<1x512xi32>
    %501 = arith.cmpi sge, %499, %500 : vector<1x512xi32>
    %502 = arith.andi %497, %501 : vector<1x512xi1>
    %c-2_i32_205 = arith.constant -2 : i32
    %503 = vector.broadcast %c-2_i32_205 : i32 to vector<1x512xi32>
    %504 = arith.addi %2, %503 : vector<1x512xi32>
    %c16_i32_206 = arith.constant 16 : i32
    %505 = vector.broadcast %c16_i32_206 : i32 to vector<1x512xi32>
    %506 = arith.cmpi slt, %504, %505 : vector<1x512xi32>
    %507 = arith.andi %502, %506 : vector<1x512xi1>
    %cst_207 = arith.constant 0.000000e+00 : f32
    %508 = vector.shape_cast %507 : vector<1x512xi1> to vector<1x512xi1>
    %509 = vector.broadcast %508 : vector<1x512xi1> to vector<8x512xi1>
    %510 = vector.broadcast %cst_207 : f32 to vector<8x512xf32>
    %511 = arith.select %509, %488, %510 : vector<8x512xi1>, vector<8x512xf32>
    %c510_i32 = arith.constant 510 : i32
    %512 = tpu.dynamic_rotate %415 by %c510_i32 dim 1 : vector<8x512xf32>, i32 -> vector<8x512xf32>
    %c0_i32_208 = arith.constant 0 : i32
    %513 = vector.broadcast %c0_i32_208 : i32 to vector<1x512xi32>
    %514 = arith.addi %1, %513 : vector<1x512xi32>
    %c0_i32_209 = arith.constant 0 : i32
    %515 = vector.broadcast %c0_i32_209 : i32 to vector<1x512xi32>
    %516 = arith.cmpi sge, %514, %515 : vector<1x512xi32>
    %c0_i32_210 = arith.constant 0 : i32
    %517 = vector.broadcast %c0_i32_210 : i32 to vector<1x512xi32>
    %518 = arith.addi %1, %517 : vector<1x512xi32>
    %c16_i32_211 = arith.constant 16 : i32
    %519 = vector.broadcast %c16_i32_211 : i32 to vector<1x512xi32>
    %520 = arith.cmpi slt, %518, %519 : vector<1x512xi32>
    %521 = arith.andi %516, %520 : vector<1x512xi1>
    %c2_i32_212 = arith.constant 2 : i32
    %522 = vector.broadcast %c2_i32_212 : i32 to vector<1x512xi32>
    %523 = arith.addi %2, %522 : vector<1x512xi32>
    %c0_i32_213 = arith.constant 0 : i32
    %524 = vector.broadcast %c0_i32_213 : i32 to vector<1x512xi32>
    %525 = arith.cmpi sge, %523, %524 : vector<1x512xi32>
    %526 = arith.andi %521, %525 : vector<1x512xi1>
    %c2_i32_214 = arith.constant 2 : i32
    %527 = vector.broadcast %c2_i32_214 : i32 to vector<1x512xi32>
    %528 = arith.addi %2, %527 : vector<1x512xi32>
    %c16_i32_215 = arith.constant 16 : i32
    %529 = vector.broadcast %c16_i32_215 : i32 to vector<1x512xi32>
    %530 = arith.cmpi slt, %528, %529 : vector<1x512xi32>
    %531 = arith.andi %526, %530 : vector<1x512xi1>
    %cst_216 = arith.constant 0.000000e+00 : f32
    %532 = vector.shape_cast %531 : vector<1x512xi1> to vector<1x512xi1>
    %533 = vector.broadcast %532 : vector<1x512xi1> to vector<8x512xi1>
    %534 = vector.broadcast %cst_216 : f32 to vector<8x512xf32>
    %535 = arith.select %533, %512, %534 : vector<8x512xi1>, vector<8x512xf32>
    %c482_i32 = arith.constant 482 : i32
    %536 = tpu.dynamic_rotate %415 by %c482_i32 dim 1 : vector<8x512xf32>, i32 -> vector<8x512xf32>
    %c2_i32_217 = arith.constant 2 : i32
    %537 = vector.broadcast %c2_i32_217 : i32 to vector<1x512xi32>
    %538 = arith.addi %1, %537 : vector<1x512xi32>
    %c0_i32_218 = arith.constant 0 : i32
    %539 = vector.broadcast %c0_i32_218 : i32 to vector<1x512xi32>
    %540 = arith.cmpi sge, %538, %539 : vector<1x512xi32>
    %c2_i32_219 = arith.constant 2 : i32
    %541 = vector.broadcast %c2_i32_219 : i32 to vector<1x512xi32>
    %542 = arith.addi %1, %541 : vector<1x512xi32>
    %c16_i32_220 = arith.constant 16 : i32
    %543 = vector.broadcast %c16_i32_220 : i32 to vector<1x512xi32>
    %544 = arith.cmpi slt, %542, %543 : vector<1x512xi32>
    %545 = arith.andi %540, %544 : vector<1x512xi1>
    %c-2_i32_221 = arith.constant -2 : i32
    %546 = vector.broadcast %c-2_i32_221 : i32 to vector<1x512xi32>
    %547 = arith.addi %2, %546 : vector<1x512xi32>
    %c0_i32_222 = arith.constant 0 : i32
    %548 = vector.broadcast %c0_i32_222 : i32 to vector<1x512xi32>
    %549 = arith.cmpi sge, %547, %548 : vector<1x512xi32>
    %550 = arith.andi %545, %549 : vector<1x512xi1>
    %c-2_i32_223 = arith.constant -2 : i32
    %551 = vector.broadcast %c-2_i32_223 : i32 to vector<1x512xi32>
    %552 = arith.addi %2, %551 : vector<1x512xi32>
    %c16_i32_224 = arith.constant 16 : i32
    %553 = vector.broadcast %c16_i32_224 : i32 to vector<1x512xi32>
    %554 = arith.cmpi slt, %552, %553 : vector<1x512xi32>
    %555 = arith.andi %550, %554 : vector<1x512xi1>
    %cst_225 = arith.constant 0.000000e+00 : f32
    %556 = vector.shape_cast %555 : vector<1x512xi1> to vector<1x512xi1>
    %557 = vector.broadcast %556 : vector<1x512xi1> to vector<8x512xi1>
    %558 = vector.broadcast %cst_225 : f32 to vector<8x512xf32>
    %559 = arith.select %557, %536, %558 : vector<8x512xi1>, vector<8x512xf32>
    %c480_i32 = arith.constant 480 : i32
    %560 = tpu.dynamic_rotate %415 by %c480_i32 dim 1 : vector<8x512xf32>, i32 -> vector<8x512xf32>
    %c2_i32_226 = arith.constant 2 : i32
    %561 = vector.broadcast %c2_i32_226 : i32 to vector<1x512xi32>
    %562 = arith.addi %1, %561 : vector<1x512xi32>
    %c0_i32_227 = arith.constant 0 : i32
    %563 = vector.broadcast %c0_i32_227 : i32 to vector<1x512xi32>
    %564 = arith.cmpi sge, %562, %563 : vector<1x512xi32>
    %c2_i32_228 = arith.constant 2 : i32
    %565 = vector.broadcast %c2_i32_228 : i32 to vector<1x512xi32>
    %566 = arith.addi %1, %565 : vector<1x512xi32>
    %c16_i32_229 = arith.constant 16 : i32
    %567 = vector.broadcast %c16_i32_229 : i32 to vector<1x512xi32>
    %568 = arith.cmpi slt, %566, %567 : vector<1x512xi32>
    %569 = arith.andi %564, %568 : vector<1x512xi1>
    %c0_i32_230 = arith.constant 0 : i32
    %570 = vector.broadcast %c0_i32_230 : i32 to vector<1x512xi32>
    %571 = arith.addi %2, %570 : vector<1x512xi32>
    %c0_i32_231 = arith.constant 0 : i32
    %572 = vector.broadcast %c0_i32_231 : i32 to vector<1x512xi32>
    %573 = arith.cmpi sge, %571, %572 : vector<1x512xi32>
    %574 = arith.andi %569, %573 : vector<1x512xi1>
    %c0_i32_232 = arith.constant 0 : i32
    %575 = vector.broadcast %c0_i32_232 : i32 to vector<1x512xi32>
    %576 = arith.addi %2, %575 : vector<1x512xi32>
    %c16_i32_233 = arith.constant 16 : i32
    %577 = vector.broadcast %c16_i32_233 : i32 to vector<1x512xi32>
    %578 = arith.cmpi slt, %576, %577 : vector<1x512xi32>
    %579 = arith.andi %574, %578 : vector<1x512xi1>
    %cst_234 = arith.constant 0.000000e+00 : f32
    %580 = vector.shape_cast %579 : vector<1x512xi1> to vector<1x512xi1>
    %581 = vector.broadcast %580 : vector<1x512xi1> to vector<8x512xi1>
    %582 = vector.broadcast %cst_234 : f32 to vector<8x512xf32>
    %583 = arith.select %581, %560, %582 : vector<8x512xi1>, vector<8x512xf32>
    %c478_i32 = arith.constant 478 : i32
    %584 = tpu.dynamic_rotate %415 by %c478_i32 dim 1 : vector<8x512xf32>, i32 -> vector<8x512xf32>
    %c2_i32_235 = arith.constant 2 : i32
    %585 = vector.broadcast %c2_i32_235 : i32 to vector<1x512xi32>
    %586 = arith.addi %1, %585 : vector<1x512xi32>
    %c0_i32_236 = arith.constant 0 : i32
    %587 = vector.broadcast %c0_i32_236 : i32 to vector<1x512xi32>
    %588 = arith.cmpi sge, %586, %587 : vector<1x512xi32>
    %c2_i32_237 = arith.constant 2 : i32
    %589 = vector.broadcast %c2_i32_237 : i32 to vector<1x512xi32>
    %590 = arith.addi %1, %589 : vector<1x512xi32>
    %c16_i32_238 = arith.constant 16 : i32
    %591 = vector.broadcast %c16_i32_238 : i32 to vector<1x512xi32>
    %592 = arith.cmpi slt, %590, %591 : vector<1x512xi32>
    %593 = arith.andi %588, %592 : vector<1x512xi1>
    %c2_i32_239 = arith.constant 2 : i32
    %594 = vector.broadcast %c2_i32_239 : i32 to vector<1x512xi32>
    %595 = arith.addi %2, %594 : vector<1x512xi32>
    %c0_i32_240 = arith.constant 0 : i32
    %596 = vector.broadcast %c0_i32_240 : i32 to vector<1x512xi32>
    %597 = arith.cmpi sge, %595, %596 : vector<1x512xi32>
    %598 = arith.andi %593, %597 : vector<1x512xi1>
    %c2_i32_241 = arith.constant 2 : i32
    %599 = vector.broadcast %c2_i32_241 : i32 to vector<1x512xi32>
    %600 = arith.addi %2, %599 : vector<1x512xi32>
    %c16_i32_242 = arith.constant 16 : i32
    %601 = vector.broadcast %c16_i32_242 : i32 to vector<1x512xi32>
    %602 = arith.cmpi slt, %600, %601 : vector<1x512xi32>
    %603 = arith.andi %598, %602 : vector<1x512xi1>
    %cst_243 = arith.constant 0.000000e+00 : f32
    %604 = vector.shape_cast %603 : vector<1x512xi1> to vector<1x512xi1>
    %605 = vector.broadcast %604 : vector<1x512xi1> to vector<8x512xi1>
    %606 = vector.broadcast %cst_243 : f32 to vector<8x512xf32>
    %607 = arith.select %605, %584, %606 : vector<8x512xi1>, vector<8x512xf32>
    %608 = tpu.concatenate %439, %463, %487, %511, %415, %535, %559, %583, %607 in 0 : vector<8x512xf32>, vector<8x512xf32>, vector<8x512xf32>, vector<8x512xf32>, vector<8x512xf32>, vector<8x512xf32>, vector<8x512xf32>, vector<8x512xf32>, vector<8x512xf32> -> vector<72x512xf32>
    %c0_244 = arith.constant 0 : index
    %c0_245 = arith.constant 0 : index
    %609 = vector.load %arg10[%c0_244, %c0_245] : memref<8x72xf32, #tpu.memory_space<vmem>>, vector<8x72xf32>
    %cst_246 = arith.constant dense<0.000000e+00> : vector<8x512xf32>
    %610 = tpu.matmul %609, %608, %cst_246 {dimension_numbers = #tpu.dot_dimension_numbers<[1], [0], [0], [1], [0, 0, 1, 1], [], []>} : vector<8x72xf32>, vector<72x512xf32>, vector<8x512xf32> -> vector<8x512xf32>
    %c0_247 = arith.constant 0 : index
    %c0_248 = arith.constant 0 : index
    %611 = vector.load %arg11[%c0_247, %c0_248] : memref<8x1xf32, #tpu.memory_space<vmem>>, vector<8x1xf32>
    %612 = vector.broadcast %611 : vector<8x1xf32> to vector<8x512xf32>
    %613 = arith.addf %610, %612 : vector<8x512xf32>
    %c17_i32_249 = arith.constant 17 : i32
    %614 = tpu.dynamic_rotate %16 by %c17_i32_249 dim 1 : vector<8x512xf32>, i32 -> vector<8x512xf32>
    %c-1_i32_250 = arith.constant -1 : i32
    %615 = vector.broadcast %c-1_i32_250 : i32 to vector<1x512xi32>
    %616 = arith.addi %1, %615 : vector<1x512xi32>
    %c0_i32_251 = arith.constant 0 : i32
    %617 = vector.broadcast %c0_i32_251 : i32 to vector<1x512xi32>
    %618 = arith.cmpi sge, %616, %617 : vector<1x512xi32>
    %c-1_i32_252 = arith.constant -1 : i32
    %619 = vector.broadcast %c-1_i32_252 : i32 to vector<1x512xi32>
    %620 = arith.addi %1, %619 : vector<1x512xi32>
    %c16_i32_253 = arith.constant 16 : i32
    %621 = vector.broadcast %c16_i32_253 : i32 to vector<1x512xi32>
    %622 = arith.cmpi slt, %620, %621 : vector<1x512xi32>
    %623 = arith.andi %618, %622 : vector<1x512xi1>
    %c-1_i32_254 = arith.constant -1 : i32
    %624 = vector.broadcast %c-1_i32_254 : i32 to vector<1x512xi32>
    %625 = arith.addi %2, %624 : vector<1x512xi32>
    %c0_i32_255 = arith.constant 0 : i32
    %626 = vector.broadcast %c0_i32_255 : i32 to vector<1x512xi32>
    %627 = arith.cmpi sge, %625, %626 : vector<1x512xi32>
    %628 = arith.andi %623, %627 : vector<1x512xi1>
    %c-1_i32_256 = arith.constant -1 : i32
    %629 = vector.broadcast %c-1_i32_256 : i32 to vector<1x512xi32>
    %630 = arith.addi %2, %629 : vector<1x512xi32>
    %c16_i32_257 = arith.constant 16 : i32
    %631 = vector.broadcast %c16_i32_257 : i32 to vector<1x512xi32>
    %632 = arith.cmpi slt, %630, %631 : vector<1x512xi32>
    %633 = arith.andi %628, %632 : vector<1x512xi1>
    %cst_258 = arith.constant 0.000000e+00 : f32
    %634 = vector.shape_cast %633 : vector<1x512xi1> to vector<1x512xi1>
    %635 = vector.broadcast %634 : vector<1x512xi1> to vector<8x512xi1>
    %636 = vector.broadcast %cst_258 : f32 to vector<8x512xf32>
    %637 = arith.select %635, %614, %636 : vector<8x512xi1>, vector<8x512xf32>
    %c16_i32_259 = arith.constant 16 : i32
    %638 = tpu.dynamic_rotate %16 by %c16_i32_259 dim 1 : vector<8x512xf32>, i32 -> vector<8x512xf32>
    %c-1_i32_260 = arith.constant -1 : i32
    %639 = vector.broadcast %c-1_i32_260 : i32 to vector<1x512xi32>
    %640 = arith.addi %1, %639 : vector<1x512xi32>
    %c0_i32_261 = arith.constant 0 : i32
    %641 = vector.broadcast %c0_i32_261 : i32 to vector<1x512xi32>
    %642 = arith.cmpi sge, %640, %641 : vector<1x512xi32>
    %c-1_i32_262 = arith.constant -1 : i32
    %643 = vector.broadcast %c-1_i32_262 : i32 to vector<1x512xi32>
    %644 = arith.addi %1, %643 : vector<1x512xi32>
    %c16_i32_263 = arith.constant 16 : i32
    %645 = vector.broadcast %c16_i32_263 : i32 to vector<1x512xi32>
    %646 = arith.cmpi slt, %644, %645 : vector<1x512xi32>
    %647 = arith.andi %642, %646 : vector<1x512xi1>
    %c0_i32_264 = arith.constant 0 : i32
    %648 = vector.broadcast %c0_i32_264 : i32 to vector<1x512xi32>
    %649 = arith.addi %2, %648 : vector<1x512xi32>
    %c0_i32_265 = arith.constant 0 : i32
    %650 = vector.broadcast %c0_i32_265 : i32 to vector<1x512xi32>
    %651 = arith.cmpi sge, %649, %650 : vector<1x512xi32>
    %652 = arith.andi %647, %651 : vector<1x512xi1>
    %c0_i32_266 = arith.constant 0 : i32
    %653 = vector.broadcast %c0_i32_266 : i32 to vector<1x512xi32>
    %654 = arith.addi %2, %653 : vector<1x512xi32>
    %c16_i32_267 = arith.constant 16 : i32
    %655 = vector.broadcast %c16_i32_267 : i32 to vector<1x512xi32>
    %656 = arith.cmpi slt, %654, %655 : vector<1x512xi32>
    %657 = arith.andi %652, %656 : vector<1x512xi1>
    %cst_268 = arith.constant 0.000000e+00 : f32
    %658 = vector.shape_cast %657 : vector<1x512xi1> to vector<1x512xi1>
    %659 = vector.broadcast %658 : vector<1x512xi1> to vector<8x512xi1>
    %660 = vector.broadcast %cst_268 : f32 to vector<8x512xf32>
    %661 = arith.select %659, %638, %660 : vector<8x512xi1>, vector<8x512xf32>
    %c15_i32_269 = arith.constant 15 : i32
    %662 = tpu.dynamic_rotate %16 by %c15_i32_269 dim 1 : vector<8x512xf32>, i32 -> vector<8x512xf32>
    %c-1_i32_270 = arith.constant -1 : i32
    %663 = vector.broadcast %c-1_i32_270 : i32 to vector<1x512xi32>
    %664 = arith.addi %1, %663 : vector<1x512xi32>
    %c0_i32_271 = arith.constant 0 : i32
    %665 = vector.broadcast %c0_i32_271 : i32 to vector<1x512xi32>
    %666 = arith.cmpi sge, %664, %665 : vector<1x512xi32>
    %c-1_i32_272 = arith.constant -1 : i32
    %667 = vector.broadcast %c-1_i32_272 : i32 to vector<1x512xi32>
    %668 = arith.addi %1, %667 : vector<1x512xi32>
    %c16_i32_273 = arith.constant 16 : i32
    %669 = vector.broadcast %c16_i32_273 : i32 to vector<1x512xi32>
    %670 = arith.cmpi slt, %668, %669 : vector<1x512xi32>
    %671 = arith.andi %666, %670 : vector<1x512xi1>
    %c1_i32_274 = arith.constant 1 : i32
    %672 = vector.broadcast %c1_i32_274 : i32 to vector<1x512xi32>
    %673 = arith.addi %2, %672 : vector<1x512xi32>
    %c0_i32_275 = arith.constant 0 : i32
    %674 = vector.broadcast %c0_i32_275 : i32 to vector<1x512xi32>
    %675 = arith.cmpi sge, %673, %674 : vector<1x512xi32>
    %676 = arith.andi %671, %675 : vector<1x512xi1>
    %c1_i32_276 = arith.constant 1 : i32
    %677 = vector.broadcast %c1_i32_276 : i32 to vector<1x512xi32>
    %678 = arith.addi %2, %677 : vector<1x512xi32>
    %c16_i32_277 = arith.constant 16 : i32
    %679 = vector.broadcast %c16_i32_277 : i32 to vector<1x512xi32>
    %680 = arith.cmpi slt, %678, %679 : vector<1x512xi32>
    %681 = arith.andi %676, %680 : vector<1x512xi1>
    %cst_278 = arith.constant 0.000000e+00 : f32
    %682 = vector.shape_cast %681 : vector<1x512xi1> to vector<1x512xi1>
    %683 = vector.broadcast %682 : vector<1x512xi1> to vector<8x512xi1>
    %684 = vector.broadcast %cst_278 : f32 to vector<8x512xf32>
    %685 = arith.select %683, %662, %684 : vector<8x512xi1>, vector<8x512xf32>
    %c1_i32_279 = arith.constant 1 : i32
    %686 = tpu.dynamic_rotate %16 by %c1_i32_279 dim 1 : vector<8x512xf32>, i32 -> vector<8x512xf32>
    %c0_i32_280 = arith.constant 0 : i32
    %687 = vector.broadcast %c0_i32_280 : i32 to vector<1x512xi32>
    %688 = arith.addi %1, %687 : vector<1x512xi32>
    %c0_i32_281 = arith.constant 0 : i32
    %689 = vector.broadcast %c0_i32_281 : i32 to vector<1x512xi32>
    %690 = arith.cmpi sge, %688, %689 : vector<1x512xi32>
    %c0_i32_282 = arith.constant 0 : i32
    %691 = vector.broadcast %c0_i32_282 : i32 to vector<1x512xi32>
    %692 = arith.addi %1, %691 : vector<1x512xi32>
    %c16_i32_283 = arith.constant 16 : i32
    %693 = vector.broadcast %c16_i32_283 : i32 to vector<1x512xi32>
    %694 = arith.cmpi slt, %692, %693 : vector<1x512xi32>
    %695 = arith.andi %690, %694 : vector<1x512xi1>
    %c-1_i32_284 = arith.constant -1 : i32
    %696 = vector.broadcast %c-1_i32_284 : i32 to vector<1x512xi32>
    %697 = arith.addi %2, %696 : vector<1x512xi32>
    %c0_i32_285 = arith.constant 0 : i32
    %698 = vector.broadcast %c0_i32_285 : i32 to vector<1x512xi32>
    %699 = arith.cmpi sge, %697, %698 : vector<1x512xi32>
    %700 = arith.andi %695, %699 : vector<1x512xi1>
    %c-1_i32_286 = arith.constant -1 : i32
    %701 = vector.broadcast %c-1_i32_286 : i32 to vector<1x512xi32>
    %702 = arith.addi %2, %701 : vector<1x512xi32>
    %c16_i32_287 = arith.constant 16 : i32
    %703 = vector.broadcast %c16_i32_287 : i32 to vector<1x512xi32>
    %704 = arith.cmpi slt, %702, %703 : vector<1x512xi32>
    %705 = arith.andi %700, %704 : vector<1x512xi1>
    %cst_288 = arith.constant 0.000000e+00 : f32
    %706 = vector.shape_cast %705 : vector<1x512xi1> to vector<1x512xi1>
    %707 = vector.broadcast %706 : vector<1x512xi1> to vector<8x512xi1>
    %708 = vector.broadcast %cst_288 : f32 to vector<8x512xf32>
    %709 = arith.select %707, %686, %708 : vector<8x512xi1>, vector<8x512xf32>
    %c511_i32_289 = arith.constant 511 : i32
    %710 = tpu.dynamic_rotate %16 by %c511_i32_289 dim 1 : vector<8x512xf32>, i32 -> vector<8x512xf32>
    %c0_i32_290 = arith.constant 0 : i32
    %711 = vector.broadcast %c0_i32_290 : i32 to vector<1x512xi32>
    %712 = arith.addi %1, %711 : vector<1x512xi32>
    %c0_i32_291 = arith.constant 0 : i32
    %713 = vector.broadcast %c0_i32_291 : i32 to vector<1x512xi32>
    %714 = arith.cmpi sge, %712, %713 : vector<1x512xi32>
    %c0_i32_292 = arith.constant 0 : i32
    %715 = vector.broadcast %c0_i32_292 : i32 to vector<1x512xi32>
    %716 = arith.addi %1, %715 : vector<1x512xi32>
    %c16_i32_293 = arith.constant 16 : i32
    %717 = vector.broadcast %c16_i32_293 : i32 to vector<1x512xi32>
    %718 = arith.cmpi slt, %716, %717 : vector<1x512xi32>
    %719 = arith.andi %714, %718 : vector<1x512xi1>
    %c1_i32_294 = arith.constant 1 : i32
    %720 = vector.broadcast %c1_i32_294 : i32 to vector<1x512xi32>
    %721 = arith.addi %2, %720 : vector<1x512xi32>
    %c0_i32_295 = arith.constant 0 : i32
    %722 = vector.broadcast %c0_i32_295 : i32 to vector<1x512xi32>
    %723 = arith.cmpi sge, %721, %722 : vector<1x512xi32>
    %724 = arith.andi %719, %723 : vector<1x512xi1>
    %c1_i32_296 = arith.constant 1 : i32
    %725 = vector.broadcast %c1_i32_296 : i32 to vector<1x512xi32>
    %726 = arith.addi %2, %725 : vector<1x512xi32>
    %c16_i32_297 = arith.constant 16 : i32
    %727 = vector.broadcast %c16_i32_297 : i32 to vector<1x512xi32>
    %728 = arith.cmpi slt, %726, %727 : vector<1x512xi32>
    %729 = arith.andi %724, %728 : vector<1x512xi1>
    %cst_298 = arith.constant 0.000000e+00 : f32
    %730 = vector.shape_cast %729 : vector<1x512xi1> to vector<1x512xi1>
    %731 = vector.broadcast %730 : vector<1x512xi1> to vector<8x512xi1>
    %732 = vector.broadcast %cst_298 : f32 to vector<8x512xf32>
    %733 = arith.select %731, %710, %732 : vector<8x512xi1>, vector<8x512xf32>
    %c497_i32_299 = arith.constant 497 : i32
    %734 = tpu.dynamic_rotate %16 by %c497_i32_299 dim 1 : vector<8x512xf32>, i32 -> vector<8x512xf32>
    %c1_i32_300 = arith.constant 1 : i32
    %735 = vector.broadcast %c1_i32_300 : i32 to vector<1x512xi32>
    %736 = arith.addi %1, %735 : vector<1x512xi32>
    %c0_i32_301 = arith.constant 0 : i32
    %737 = vector.broadcast %c0_i32_301 : i32 to vector<1x512xi32>
    %738 = arith.cmpi sge, %736, %737 : vector<1x512xi32>
    %c1_i32_302 = arith.constant 1 : i32
    %739 = vector.broadcast %c1_i32_302 : i32 to vector<1x512xi32>
    %740 = arith.addi %1, %739 : vector<1x512xi32>
    %c16_i32_303 = arith.constant 16 : i32
    %741 = vector.broadcast %c16_i32_303 : i32 to vector<1x512xi32>
    %742 = arith.cmpi slt, %740, %741 : vector<1x512xi32>
    %743 = arith.andi %738, %742 : vector<1x512xi1>
    %c-1_i32_304 = arith.constant -1 : i32
    %744 = vector.broadcast %c-1_i32_304 : i32 to vector<1x512xi32>
    %745 = arith.addi %2, %744 : vector<1x512xi32>
    %c0_i32_305 = arith.constant 0 : i32
    %746 = vector.broadcast %c0_i32_305 : i32 to vector<1x512xi32>
    %747 = arith.cmpi sge, %745, %746 : vector<1x512xi32>
    %748 = arith.andi %743, %747 : vector<1x512xi1>
    %c-1_i32_306 = arith.constant -1 : i32
    %749 = vector.broadcast %c-1_i32_306 : i32 to vector<1x512xi32>
    %750 = arith.addi %2, %749 : vector<1x512xi32>
    %c16_i32_307 = arith.constant 16 : i32
    %751 = vector.broadcast %c16_i32_307 : i32 to vector<1x512xi32>
    %752 = arith.cmpi slt, %750, %751 : vector<1x512xi32>
    %753 = arith.andi %748, %752 : vector<1x512xi1>
    %cst_308 = arith.constant 0.000000e+00 : f32
    %754 = vector.shape_cast %753 : vector<1x512xi1> to vector<1x512xi1>
    %755 = vector.broadcast %754 : vector<1x512xi1> to vector<8x512xi1>
    %756 = vector.broadcast %cst_308 : f32 to vector<8x512xf32>
    %757 = arith.select %755, %734, %756 : vector<8x512xi1>, vector<8x512xf32>
    %c496_i32_309 = arith.constant 496 : i32
    %758 = tpu.dynamic_rotate %16 by %c496_i32_309 dim 1 : vector<8x512xf32>, i32 -> vector<8x512xf32>
    %c1_i32_310 = arith.constant 1 : i32
    %759 = vector.broadcast %c1_i32_310 : i32 to vector<1x512xi32>
    %760 = arith.addi %1, %759 : vector<1x512xi32>
    %c0_i32_311 = arith.constant 0 : i32
    %761 = vector.broadcast %c0_i32_311 : i32 to vector<1x512xi32>
    %762 = arith.cmpi sge, %760, %761 : vector<1x512xi32>
    %c1_i32_312 = arith.constant 1 : i32
    %763 = vector.broadcast %c1_i32_312 : i32 to vector<1x512xi32>
    %764 = arith.addi %1, %763 : vector<1x512xi32>
    %c16_i32_313 = arith.constant 16 : i32
    %765 = vector.broadcast %c16_i32_313 : i32 to vector<1x512xi32>
    %766 = arith.cmpi slt, %764, %765 : vector<1x512xi32>
    %767 = arith.andi %762, %766 : vector<1x512xi1>
    %c0_i32_314 = arith.constant 0 : i32
    %768 = vector.broadcast %c0_i32_314 : i32 to vector<1x512xi32>
    %769 = arith.addi %2, %768 : vector<1x512xi32>
    %c0_i32_315 = arith.constant 0 : i32
    %770 = vector.broadcast %c0_i32_315 : i32 to vector<1x512xi32>
    %771 = arith.cmpi sge, %769, %770 : vector<1x512xi32>
    %772 = arith.andi %767, %771 : vector<1x512xi1>
    %c0_i32_316 = arith.constant 0 : i32
    %773 = vector.broadcast %c0_i32_316 : i32 to vector<1x512xi32>
    %774 = arith.addi %2, %773 : vector<1x512xi32>
    %c16_i32_317 = arith.constant 16 : i32
    %775 = vector.broadcast %c16_i32_317 : i32 to vector<1x512xi32>
    %776 = arith.cmpi slt, %774, %775 : vector<1x512xi32>
    %777 = arith.andi %772, %776 : vector<1x512xi1>
    %cst_318 = arith.constant 0.000000e+00 : f32
    %778 = vector.shape_cast %777 : vector<1x512xi1> to vector<1x512xi1>
    %779 = vector.broadcast %778 : vector<1x512xi1> to vector<8x512xi1>
    %780 = vector.broadcast %cst_318 : f32 to vector<8x512xf32>
    %781 = arith.select %779, %758, %780 : vector<8x512xi1>, vector<8x512xf32>
    %c495_i32_319 = arith.constant 495 : i32
    %782 = tpu.dynamic_rotate %16 by %c495_i32_319 dim 1 : vector<8x512xf32>, i32 -> vector<8x512xf32>
    %c1_i32_320 = arith.constant 1 : i32
    %783 = vector.broadcast %c1_i32_320 : i32 to vector<1x512xi32>
    %784 = arith.addi %1, %783 : vector<1x512xi32>
    %c0_i32_321 = arith.constant 0 : i32
    %785 = vector.broadcast %c0_i32_321 : i32 to vector<1x512xi32>
    %786 = arith.cmpi sge, %784, %785 : vector<1x512xi32>
    %c1_i32_322 = arith.constant 1 : i32
    %787 = vector.broadcast %c1_i32_322 : i32 to vector<1x512xi32>
    %788 = arith.addi %1, %787 : vector<1x512xi32>
    %c16_i32_323 = arith.constant 16 : i32
    %789 = vector.broadcast %c16_i32_323 : i32 to vector<1x512xi32>
    %790 = arith.cmpi slt, %788, %789 : vector<1x512xi32>
    %791 = arith.andi %786, %790 : vector<1x512xi1>
    %c1_i32_324 = arith.constant 1 : i32
    %792 = vector.broadcast %c1_i32_324 : i32 to vector<1x512xi32>
    %793 = arith.addi %2, %792 : vector<1x512xi32>
    %c0_i32_325 = arith.constant 0 : i32
    %794 = vector.broadcast %c0_i32_325 : i32 to vector<1x512xi32>
    %795 = arith.cmpi sge, %793, %794 : vector<1x512xi32>
    %796 = arith.andi %791, %795 : vector<1x512xi1>
    %c1_i32_326 = arith.constant 1 : i32
    %797 = vector.broadcast %c1_i32_326 : i32 to vector<1x512xi32>
    %798 = arith.addi %2, %797 : vector<1x512xi32>
    %c16_i32_327 = arith.constant 16 : i32
    %799 = vector.broadcast %c16_i32_327 : i32 to vector<1x512xi32>
    %800 = arith.cmpi slt, %798, %799 : vector<1x512xi32>
    %801 = arith.andi %796, %800 : vector<1x512xi1>
    %cst_328 = arith.constant 0.000000e+00 : f32
    %802 = vector.shape_cast %801 : vector<1x512xi1> to vector<1x512xi1>
    %803 = vector.broadcast %802 : vector<1x512xi1> to vector<8x512xi1>
    %804 = vector.broadcast %cst_328 : f32 to vector<8x512xf32>
    %805 = arith.select %803, %782, %804 : vector<8x512xi1>, vector<8x512xf32>
    %806 = tpu.concatenate %637, %661, %685, %709, %16, %733, %757, %781, %805 in 0 : vector<8x512xf32>, vector<8x512xf32>, vector<8x512xf32>, vector<8x512xf32>, vector<8x512xf32>, vector<8x512xf32>, vector<8x512xf32>, vector<8x512xf32>, vector<8x512xf32> -> vector<72x512xf32>
    %c0_329 = arith.constant 0 : index
    %c0_330 = arith.constant 0 : index
    %807 = vector.load %arg12[%c0_329, %c0_330] : memref<8x72xf32, #tpu.memory_space<vmem>>, vector<8x72xf32>
    %cst_331 = arith.constant dense<0.000000e+00> : vector<8x512xf32>
    %808 = tpu.matmul %807, %806, %cst_331 {dimension_numbers = #tpu.dot_dimension_numbers<[1], [0], [0], [1], [0, 0, 1, 1], [], []>} : vector<8x72xf32>, vector<72x512xf32>, vector<8x512xf32> -> vector<8x512xf32>
    %c0_332 = arith.constant 0 : index
    %c0_333 = arith.constant 0 : index
    %809 = vector.load %arg13[%c0_332, %c0_333] : memref<8x1xf32, #tpu.memory_space<vmem>>, vector<8x1xf32>
    %810 = vector.broadcast %809 : vector<8x1xf32> to vector<8x512xf32>
    %811 = arith.addf %808, %810 : vector<8x512xf32>
    %cst_334 = arith.constant 0.000000e+00 : f32
    %812 = vector.broadcast %cst_334 : f32 to vector<8x512xf32>
    %813 = arith.maximumf %811, %812 : vector<8x512xf32>
    %c17_i32_335 = arith.constant 17 : i32
    %814 = tpu.dynamic_rotate %813 by %c17_i32_335 dim 1 : vector<8x512xf32>, i32 -> vector<8x512xf32>
    %c-1_i32_336 = arith.constant -1 : i32
    %815 = vector.broadcast %c-1_i32_336 : i32 to vector<1x512xi32>
    %816 = arith.addi %1, %815 : vector<1x512xi32>
    %c0_i32_337 = arith.constant 0 : i32
    %817 = vector.broadcast %c0_i32_337 : i32 to vector<1x512xi32>
    %818 = arith.cmpi sge, %816, %817 : vector<1x512xi32>
    %c-1_i32_338 = arith.constant -1 : i32
    %819 = vector.broadcast %c-1_i32_338 : i32 to vector<1x512xi32>
    %820 = arith.addi %1, %819 : vector<1x512xi32>
    %c16_i32_339 = arith.constant 16 : i32
    %821 = vector.broadcast %c16_i32_339 : i32 to vector<1x512xi32>
    %822 = arith.cmpi slt, %820, %821 : vector<1x512xi32>
    %823 = arith.andi %818, %822 : vector<1x512xi1>
    %c-1_i32_340 = arith.constant -1 : i32
    %824 = vector.broadcast %c-1_i32_340 : i32 to vector<1x512xi32>
    %825 = arith.addi %2, %824 : vector<1x512xi32>
    %c0_i32_341 = arith.constant 0 : i32
    %826 = vector.broadcast %c0_i32_341 : i32 to vector<1x512xi32>
    %827 = arith.cmpi sge, %825, %826 : vector<1x512xi32>
    %828 = arith.andi %823, %827 : vector<1x512xi1>
    %c-1_i32_342 = arith.constant -1 : i32
    %829 = vector.broadcast %c-1_i32_342 : i32 to vector<1x512xi32>
    %830 = arith.addi %2, %829 : vector<1x512xi32>
    %c16_i32_343 = arith.constant 16 : i32
    %831 = vector.broadcast %c16_i32_343 : i32 to vector<1x512xi32>
    %832 = arith.cmpi slt, %830, %831 : vector<1x512xi32>
    %833 = arith.andi %828, %832 : vector<1x512xi1>
    %cst_344 = arith.constant 0.000000e+00 : f32
    %834 = vector.shape_cast %833 : vector<1x512xi1> to vector<1x512xi1>
    %835 = vector.broadcast %834 : vector<1x512xi1> to vector<8x512xi1>
    %836 = vector.broadcast %cst_344 : f32 to vector<8x512xf32>
    %837 = arith.select %835, %814, %836 : vector<8x512xi1>, vector<8x512xf32>
    %c16_i32_345 = arith.constant 16 : i32
    %838 = tpu.dynamic_rotate %813 by %c16_i32_345 dim 1 : vector<8x512xf32>, i32 -> vector<8x512xf32>
    %c-1_i32_346 = arith.constant -1 : i32
    %839 = vector.broadcast %c-1_i32_346 : i32 to vector<1x512xi32>
    %840 = arith.addi %1, %839 : vector<1x512xi32>
    %c0_i32_347 = arith.constant 0 : i32
    %841 = vector.broadcast %c0_i32_347 : i32 to vector<1x512xi32>
    %842 = arith.cmpi sge, %840, %841 : vector<1x512xi32>
    %c-1_i32_348 = arith.constant -1 : i32
    %843 = vector.broadcast %c-1_i32_348 : i32 to vector<1x512xi32>
    %844 = arith.addi %1, %843 : vector<1x512xi32>
    %c16_i32_349 = arith.constant 16 : i32
    %845 = vector.broadcast %c16_i32_349 : i32 to vector<1x512xi32>
    %846 = arith.cmpi slt, %844, %845 : vector<1x512xi32>
    %847 = arith.andi %842, %846 : vector<1x512xi1>
    %c0_i32_350 = arith.constant 0 : i32
    %848 = vector.broadcast %c0_i32_350 : i32 to vector<1x512xi32>
    %849 = arith.addi %2, %848 : vector<1x512xi32>
    %c0_i32_351 = arith.constant 0 : i32
    %850 = vector.broadcast %c0_i32_351 : i32 to vector<1x512xi32>
    %851 = arith.cmpi sge, %849, %850 : vector<1x512xi32>
    %852 = arith.andi %847, %851 : vector<1x512xi1>
    %c0_i32_352 = arith.constant 0 : i32
    %853 = vector.broadcast %c0_i32_352 : i32 to vector<1x512xi32>
    %854 = arith.addi %2, %853 : vector<1x512xi32>
    %c16_i32_353 = arith.constant 16 : i32
    %855 = vector.broadcast %c16_i32_353 : i32 to vector<1x512xi32>
    %856 = arith.cmpi slt, %854, %855 : vector<1x512xi32>
    %857 = arith.andi %852, %856 : vector<1x512xi1>
    %cst_354 = arith.constant 0.000000e+00 : f32
    %858 = vector.shape_cast %857 : vector<1x512xi1> to vector<1x512xi1>
    %859 = vector.broadcast %858 : vector<1x512xi1> to vector<8x512xi1>
    %860 = vector.broadcast %cst_354 : f32 to vector<8x512xf32>
    %861 = arith.select %859, %838, %860 : vector<8x512xi1>, vector<8x512xf32>
    %c15_i32_355 = arith.constant 15 : i32
    %862 = tpu.dynamic_rotate %813 by %c15_i32_355 dim 1 : vector<8x512xf32>, i32 -> vector<8x512xf32>
    %c-1_i32_356 = arith.constant -1 : i32
    %863 = vector.broadcast %c-1_i32_356 : i32 to vector<1x512xi32>
    %864 = arith.addi %1, %863 : vector<1x512xi32>
    %c0_i32_357 = arith.constant 0 : i32
    %865 = vector.broadcast %c0_i32_357 : i32 to vector<1x512xi32>
    %866 = arith.cmpi sge, %864, %865 : vector<1x512xi32>
    %c-1_i32_358 = arith.constant -1 : i32
    %867 = vector.broadcast %c-1_i32_358 : i32 to vector<1x512xi32>
    %868 = arith.addi %1, %867 : vector<1x512xi32>
    %c16_i32_359 = arith.constant 16 : i32
    %869 = vector.broadcast %c16_i32_359 : i32 to vector<1x512xi32>
    %870 = arith.cmpi slt, %868, %869 : vector<1x512xi32>
    %871 = arith.andi %866, %870 : vector<1x512xi1>
    %c1_i32_360 = arith.constant 1 : i32
    %872 = vector.broadcast %c1_i32_360 : i32 to vector<1x512xi32>
    %873 = arith.addi %2, %872 : vector<1x512xi32>
    %c0_i32_361 = arith.constant 0 : i32
    %874 = vector.broadcast %c0_i32_361 : i32 to vector<1x512xi32>
    %875 = arith.cmpi sge, %873, %874 : vector<1x512xi32>
    %876 = arith.andi %871, %875 : vector<1x512xi1>
    %c1_i32_362 = arith.constant 1 : i32
    %877 = vector.broadcast %c1_i32_362 : i32 to vector<1x512xi32>
    %878 = arith.addi %2, %877 : vector<1x512xi32>
    %c16_i32_363 = arith.constant 16 : i32
    %879 = vector.broadcast %c16_i32_363 : i32 to vector<1x512xi32>
    %880 = arith.cmpi slt, %878, %879 : vector<1x512xi32>
    %881 = arith.andi %876, %880 : vector<1x512xi1>
    %cst_364 = arith.constant 0.000000e+00 : f32
    %882 = vector.shape_cast %881 : vector<1x512xi1> to vector<1x512xi1>
    %883 = vector.broadcast %882 : vector<1x512xi1> to vector<8x512xi1>
    %884 = vector.broadcast %cst_364 : f32 to vector<8x512xf32>
    %885 = arith.select %883, %862, %884 : vector<8x512xi1>, vector<8x512xf32>
    %c1_i32_365 = arith.constant 1 : i32
    %886 = tpu.dynamic_rotate %813 by %c1_i32_365 dim 1 : vector<8x512xf32>, i32 -> vector<8x512xf32>
    %c0_i32_366 = arith.constant 0 : i32
    %887 = vector.broadcast %c0_i32_366 : i32 to vector<1x512xi32>
    %888 = arith.addi %1, %887 : vector<1x512xi32>
    %c0_i32_367 = arith.constant 0 : i32
    %889 = vector.broadcast %c0_i32_367 : i32 to vector<1x512xi32>
    %890 = arith.cmpi sge, %888, %889 : vector<1x512xi32>
    %c0_i32_368 = arith.constant 0 : i32
    %891 = vector.broadcast %c0_i32_368 : i32 to vector<1x512xi32>
    %892 = arith.addi %1, %891 : vector<1x512xi32>
    %c16_i32_369 = arith.constant 16 : i32
    %893 = vector.broadcast %c16_i32_369 : i32 to vector<1x512xi32>
    %894 = arith.cmpi slt, %892, %893 : vector<1x512xi32>
    %895 = arith.andi %890, %894 : vector<1x512xi1>
    %c-1_i32_370 = arith.constant -1 : i32
    %896 = vector.broadcast %c-1_i32_370 : i32 to vector<1x512xi32>
    %897 = arith.addi %2, %896 : vector<1x512xi32>
    %c0_i32_371 = arith.constant 0 : i32
    %898 = vector.broadcast %c0_i32_371 : i32 to vector<1x512xi32>
    %899 = arith.cmpi sge, %897, %898 : vector<1x512xi32>
    %900 = arith.andi %895, %899 : vector<1x512xi1>
    %c-1_i32_372 = arith.constant -1 : i32
    %901 = vector.broadcast %c-1_i32_372 : i32 to vector<1x512xi32>
    %902 = arith.addi %2, %901 : vector<1x512xi32>
    %c16_i32_373 = arith.constant 16 : i32
    %903 = vector.broadcast %c16_i32_373 : i32 to vector<1x512xi32>
    %904 = arith.cmpi slt, %902, %903 : vector<1x512xi32>
    %905 = arith.andi %900, %904 : vector<1x512xi1>
    %cst_374 = arith.constant 0.000000e+00 : f32
    %906 = vector.shape_cast %905 : vector<1x512xi1> to vector<1x512xi1>
    %907 = vector.broadcast %906 : vector<1x512xi1> to vector<8x512xi1>
    %908 = vector.broadcast %cst_374 : f32 to vector<8x512xf32>
    %909 = arith.select %907, %886, %908 : vector<8x512xi1>, vector<8x512xf32>
    %c511_i32_375 = arith.constant 511 : i32
    %910 = tpu.dynamic_rotate %813 by %c511_i32_375 dim 1 : vector<8x512xf32>, i32 -> vector<8x512xf32>
    %c0_i32_376 = arith.constant 0 : i32
    %911 = vector.broadcast %c0_i32_376 : i32 to vector<1x512xi32>
    %912 = arith.addi %1, %911 : vector<1x512xi32>
    %c0_i32_377 = arith.constant 0 : i32
    %913 = vector.broadcast %c0_i32_377 : i32 to vector<1x512xi32>
    %914 = arith.cmpi sge, %912, %913 : vector<1x512xi32>
    %c0_i32_378 = arith.constant 0 : i32
    %915 = vector.broadcast %c0_i32_378 : i32 to vector<1x512xi32>
    %916 = arith.addi %1, %915 : vector<1x512xi32>
    %c16_i32_379 = arith.constant 16 : i32
    %917 = vector.broadcast %c16_i32_379 : i32 to vector<1x512xi32>
    %918 = arith.cmpi slt, %916, %917 : vector<1x512xi32>
    %919 = arith.andi %914, %918 : vector<1x512xi1>
    %c1_i32_380 = arith.constant 1 : i32
    %920 = vector.broadcast %c1_i32_380 : i32 to vector<1x512xi32>
    %921 = arith.addi %2, %920 : vector<1x512xi32>
    %c0_i32_381 = arith.constant 0 : i32
    %922 = vector.broadcast %c0_i32_381 : i32 to vector<1x512xi32>
    %923 = arith.cmpi sge, %921, %922 : vector<1x512xi32>
    %924 = arith.andi %919, %923 : vector<1x512xi1>
    %c1_i32_382 = arith.constant 1 : i32
    %925 = vector.broadcast %c1_i32_382 : i32 to vector<1x512xi32>
    %926 = arith.addi %2, %925 : vector<1x512xi32>
    %c16_i32_383 = arith.constant 16 : i32
    %927 = vector.broadcast %c16_i32_383 : i32 to vector<1x512xi32>
    %928 = arith.cmpi slt, %926, %927 : vector<1x512xi32>
    %929 = arith.andi %924, %928 : vector<1x512xi1>
    %cst_384 = arith.constant 0.000000e+00 : f32
    %930 = vector.shape_cast %929 : vector<1x512xi1> to vector<1x512xi1>
    %931 = vector.broadcast %930 : vector<1x512xi1> to vector<8x512xi1>
    %932 = vector.broadcast %cst_384 : f32 to vector<8x512xf32>
    %933 = arith.select %931, %910, %932 : vector<8x512xi1>, vector<8x512xf32>
    %c497_i32_385 = arith.constant 497 : i32
    %934 = tpu.dynamic_rotate %813 by %c497_i32_385 dim 1 : vector<8x512xf32>, i32 -> vector<8x512xf32>
    %c1_i32_386 = arith.constant 1 : i32
    %935 = vector.broadcast %c1_i32_386 : i32 to vector<1x512xi32>
    %936 = arith.addi %1, %935 : vector<1x512xi32>
    %c0_i32_387 = arith.constant 0 : i32
    %937 = vector.broadcast %c0_i32_387 : i32 to vector<1x512xi32>
    %938 = arith.cmpi sge, %936, %937 : vector<1x512xi32>
    %c1_i32_388 = arith.constant 1 : i32
    %939 = vector.broadcast %c1_i32_388 : i32 to vector<1x512xi32>
    %940 = arith.addi %1, %939 : vector<1x512xi32>
    %c16_i32_389 = arith.constant 16 : i32
    %941 = vector.broadcast %c16_i32_389 : i32 to vector<1x512xi32>
    %942 = arith.cmpi slt, %940, %941 : vector<1x512xi32>
    %943 = arith.andi %938, %942 : vector<1x512xi1>
    %c-1_i32_390 = arith.constant -1 : i32
    %944 = vector.broadcast %c-1_i32_390 : i32 to vector<1x512xi32>
    %945 = arith.addi %2, %944 : vector<1x512xi32>
    %c0_i32_391 = arith.constant 0 : i32
    %946 = vector.broadcast %c0_i32_391 : i32 to vector<1x512xi32>
    %947 = arith.cmpi sge, %945, %946 : vector<1x512xi32>
    %948 = arith.andi %943, %947 : vector<1x512xi1>
    %c-1_i32_392 = arith.constant -1 : i32
    %949 = vector.broadcast %c-1_i32_392 : i32 to vector<1x512xi32>
    %950 = arith.addi %2, %949 : vector<1x512xi32>
    %c16_i32_393 = arith.constant 16 : i32
    %951 = vector.broadcast %c16_i32_393 : i32 to vector<1x512xi32>
    %952 = arith.cmpi slt, %950, %951 : vector<1x512xi32>
    %953 = arith.andi %948, %952 : vector<1x512xi1>
    %cst_394 = arith.constant 0.000000e+00 : f32
    %954 = vector.shape_cast %953 : vector<1x512xi1> to vector<1x512xi1>
    %955 = vector.broadcast %954 : vector<1x512xi1> to vector<8x512xi1>
    %956 = vector.broadcast %cst_394 : f32 to vector<8x512xf32>
    %957 = arith.select %955, %934, %956 : vector<8x512xi1>, vector<8x512xf32>
    %c496_i32_395 = arith.constant 496 : i32
    %958 = tpu.dynamic_rotate %813 by %c496_i32_395 dim 1 : vector<8x512xf32>, i32 -> vector<8x512xf32>
    %c1_i32_396 = arith.constant 1 : i32
    %959 = vector.broadcast %c1_i32_396 : i32 to vector<1x512xi32>
    %960 = arith.addi %1, %959 : vector<1x512xi32>
    %c0_i32_397 = arith.constant 0 : i32
    %961 = vector.broadcast %c0_i32_397 : i32 to vector<1x512xi32>
    %962 = arith.cmpi sge, %960, %961 : vector<1x512xi32>
    %c1_i32_398 = arith.constant 1 : i32
    %963 = vector.broadcast %c1_i32_398 : i32 to vector<1x512xi32>
    %964 = arith.addi %1, %963 : vector<1x512xi32>
    %c16_i32_399 = arith.constant 16 : i32
    %965 = vector.broadcast %c16_i32_399 : i32 to vector<1x512xi32>
    %966 = arith.cmpi slt, %964, %965 : vector<1x512xi32>
    %967 = arith.andi %962, %966 : vector<1x512xi1>
    %c0_i32_400 = arith.constant 0 : i32
    %968 = vector.broadcast %c0_i32_400 : i32 to vector<1x512xi32>
    %969 = arith.addi %2, %968 : vector<1x512xi32>
    %c0_i32_401 = arith.constant 0 : i32
    %970 = vector.broadcast %c0_i32_401 : i32 to vector<1x512xi32>
    %971 = arith.cmpi sge, %969, %970 : vector<1x512xi32>
    %972 = arith.andi %967, %971 : vector<1x512xi1>
    %c0_i32_402 = arith.constant 0 : i32
    %973 = vector.broadcast %c0_i32_402 : i32 to vector<1x512xi32>
    %974 = arith.addi %2, %973 : vector<1x512xi32>
    %c16_i32_403 = arith.constant 16 : i32
    %975 = vector.broadcast %c16_i32_403 : i32 to vector<1x512xi32>
    %976 = arith.cmpi slt, %974, %975 : vector<1x512xi32>
    %977 = arith.andi %972, %976 : vector<1x512xi1>
    %cst_404 = arith.constant 0.000000e+00 : f32
    %978 = vector.shape_cast %977 : vector<1x512xi1> to vector<1x512xi1>
    %979 = vector.broadcast %978 : vector<1x512xi1> to vector<8x512xi1>
    %980 = vector.broadcast %cst_404 : f32 to vector<8x512xf32>
    %981 = arith.select %979, %958, %980 : vector<8x512xi1>, vector<8x512xf32>
    %c495_i32_405 = arith.constant 495 : i32
    %982 = tpu.dynamic_rotate %813 by %c495_i32_405 dim 1 : vector<8x512xf32>, i32 -> vector<8x512xf32>
    %c1_i32_406 = arith.constant 1 : i32
    %983 = vector.broadcast %c1_i32_406 : i32 to vector<1x512xi32>
    %984 = arith.addi %1, %983 : vector<1x512xi32>
    %c0_i32_407 = arith.constant 0 : i32
    %985 = vector.broadcast %c0_i32_407 : i32 to vector<1x512xi32>
    %986 = arith.cmpi sge, %984, %985 : vector<1x512xi32>
    %c1_i32_408 = arith.constant 1 : i32
    %987 = vector.broadcast %c1_i32_408 : i32 to vector<1x512xi32>
    %988 = arith.addi %1, %987 : vector<1x512xi32>
    %c16_i32_409 = arith.constant 16 : i32
    %989 = vector.broadcast %c16_i32_409 : i32 to vector<1x512xi32>
    %990 = arith.cmpi slt, %988, %989 : vector<1x512xi32>
    %991 = arith.andi %986, %990 : vector<1x512xi1>
    %c1_i32_410 = arith.constant 1 : i32
    %992 = vector.broadcast %c1_i32_410 : i32 to vector<1x512xi32>
    %993 = arith.addi %2, %992 : vector<1x512xi32>
    %c0_i32_411 = arith.constant 0 : i32
    %994 = vector.broadcast %c0_i32_411 : i32 to vector<1x512xi32>
    %995 = arith.cmpi sge, %993, %994 : vector<1x512xi32>
    %996 = arith.andi %991, %995 : vector<1x512xi1>
    %c1_i32_412 = arith.constant 1 : i32
    %997 = vector.broadcast %c1_i32_412 : i32 to vector<1x512xi32>
    %998 = arith.addi %2, %997 : vector<1x512xi32>
    %c16_i32_413 = arith.constant 16 : i32
    %999 = vector.broadcast %c16_i32_413 : i32 to vector<1x512xi32>
    %1000 = arith.cmpi slt, %998, %999 : vector<1x512xi32>
    %1001 = arith.andi %996, %1000 : vector<1x512xi1>
    %cst_414 = arith.constant 0.000000e+00 : f32
    %1002 = vector.shape_cast %1001 : vector<1x512xi1> to vector<1x512xi1>
    %1003 = vector.broadcast %1002 : vector<1x512xi1> to vector<8x512xi1>
    %1004 = vector.broadcast %cst_414 : f32 to vector<8x512xf32>
    %1005 = arith.select %1003, %982, %1004 : vector<8x512xi1>, vector<8x512xf32>
    %1006 = tpu.concatenate %837, %861, %885, %909, %813, %933, %957, %981, %1005 in 0 : vector<8x512xf32>, vector<8x512xf32>, vector<8x512xf32>, vector<8x512xf32>, vector<8x512xf32>, vector<8x512xf32>, vector<8x512xf32>, vector<8x512xf32>, vector<8x512xf32> -> vector<72x512xf32>
    %c0_415 = arith.constant 0 : index
    %c0_416 = arith.constant 0 : index
    %1007 = vector.load %arg14[%c0_415, %c0_416] : memref<8x72xf32, #tpu.memory_space<vmem>>, vector<8x72xf32>
    %cst_417 = arith.constant dense<0.000000e+00> : vector<8x512xf32>
    %1008 = tpu.matmul %1007, %1006, %cst_417 {dimension_numbers = #tpu.dot_dimension_numbers<[1], [0], [0], [1], [0, 0, 1, 1], [], []>} : vector<8x72xf32>, vector<72x512xf32>, vector<8x512xf32> -> vector<8x512xf32>
    %c0_418 = arith.constant 0 : index
    %c0_419 = arith.constant 0 : index
    %1009 = vector.load %arg15[%c0_418, %c0_419] : memref<8x1xf32, #tpu.memory_space<vmem>>, vector<8x1xf32>
    %1010 = vector.broadcast %1009 : vector<8x1xf32> to vector<8x512xf32>
    %1011 = arith.addf %1008, %1010 : vector<8x512xf32>
    %cst_420 = arith.constant 0.000000e+00 : f32
    %1012 = vector.broadcast %cst_420 : f32 to vector<8x512xf32>
    %1013 = arith.maximumf %1011, %1012 : vector<8x512xf32>
    %c51_i32 = arith.constant 51 : i32
    %1014 = tpu.dynamic_rotate %1013 by %c51_i32 dim 1 : vector<8x512xf32>, i32 -> vector<8x512xf32>
    %c-3_i32 = arith.constant -3 : i32
    %1015 = vector.broadcast %c-3_i32 : i32 to vector<1x512xi32>
    %1016 = arith.addi %1, %1015 : vector<1x512xi32>
    %c0_i32_421 = arith.constant 0 : i32
    %1017 = vector.broadcast %c0_i32_421 : i32 to vector<1x512xi32>
    %1018 = arith.cmpi sge, %1016, %1017 : vector<1x512xi32>
    %c-3_i32_422 = arith.constant -3 : i32
    %1019 = vector.broadcast %c-3_i32_422 : i32 to vector<1x512xi32>
    %1020 = arith.addi %1, %1019 : vector<1x512xi32>
    %c16_i32_423 = arith.constant 16 : i32
    %1021 = vector.broadcast %c16_i32_423 : i32 to vector<1x512xi32>
    %1022 = arith.cmpi slt, %1020, %1021 : vector<1x512xi32>
    %1023 = arith.andi %1018, %1022 : vector<1x512xi1>
    %c-3_i32_424 = arith.constant -3 : i32
    %1024 = vector.broadcast %c-3_i32_424 : i32 to vector<1x512xi32>
    %1025 = arith.addi %2, %1024 : vector<1x512xi32>
    %c0_i32_425 = arith.constant 0 : i32
    %1026 = vector.broadcast %c0_i32_425 : i32 to vector<1x512xi32>
    %1027 = arith.cmpi sge, %1025, %1026 : vector<1x512xi32>
    %1028 = arith.andi %1023, %1027 : vector<1x512xi1>
    %c-3_i32_426 = arith.constant -3 : i32
    %1029 = vector.broadcast %c-3_i32_426 : i32 to vector<1x512xi32>
    %1030 = arith.addi %2, %1029 : vector<1x512xi32>
    %c16_i32_427 = arith.constant 16 : i32
    %1031 = vector.broadcast %c16_i32_427 : i32 to vector<1x512xi32>
    %1032 = arith.cmpi slt, %1030, %1031 : vector<1x512xi32>
    %1033 = arith.andi %1028, %1032 : vector<1x512xi1>
    %cst_428 = arith.constant 0.000000e+00 : f32
    %1034 = vector.shape_cast %1033 : vector<1x512xi1> to vector<1x512xi1>
    %1035 = vector.broadcast %1034 : vector<1x512xi1> to vector<8x512xi1>
    %1036 = vector.broadcast %cst_428 : f32 to vector<8x512xf32>
    %1037 = arith.select %1035, %1014, %1036 : vector<8x512xi1>, vector<8x512xf32>
    %c48_i32 = arith.constant 48 : i32
    %1038 = tpu.dynamic_rotate %1013 by %c48_i32 dim 1 : vector<8x512xf32>, i32 -> vector<8x512xf32>
    %c-3_i32_429 = arith.constant -3 : i32
    %1039 = vector.broadcast %c-3_i32_429 : i32 to vector<1x512xi32>
    %1040 = arith.addi %1, %1039 : vector<1x512xi32>
    %c0_i32_430 = arith.constant 0 : i32
    %1041 = vector.broadcast %c0_i32_430 : i32 to vector<1x512xi32>
    %1042 = arith.cmpi sge, %1040, %1041 : vector<1x512xi32>
    %c-3_i32_431 = arith.constant -3 : i32
    %1043 = vector.broadcast %c-3_i32_431 : i32 to vector<1x512xi32>
    %1044 = arith.addi %1, %1043 : vector<1x512xi32>
    %c16_i32_432 = arith.constant 16 : i32
    %1045 = vector.broadcast %c16_i32_432 : i32 to vector<1x512xi32>
    %1046 = arith.cmpi slt, %1044, %1045 : vector<1x512xi32>
    %1047 = arith.andi %1042, %1046 : vector<1x512xi1>
    %c0_i32_433 = arith.constant 0 : i32
    %1048 = vector.broadcast %c0_i32_433 : i32 to vector<1x512xi32>
    %1049 = arith.addi %2, %1048 : vector<1x512xi32>
    %c0_i32_434 = arith.constant 0 : i32
    %1050 = vector.broadcast %c0_i32_434 : i32 to vector<1x512xi32>
    %1051 = arith.cmpi sge, %1049, %1050 : vector<1x512xi32>
    %1052 = arith.andi %1047, %1051 : vector<1x512xi1>
    %c0_i32_435 = arith.constant 0 : i32
    %1053 = vector.broadcast %c0_i32_435 : i32 to vector<1x512xi32>
    %1054 = arith.addi %2, %1053 : vector<1x512xi32>
    %c16_i32_436 = arith.constant 16 : i32
    %1055 = vector.broadcast %c16_i32_436 : i32 to vector<1x512xi32>
    %1056 = arith.cmpi slt, %1054, %1055 : vector<1x512xi32>
    %1057 = arith.andi %1052, %1056 : vector<1x512xi1>
    %cst_437 = arith.constant 0.000000e+00 : f32
    %1058 = vector.shape_cast %1057 : vector<1x512xi1> to vector<1x512xi1>
    %1059 = vector.broadcast %1058 : vector<1x512xi1> to vector<8x512xi1>
    %1060 = vector.broadcast %cst_437 : f32 to vector<8x512xf32>
    %1061 = arith.select %1059, %1038, %1060 : vector<8x512xi1>, vector<8x512xf32>
    %c45_i32 = arith.constant 45 : i32
    %1062 = tpu.dynamic_rotate %1013 by %c45_i32 dim 1 : vector<8x512xf32>, i32 -> vector<8x512xf32>
    %c-3_i32_438 = arith.constant -3 : i32
    %1063 = vector.broadcast %c-3_i32_438 : i32 to vector<1x512xi32>
    %1064 = arith.addi %1, %1063 : vector<1x512xi32>
    %c0_i32_439 = arith.constant 0 : i32
    %1065 = vector.broadcast %c0_i32_439 : i32 to vector<1x512xi32>
    %1066 = arith.cmpi sge, %1064, %1065 : vector<1x512xi32>
    %c-3_i32_440 = arith.constant -3 : i32
    %1067 = vector.broadcast %c-3_i32_440 : i32 to vector<1x512xi32>
    %1068 = arith.addi %1, %1067 : vector<1x512xi32>
    %c16_i32_441 = arith.constant 16 : i32
    %1069 = vector.broadcast %c16_i32_441 : i32 to vector<1x512xi32>
    %1070 = arith.cmpi slt, %1068, %1069 : vector<1x512xi32>
    %1071 = arith.andi %1066, %1070 : vector<1x512xi1>
    %c3_i32 = arith.constant 3 : i32
    %1072 = vector.broadcast %c3_i32 : i32 to vector<1x512xi32>
    %1073 = arith.addi %2, %1072 : vector<1x512xi32>
    %c0_i32_442 = arith.constant 0 : i32
    %1074 = vector.broadcast %c0_i32_442 : i32 to vector<1x512xi32>
    %1075 = arith.cmpi sge, %1073, %1074 : vector<1x512xi32>
    %1076 = arith.andi %1071, %1075 : vector<1x512xi1>
    %c3_i32_443 = arith.constant 3 : i32
    %1077 = vector.broadcast %c3_i32_443 : i32 to vector<1x512xi32>
    %1078 = arith.addi %2, %1077 : vector<1x512xi32>
    %c16_i32_444 = arith.constant 16 : i32
    %1079 = vector.broadcast %c16_i32_444 : i32 to vector<1x512xi32>
    %1080 = arith.cmpi slt, %1078, %1079 : vector<1x512xi32>
    %1081 = arith.andi %1076, %1080 : vector<1x512xi1>
    %cst_445 = arith.constant 0.000000e+00 : f32
    %1082 = vector.shape_cast %1081 : vector<1x512xi1> to vector<1x512xi1>
    %1083 = vector.broadcast %1082 : vector<1x512xi1> to vector<8x512xi1>
    %1084 = vector.broadcast %cst_445 : f32 to vector<8x512xf32>
    %1085 = arith.select %1083, %1062, %1084 : vector<8x512xi1>, vector<8x512xf32>
    %c3_i32_446 = arith.constant 3 : i32
    %1086 = tpu.dynamic_rotate %1013 by %c3_i32_446 dim 1 : vector<8x512xf32>, i32 -> vector<8x512xf32>
    %c0_i32_447 = arith.constant 0 : i32
    %1087 = vector.broadcast %c0_i32_447 : i32 to vector<1x512xi32>
    %1088 = arith.addi %1, %1087 : vector<1x512xi32>
    %c0_i32_448 = arith.constant 0 : i32
    %1089 = vector.broadcast %c0_i32_448 : i32 to vector<1x512xi32>
    %1090 = arith.cmpi sge, %1088, %1089 : vector<1x512xi32>
    %c0_i32_449 = arith.constant 0 : i32
    %1091 = vector.broadcast %c0_i32_449 : i32 to vector<1x512xi32>
    %1092 = arith.addi %1, %1091 : vector<1x512xi32>
    %c16_i32_450 = arith.constant 16 : i32
    %1093 = vector.broadcast %c16_i32_450 : i32 to vector<1x512xi32>
    %1094 = arith.cmpi slt, %1092, %1093 : vector<1x512xi32>
    %1095 = arith.andi %1090, %1094 : vector<1x512xi1>
    %c-3_i32_451 = arith.constant -3 : i32
    %1096 = vector.broadcast %c-3_i32_451 : i32 to vector<1x512xi32>
    %1097 = arith.addi %2, %1096 : vector<1x512xi32>
    %c0_i32_452 = arith.constant 0 : i32
    %1098 = vector.broadcast %c0_i32_452 : i32 to vector<1x512xi32>
    %1099 = arith.cmpi sge, %1097, %1098 : vector<1x512xi32>
    %1100 = arith.andi %1095, %1099 : vector<1x512xi1>
    %c-3_i32_453 = arith.constant -3 : i32
    %1101 = vector.broadcast %c-3_i32_453 : i32 to vector<1x512xi32>
    %1102 = arith.addi %2, %1101 : vector<1x512xi32>
    %c16_i32_454 = arith.constant 16 : i32
    %1103 = vector.broadcast %c16_i32_454 : i32 to vector<1x512xi32>
    %1104 = arith.cmpi slt, %1102, %1103 : vector<1x512xi32>
    %1105 = arith.andi %1100, %1104 : vector<1x512xi1>
    %cst_455 = arith.constant 0.000000e+00 : f32
    %1106 = vector.shape_cast %1105 : vector<1x512xi1> to vector<1x512xi1>
    %1107 = vector.broadcast %1106 : vector<1x512xi1> to vector<8x512xi1>
    %1108 = vector.broadcast %cst_455 : f32 to vector<8x512xf32>
    %1109 = arith.select %1107, %1086, %1108 : vector<8x512xi1>, vector<8x512xf32>
    %c509_i32 = arith.constant 509 : i32
    %1110 = tpu.dynamic_rotate %1013 by %c509_i32 dim 1 : vector<8x512xf32>, i32 -> vector<8x512xf32>
    %c0_i32_456 = arith.constant 0 : i32
    %1111 = vector.broadcast %c0_i32_456 : i32 to vector<1x512xi32>
    %1112 = arith.addi %1, %1111 : vector<1x512xi32>
    %c0_i32_457 = arith.constant 0 : i32
    %1113 = vector.broadcast %c0_i32_457 : i32 to vector<1x512xi32>
    %1114 = arith.cmpi sge, %1112, %1113 : vector<1x512xi32>
    %c0_i32_458 = arith.constant 0 : i32
    %1115 = vector.broadcast %c0_i32_458 : i32 to vector<1x512xi32>
    %1116 = arith.addi %1, %1115 : vector<1x512xi32>
    %c16_i32_459 = arith.constant 16 : i32
    %1117 = vector.broadcast %c16_i32_459 : i32 to vector<1x512xi32>
    %1118 = arith.cmpi slt, %1116, %1117 : vector<1x512xi32>
    %1119 = arith.andi %1114, %1118 : vector<1x512xi1>
    %c3_i32_460 = arith.constant 3 : i32
    %1120 = vector.broadcast %c3_i32_460 : i32 to vector<1x512xi32>
    %1121 = arith.addi %2, %1120 : vector<1x512xi32>
    %c0_i32_461 = arith.constant 0 : i32
    %1122 = vector.broadcast %c0_i32_461 : i32 to vector<1x512xi32>
    %1123 = arith.cmpi sge, %1121, %1122 : vector<1x512xi32>
    %1124 = arith.andi %1119, %1123 : vector<1x512xi1>
    %c3_i32_462 = arith.constant 3 : i32
    %1125 = vector.broadcast %c3_i32_462 : i32 to vector<1x512xi32>
    %1126 = arith.addi %2, %1125 : vector<1x512xi32>
    %c16_i32_463 = arith.constant 16 : i32
    %1127 = vector.broadcast %c16_i32_463 : i32 to vector<1x512xi32>
    %1128 = arith.cmpi slt, %1126, %1127 : vector<1x512xi32>
    %1129 = arith.andi %1124, %1128 : vector<1x512xi1>
    %cst_464 = arith.constant 0.000000e+00 : f32
    %1130 = vector.shape_cast %1129 : vector<1x512xi1> to vector<1x512xi1>
    %1131 = vector.broadcast %1130 : vector<1x512xi1> to vector<8x512xi1>
    %1132 = vector.broadcast %cst_464 : f32 to vector<8x512xf32>
    %1133 = arith.select %1131, %1110, %1132 : vector<8x512xi1>, vector<8x512xf32>
    %c467_i32 = arith.constant 467 : i32
    %1134 = tpu.dynamic_rotate %1013 by %c467_i32 dim 1 : vector<8x512xf32>, i32 -> vector<8x512xf32>
    %c3_i32_465 = arith.constant 3 : i32
    %1135 = vector.broadcast %c3_i32_465 : i32 to vector<1x512xi32>
    %1136 = arith.addi %1, %1135 : vector<1x512xi32>
    %c0_i32_466 = arith.constant 0 : i32
    %1137 = vector.broadcast %c0_i32_466 : i32 to vector<1x512xi32>
    %1138 = arith.cmpi sge, %1136, %1137 : vector<1x512xi32>
    %c3_i32_467 = arith.constant 3 : i32
    %1139 = vector.broadcast %c3_i32_467 : i32 to vector<1x512xi32>
    %1140 = arith.addi %1, %1139 : vector<1x512xi32>
    %c16_i32_468 = arith.constant 16 : i32
    %1141 = vector.broadcast %c16_i32_468 : i32 to vector<1x512xi32>
    %1142 = arith.cmpi slt, %1140, %1141 : vector<1x512xi32>
    %1143 = arith.andi %1138, %1142 : vector<1x512xi1>
    %c-3_i32_469 = arith.constant -3 : i32
    %1144 = vector.broadcast %c-3_i32_469 : i32 to vector<1x512xi32>
    %1145 = arith.addi %2, %1144 : vector<1x512xi32>
    %c0_i32_470 = arith.constant 0 : i32
    %1146 = vector.broadcast %c0_i32_470 : i32 to vector<1x512xi32>
    %1147 = arith.cmpi sge, %1145, %1146 : vector<1x512xi32>
    %1148 = arith.andi %1143, %1147 : vector<1x512xi1>
    %c-3_i32_471 = arith.constant -3 : i32
    %1149 = vector.broadcast %c-3_i32_471 : i32 to vector<1x512xi32>
    %1150 = arith.addi %2, %1149 : vector<1x512xi32>
    %c16_i32_472 = arith.constant 16 : i32
    %1151 = vector.broadcast %c16_i32_472 : i32 to vector<1x512xi32>
    %1152 = arith.cmpi slt, %1150, %1151 : vector<1x512xi32>
    %1153 = arith.andi %1148, %1152 : vector<1x512xi1>
    %cst_473 = arith.constant 0.000000e+00 : f32
    %1154 = vector.shape_cast %1153 : vector<1x512xi1> to vector<1x512xi1>
    %1155 = vector.broadcast %1154 : vector<1x512xi1> to vector<8x512xi1>
    %1156 = vector.broadcast %cst_473 : f32 to vector<8x512xf32>
    %1157 = arith.select %1155, %1134, %1156 : vector<8x512xi1>, vector<8x512xf32>
    %c464_i32 = arith.constant 464 : i32
    %1158 = tpu.dynamic_rotate %1013 by %c464_i32 dim 1 : vector<8x512xf32>, i32 -> vector<8x512xf32>
    %c3_i32_474 = arith.constant 3 : i32
    %1159 = vector.broadcast %c3_i32_474 : i32 to vector<1x512xi32>
    %1160 = arith.addi %1, %1159 : vector<1x512xi32>
    %c0_i32_475 = arith.constant 0 : i32
    %1161 = vector.broadcast %c0_i32_475 : i32 to vector<1x512xi32>
    %1162 = arith.cmpi sge, %1160, %1161 : vector<1x512xi32>
    %c3_i32_476 = arith.constant 3 : i32
    %1163 = vector.broadcast %c3_i32_476 : i32 to vector<1x512xi32>
    %1164 = arith.addi %1, %1163 : vector<1x512xi32>
    %c16_i32_477 = arith.constant 16 : i32
    %1165 = vector.broadcast %c16_i32_477 : i32 to vector<1x512xi32>
    %1166 = arith.cmpi slt, %1164, %1165 : vector<1x512xi32>
    %1167 = arith.andi %1162, %1166 : vector<1x512xi1>
    %c0_i32_478 = arith.constant 0 : i32
    %1168 = vector.broadcast %c0_i32_478 : i32 to vector<1x512xi32>
    %1169 = arith.addi %2, %1168 : vector<1x512xi32>
    %c0_i32_479 = arith.constant 0 : i32
    %1170 = vector.broadcast %c0_i32_479 : i32 to vector<1x512xi32>
    %1171 = arith.cmpi sge, %1169, %1170 : vector<1x512xi32>
    %1172 = arith.andi %1167, %1171 : vector<1x512xi1>
    %c0_i32_480 = arith.constant 0 : i32
    %1173 = vector.broadcast %c0_i32_480 : i32 to vector<1x512xi32>
    %1174 = arith.addi %2, %1173 : vector<1x512xi32>
    %c16_i32_481 = arith.constant 16 : i32
    %1175 = vector.broadcast %c16_i32_481 : i32 to vector<1x512xi32>
    %1176 = arith.cmpi slt, %1174, %1175 : vector<1x512xi32>
    %1177 = arith.andi %1172, %1176 : vector<1x512xi1>
    %cst_482 = arith.constant 0.000000e+00 : f32
    %1178 = vector.shape_cast %1177 : vector<1x512xi1> to vector<1x512xi1>
    %1179 = vector.broadcast %1178 : vector<1x512xi1> to vector<8x512xi1>
    %1180 = vector.broadcast %cst_482 : f32 to vector<8x512xf32>
    %1181 = arith.select %1179, %1158, %1180 : vector<8x512xi1>, vector<8x512xf32>
    %c461_i32 = arith.constant 461 : i32
    %1182 = tpu.dynamic_rotate %1013 by %c461_i32 dim 1 : vector<8x512xf32>, i32 -> vector<8x512xf32>
    %c3_i32_483 = arith.constant 3 : i32
    %1183 = vector.broadcast %c3_i32_483 : i32 to vector<1x512xi32>
    %1184 = arith.addi %1, %1183 : vector<1x512xi32>
    %c0_i32_484 = arith.constant 0 : i32
    %1185 = vector.broadcast %c0_i32_484 : i32 to vector<1x512xi32>
    %1186 = arith.cmpi sge, %1184, %1185 : vector<1x512xi32>
    %c3_i32_485 = arith.constant 3 : i32
    %1187 = vector.broadcast %c3_i32_485 : i32 to vector<1x512xi32>
    %1188 = arith.addi %1, %1187 : vector<1x512xi32>
    %c16_i32_486 = arith.constant 16 : i32
    %1189 = vector.broadcast %c16_i32_486 : i32 to vector<1x512xi32>
    %1190 = arith.cmpi slt, %1188, %1189 : vector<1x512xi32>
    %1191 = arith.andi %1186, %1190 : vector<1x512xi1>
    %c3_i32_487 = arith.constant 3 : i32
    %1192 = vector.broadcast %c3_i32_487 : i32 to vector<1x512xi32>
    %1193 = arith.addi %2, %1192 : vector<1x512xi32>
    %c0_i32_488 = arith.constant 0 : i32
    %1194 = vector.broadcast %c0_i32_488 : i32 to vector<1x512xi32>
    %1195 = arith.cmpi sge, %1193, %1194 : vector<1x512xi32>
    %1196 = arith.andi %1191, %1195 : vector<1x512xi1>
    %c3_i32_489 = arith.constant 3 : i32
    %1197 = vector.broadcast %c3_i32_489 : i32 to vector<1x512xi32>
    %1198 = arith.addi %2, %1197 : vector<1x512xi32>
    %c16_i32_490 = arith.constant 16 : i32
    %1199 = vector.broadcast %c16_i32_490 : i32 to vector<1x512xi32>
    %1200 = arith.cmpi slt, %1198, %1199 : vector<1x512xi32>
    %1201 = arith.andi %1196, %1200 : vector<1x512xi1>
    %cst_491 = arith.constant 0.000000e+00 : f32
    %1202 = vector.shape_cast %1201 : vector<1x512xi1> to vector<1x512xi1>
    %1203 = vector.broadcast %1202 : vector<1x512xi1> to vector<8x512xi1>
    %1204 = vector.broadcast %cst_491 : f32 to vector<8x512xf32>
    %1205 = arith.select %1203, %1182, %1204 : vector<8x512xi1>, vector<8x512xf32>
    %1206 = tpu.concatenate %1037, %1061, %1085, %1109, %1013, %1133, %1157, %1181, %1205 in 0 : vector<8x512xf32>, vector<8x512xf32>, vector<8x512xf32>, vector<8x512xf32>, vector<8x512xf32>, vector<8x512xf32>, vector<8x512xf32>, vector<8x512xf32>, vector<8x512xf32> -> vector<72x512xf32>
    %c0_492 = arith.constant 0 : index
    %c0_493 = arith.constant 0 : index
    %1207 = vector.load %arg16[%c0_492, %c0_493] : memref<8x72xf32, #tpu.memory_space<vmem>>, vector<8x72xf32>
    %cst_494 = arith.constant dense<0.000000e+00> : vector<8x512xf32>
    %1208 = tpu.matmul %1207, %1206, %cst_494 {dimension_numbers = #tpu.dot_dimension_numbers<[1], [0], [0], [1], [0, 0, 1, 1], [], []>} : vector<8x72xf32>, vector<72x512xf32>, vector<8x512xf32> -> vector<8x512xf32>
    %c0_495 = arith.constant 0 : index
    %c0_496 = arith.constant 0 : index
    %1209 = vector.load %arg17[%c0_495, %c0_496] : memref<8x1xf32, #tpu.memory_space<vmem>>, vector<8x1xf32>
    %1210 = vector.broadcast %1209 : vector<8x1xf32> to vector<8x512xf32>
    %1211 = arith.addf %1208, %1210 : vector<8x512xf32>
    %1212 = tpu.concatenate %215, %613, %1211 in 0 : vector<8x512xf32>, vector<8x512xf32>, vector<8x512xf32> -> vector<24x512xf32>
    %c0_497 = arith.constant 0 : index
    %c0_498 = arith.constant 0 : index
    %1213 = vector.load %arg18[%c0_497, %c0_498] : memref<32x24xf32, #tpu.memory_space<vmem>>, vector<32x24xf32>
    %cst_499 = arith.constant dense<0.000000e+00> : vector<32x512xf32>
    %1214 = tpu.matmul %1213, %1212, %cst_499 {dimension_numbers = #tpu.dot_dimension_numbers<[1], [0], [0], [1], [0, 0, 1, 1], [], []>} : vector<32x24xf32>, vector<24x512xf32>, vector<32x512xf32> -> vector<32x512xf32>
    %c0_500 = arith.constant 0 : index
    %c0_501 = arith.constant 0 : index
    %1215 = vector.load %arg19[%c0_500, %c0_501] : memref<32x1xf32, #tpu.memory_space<vmem>>, vector<32x1xf32>
    %1216 = vector.broadcast %1215 : vector<32x1xf32> to vector<32x512xf32>
    %1217 = arith.addf %1214, %1216 : vector<32x512xf32>
    %cst_502 = arith.constant 1.000000e-01 : f32
    %1218 = vector.broadcast %cst_502 : f32 to vector<32x512xf32>
    %1219 = arith.mulf %1217, %1218 : vector<32x512xf32>
    %1220 = arith.addf %1219, %17 : vector<32x512xf32>
    %cst_503 = arith.constant 0.000000e+00 : f32
    %1221 = vector.broadcast %cst_503 : f32 to vector<32x512xf32>
    %1222 = arith.maximumf %1220, %1221 : vector<32x512xf32>
    %c0_504 = arith.constant 0 : index
    %c0_505 = arith.constant 0 : index
    %1223 = vector.load %arg20[%c0_504, %c0_505] : memref<32x512xf32, #tpu.memory_space<vmem>>, vector<32x512xf32>
    tpu.vector_store %arg20[%c0_504, %c0_505], %1222 {strides = array<i32>} : memref<32x512xf32, #tpu.memory_space<vmem>>, vector<32x512xf32>,
    return
  }
  func.func @transform_0(%arg0: i32) -> (i32, i32) {
    %c0_i32 = arith.constant 0 : i32
    %c0_i32_0 = arith.constant 0 : i32
    return %c0_i32, %arg0 : i32, i32
  }
  func.func @transform_1(%arg0: i32) -> (i32, i32) {
    %c0_i32 = arith.constant 0 : i32
    %c0_i32_0 = arith.constant 0 : i32
    return %c0_i32, %arg0 : i32, i32
  }
  func.func @transform_2(%arg0: i32) -> (i32, i32) {
    %c0_i32 = arith.constant 0 : i32
    %c0_i32_0 = arith.constant 0 : i32
    return %c0_i32, %arg0 : i32, i32
  }
  func.func @transform_3(%arg0: i32) -> (i32, i32) {
    %c0_i32 = arith.constant 0 : i32
    %c0_i32_0 = arith.constant 0 : i32
    %c0_i32_1 = arith.constant 0 : i32
    return %c0_i32, %c0_i32_0 : i32, i32
  }
  func.func @transform_4(%arg0: i32) -> (i32, i32) {
    %c0_i32 = arith.constant 0 : i32
    %c0_i32_0 = arith.constant 0 : i32
    %c0_i32_1 = arith.constant 0 : i32
    return %c0_i32, %c0_i32_0 : i32, i32
  }
  func.func @transform_5(%arg0: i32) -> (i32, i32) {
    %c0_i32 = arith.constant 0 : i32
    %c0_i32_0 = arith.constant 0 : i32
    %c0_i32_1 = arith.constant 0 : i32
    return %c0_i32, %c0_i32_0 : i32, i32
  }
  func.func @transform_6(%arg0: i32) -> (i32, i32) {
    %c0_i32 = arith.constant 0 : i32
    %c0_i32_0 = arith.constant 0 : i32
    %c0_i32_1 = arith.constant 0 : i32
    return %c0_i32, %c0_i32_0 : i32, i32
  }
  func.func @transform_7(%arg0: i32) -> (i32, i32) {
    %c0_i32 = arith.constant 0 : i32
    %c0_i32_0 = arith.constant 0 : i32
    %c0_i32_1 = arith.constant 0 : i32
    return %c0_i32, %c0_i32_0 : i32, i32
  }
  func.func @transform_8(%arg0: i32) -> (i32, i32) {
    %c0_i32 = arith.constant 0 : i32
    %c0_i32_0 = arith.constant 0 : i32
    %c0_i32_1 = arith.constant 0 : i32
    return %c0_i32, %c0_i32_0 : i32, i32
  }
  func.func @transform_9(%arg0: i32) -> (i32, i32) {
    %c0_i32 = arith.constant 0 : i32
    %c0_i32_0 = arith.constant 0 : i32
    %c0_i32_1 = arith.constant 0 : i32
    return %c0_i32, %c0_i32_0 : i32, i32
  }
  func.func @transform_10(%arg0: i32) -> (i32, i32) {
    %c0_i32 = arith.constant 0 : i32
    %c0_i32_0 = arith.constant 0 : i32
    %c0_i32_1 = arith.constant 0 : i32
    return %c0_i32, %c0_i32_0 : i32, i32
  }
  func.func @transform_11(%arg0: i32) -> (i32, i32) {
    %c0_i32 = arith.constant 0 : i32
    %c0_i32_0 = arith.constant 0 : i32
    %c0_i32_1 = arith.constant 0 : i32
    return %c0_i32, %c0_i32_0 : i32, i32
  }
  func.func @transform_12(%arg0: i32) -> (i32, i32) {
    %c0_i32 = arith.constant 0 : i32
    %c0_i32_0 = arith.constant 0 : i32
    %c0_i32_1 = arith.constant 0 : i32
    return %c0_i32, %c0_i32_0 : i32, i32
  }
  func.func @transform_13(%arg0: i32) -> (i32, i32) {
    %c0_i32 = arith.constant 0 : i32
    %c0_i32_0 = arith.constant 0 : i32
    %c0_i32_1 = arith.constant 0 : i32
    return %c0_i32, %c0_i32_0 : i32, i32
  }
  func.func @transform_14(%arg0: i32) -> (i32, i32) {
    %c0_i32 = arith.constant 0 : i32
    %c0_i32_0 = arith.constant 0 : i32
    %c0_i32_1 = arith.constant 0 : i32
    return %c0_i32, %c0_i32_0 : i32, i32
  }
  func.func @transform_15(%arg0: i32) -> (i32, i32) {
    %c0_i32 = arith.constant 0 : i32
    %c0_i32_0 = arith.constant 0 : i32
    %c0_i32_1 = arith.constant 0 : i32
    return %c0_i32, %c0_i32_0 : i32, i32
  }
  func.func @transform_16(%arg0: i32) -> (i32, i32) {
    %c0_i32 = arith.constant 0 : i32
    %c0_i32_0 = arith.constant 0 : i32
    %c0_i32_1 = arith.constant 0 : i32
    return %c0_i32, %c0_i32_0 : i32, i32
  }
  func.func @transform_17(%arg0: i32) -> (i32, i32) {
    %c0_i32 = arith.constant 0 : i32
    %c0_i32_0 = arith.constant 0 : i32
    %c0_i32_1 = arith.constant 0 : i32
    return %c0_i32, %c0_i32_0 : i32, i32
  }
  func.func @transform_18(%arg0: i32) -> (i32, i32) {
    %c0_i32 = arith.constant 0 : i32
    %c0_i32_0 = arith.constant 0 : i32
    %c0_i32_1 = arith.constant 0 : i32
    return %c0_i32, %c0_i32_0 : i32, i32
  }
  func.func @transform_19(%arg0: i32) -> (i32, i32) {
    %c0_i32 = arith.constant 0 : i32
    %c0_i32_0 = arith.constant 0 : i32
    return %c0_i32, %arg0 : i32, i32
  }
}

</mosaic_0001>

<bundles_post_ra>
// kernel: rfam_forward.1
= control target key start
LH: loop header
LB: loop body
LE: loop exit
PB: predicated region body
PF: predicated region fallthrough
CT: control target
= control target key end

     0   :  { %v5413_v3 = vmov 0.0   ;;  %vm129_vm0 = vcmask 261120   ;;  %v5415_v20 = vmov 0   ;;  %s3242_s29 = smov 111   ;;  %s3244_s30 = smov 113   ;;  %v385_v57 = vlaneseq  ;;  %s5322_s0 = inlined_call_operand.vmem [shape: f32[32,512], index: 0, kind: input, shape index: {}]   ;;  %s5323_s3 = inlined_call_operand.vmem [shape: f32[56,32], index: 3, kind: input, shape index: {}]   ;;  %s5324_s4 = inlined_call_operand.vmem [shape: f32[56,1], index: 4, kind: input, shape index: {}]   ;;  %s5325_s1 = inlined_call_operand.vmem [shape: s32[1,512], index: 1, kind: input, shape index: {}]   ;;  %s5326_s2 = inlined_call_operand.vmem [shape: s32[1,512], index: 2, kind: input, shape index: {}]   ;;  %s5327_s8 = inlined_call_operand.vmem [shape: f32[8,1], index: 8, kind: input, shape index: {}]   ;;  %s5328_s5 = inlined_call_operand.vmem [shape: f32[8,72], index: 5, kind: input, shape index: {}]   ;;  %s5329_s7 = inlined_call_operand.vmem [shape: f32[8,72], index: 7, kind: input, shape index: {}]   ;;  %s5330_s12 = inlined_call_operand.vmem [shape: f32[8,1], index: 12, kind: input, shape index: {}]   ;;  %s5331_s9 = inlined_call_operand.vmem [shape: f32[8,72], index: 9, kind: input, shape index: {}]   ;;  %s5332_s11 = inlined_call_operand.vmem [shape: f32[8,72], index: 11, kind: input, shape index: {}]   ;;  %s5333_s14 = inlined_call_operand.vmem [shape: f32[8,1], index: 14, kind: input, shape index: {}]   ;;  %s5334_s13 = inlined_call_operand.vmem [shape: f32[8,72], index: 13, kind: input, shape index: {}]   ;;  %s5335_s16 = inlined_call_operand.vmem [shape: f32[8,1], index: 16, kind: input, shape index: {}]   ;;  %s5336_s10 = inlined_call_operand.vmem [shape: f32[8,1], index: 10, kind: input, shape index: {}]   ;;  %s5337_s6 = inlined_call_operand.vmem [shape: f32[8,1], index: 6, kind: input, shape index: {}]   ;;  %s5338_s18 = inlined_call_operand.vmem [shape: f32[32,1], index: 18, kind: input, shape index: {}]   ;;  %s5339_s15 = inlined_call_operand.vmem [shape: f32[8,72], index: 15, kind: input, shape index: {}]   ;;  %s5340_s17 = inlined_call_operand.vmem [shape: f32[32,24], index: 17, kind: input, shape index: {}]   ;;  %s5341_s19 = inlined_call_operand.vmem [shape: f32[32,512], index: 19, kind: output, shape index: {}]  }
   0x1   :  { %5471 = sst [smem:[#allocation46_spill]] %s5322_s0  ;;  %215 = vmatprep.mubr.f32.mxu0 %v5413_v3  ;;  %322 = vmatprep.mubr.f32.mxu1 %v5413_v3  ;;  %s3243_s0 = smov 112   ;;  %v3593_v54 = vld [vmem:[%s5326_s2] sm:$0xf] }
   0x2   :  { %5472 = sst [smem:[#allocation47_spill]] %s5323_s3  ;;  %3234 = vset.pattern.permute.xlu0 %v5415_v20  ;;  %3235 = vset.pattern.permute.xlu1 %v5415_v20  ;;  %s3245_s21 = smov 127   ;;  %v3601_v56 = vadd.s32 1, %v3593_v54  ;;  %v403_v59 = vshrl.u32 %v385_v57, 7  ;;  %vm5348_vm8 = vcmp.ge.s32.totalorder %v3593_v54, 0  ;;  %v3637_v63 = vand.u32 127, %v385_v57 }
   0x3   :  { %5473 = sst [smem:[#allocation48_spill]] %s5324_s4  ;;  %s3246_s3 = smov 1   ;;  %vm5346_vm9 = vcmp.lt.s32.totalorder %v3593_v54, 16  ;;  %v5500_v57 = vmov 0 }
   0x4   :  { %5474 = sst [smem:[#allocation49_spill]] %s5325_s1  ;;  %s3247_s24 = smov 15   ;;  %vm5349_vm3 = vcmp.ge.s32.totalorder %v3601_v56, 0  ;;  %vm5352_vm5 = vcmp.lt.s32.totalorder %v3601_v56, 16  ;;  %v3628_v60 = vsub.s32 1, %v403_v59  ;;  %v3631_v62 = vsub.s32 0, %v403_v59 }
   0x5   :  { %s5475_s20 = sld [smem:[#allocation46_spill]]  ;;  %s3248_s26 = smov 16   ;;  %vm5347_vm12 = vcmp.lt.s32.totalorder %v3637_v63, 111 }
   0x6   :  { %s5476_s23 = sld [smem:[#allocation47_spill]]  ;;  %s3249_s25 = smov 17  }
   0x7   :  { %s5477_s1 = sld [smem:[#allocation48_spill]]  ;;  %s3253_s28 = smov 126  }
   0x8   :  { %s5478_s22 = sld [smem:[#allocation49_spill]]  ;;  %s3254_s4 = smov 2  }
   0x9   :  { %s3257_s27 = smov 34  }
   0xb   :  { %v75_v0 = vld [vmem:[%s5475_s20 + $0x68] sm:$0xff]  ;;  %v77_v1 = vld [vmem:[%s5475_s20 + $0x78] sm:$0xff]  ;;  %v74_v2 = vld [vmem:[%s5475_s20 + $0x60] sm:$0xff] }
   0xc   :  { %175 = vmatprep.subr.mxu0 %v75_v0  ;;  %282 = vmatprep.subr.mxu1 %v77_v1  ;;  %v76_v4 = vld [vmem:[%s5475_s20 + $0x70] sm:$0xff]  ;;  %v71_v5 = vld [vmem:[%s5475_s20 + $0x48] sm:$0xff]  ;;  %v73_v6 = vld [vmem:[%s5475_s20 + $0x58] sm:$0xff]  ;;  %v3645_v0 = vadd.s32 4294967295, %v3593_v54 }
   0xd   :  { %176 = vmatpush1.msra.mxu0 %v74_v2  ;;  %283 = vmatpush1.msra.mxu1 %v76_v4  ;;  %v70_v7 = vld [vmem:[%s5475_s20 + $0x40] sm:$0xff]  ;;  %v72_v8 = vld [vmem:[%s5475_s20 + $0x50] sm:$0xff]  ;;  %v67_v9 = vld [vmem:[%s5475_s20 + $0x28] sm:$0xff] }
   0xe   :  { %177 = vmatprep.subr.mxu0 %v71_v5  ;;  %284 = vmatprep.subr.mxu1 %v73_v6  ;;  %v69_v10 = vld [vmem:[%s5475_s20 + $0x38] sm:$0xff]  ;;  %v66_v11 = vld [vmem:[%s5475_s20 + $0x20] sm:$0xff]  ;;  %v68_v12 = vld [vmem:[%s5475_s20 + $0x30] sm:$0xff]  ;;  %v3648_v5 = vsub.s32 3, %v403_v59  ;;  %vm5356_vm13 = vcmp.ge.s32.totalorder %v3645_v0, 0 }
   0xf   :  { %178 = vmatpush1.msra.mxu0 %v70_v7  ;;  %285 = vmatpush1.msra.mxu1 %v72_v8  ;;  %v63_v13 = vld [vmem:[%s5475_s20 + $0x8] sm:$0xff]  ;;  %v65_v14 = vld [vmem:[%s5475_s20 + $0x18] sm:$0xff]  ;;  %v62_v15 = vld [vmem:[%s5475_s20] sm:$0xff]  ;;  %v3651_v7 = vsub.s32 2, %v403_v59 }
  0x10   :  { %179 = vmatprep.subr.mxu0 %v67_v9  ;;  %286 = vmatprep.subr.mxu1 %v69_v10  ;;  %v64_v16 = vld [vmem:[%s5475_s20 + $0x10] sm:$0xff]  ;;  %v80_v17 = vld [vmem:[%s5476_s23] sm:$0xff]  ;;  %v81_v19 = vld [vmem:[%s5476_s23 + $0x8] sm:$0xff]  ;;  %s3255_s20 = smov 30  }
  0x11   :  { %180 = vmatpush1.msra.mxu0 %v66_v11  ;;  %287 = vmatpush1.msra.mxu1 %v68_v12  ;;  %v87_v18 = vld [vmem:[%s5477_s1] sm:$0xff]  ;;  %v88_v21 = vld [vmem:[%s5477_s1 + $0x8] sm:$0xff]  ;;  %v82_v35 = vld [vmem:[%s5476_s23 + $0x10] sm:$0xff] }
  0x12   :  { %181 = vmatprep.subr.mxu0 %v63_v13  ;;  %288 = vmatprep.subr.mxu1 %v65_v14  ;;  %v83_v36 = vld [vmem:[%s5476_s23 + $0x18] sm:$0xff]  ;;  %v84_v37 = vld [vmem:[%s5476_s23 + $0x20] sm:$0xff]  ;;  %v85_v38 = vld [vmem:[%s5476_s23 + $0x28] sm:$0xff] }
  0x13   :  { %182 = vmatpush1.msra.mxu0 %v62_v15  ;;  %289 = vmatpush1.msra.mxu1 %v64_v16  ;;  %v86_v40 = vld [vmem:[%s5476_s23 + $0x30] sm:$0xff]  ;;  %v3588_v53 = vld [vmem:[%s5478_s22] sm:$0xf]  ;;  %v5483_v15 = vmov 0  ;;  %s3251_s23 = smov 96  }
  0x14   :  { %2982 = vmatmul.mubr.msk.f32.vlgmr.msra.gmra.mxu0 %vm129_vm0, %v80_v17  ;;  %2989 = vmatmul.mubr.msk.f32.vlgmr.msra.gmra.mxu1 %vm129_vm0, %v80_v17  ;;  %v607_v55 = vadd.s32 1, %v3588_v53  ;;  %v1000_v17 = vld [vmem:[%s5327_s8] sm:$0xff]  ;;  %s3252_s8 = smov 98  }
  0x15   :  { %221 = vmatprep.mubr.f32.mxu0 %v5413_v3  ;;  %328 = vmatprep.mubr.f32.mxu1 %v5413_v3 }
  0x16   :  { %96 = vperm.xlu0 %3234, %v87_v18   ;;  %vm608_vm1 = vcmp.ge.s32.totalorder %v607_v55, 0  ;;  %vm609_vm2 = vcmp.lt.s32.totalorder %v607_v55, 16 }
  0x17   :  { %vm3608_vm4 = vmand %vm608_vm1, %vm609_vm2 }
  0x18   :  { %2983 = vmatmul.mubr.msk.f32.gmra.mxu0 %vm129_vm0, %v81_v19  ;;  %2990 = vmatmul.mubr.msk.f32.gmra.mxu1 %vm129_vm0, %v81_v19  ;;  %vm691_vm6 = vmand %vm3608_vm4, %vm5349_vm3 }
  0x19   :  { %227 = vmatprep.mubr.f32.mxu0 %v5413_v3  ;;  %334 = vmatprep.mubr.f32.mxu1 %v5413_v3  ;;  %vm692_vm7 = vmand %vm691_vm6, %vm5352_vm5  ;;  %vm525_vm6 = vcmp.lt.s32.totalorder %v3588_v53, 16 }
  0x1a   :  { %101 = vperm.xlu0 %3234, %v88_v21   ;;  %v693_v61 = vsel %vm692_vm7, 1, %v5415_v20  ;;  %vm651_vm10 = vmand %vm3608_vm4, %vm5348_vm8 }
  0x1b   :  { %v701_v4 = vrot.slane %v693_v61, %v3628_v60  ;;  %v697_v6 = vrot.slane %v693_v61, %v3631_v62  ;;  %vm652_vm11 = vmand %vm651_vm10, %vm5346_vm9  ;;  %v709_v11 = vrot.slane %v693_v61, %v3648_v5  ;;  %v705_v16 = vrot.slane %v693_v61, %v3651_v7 }
  0x1c   :  { %2984 = vmatmul.mubr.msk.f32.gmra.mxu0 %vm129_vm0, %v82_v35  ;;  %2991 = vmatmul.mubr.msk.f32.gmra.mxu1 %vm129_vm0, %v82_v35  ;;  %v653_v12 = vsel %vm652_vm11, 1, %v5415_v20  ;;  %vm611_vm1 = vmand %vm3608_vm4, %vm5356_vm13  ;;  %vm524_vm4 = vcmp.ge.s32.totalorder %v3588_v53, 0  ;;  %vm5351_vm11 = vcmp.lt.s32.totalorder %v3637_v63, 112 }
  0x1d   :  { %233 = vmatprep.mubr.f32.mxu0 %v5413_v3  ;;  %340 = vmatprep.mubr.f32.mxu1 %v5413_v3  ;;  %vm3661_vm14 = vcmp.eq.s32.totalorder %v701_v4, 1  ;;  %vm3671_vm15 = vcmp.eq.s32.totalorder %v697_v6, 1  ;;  %v661_v18 = vrot.slane %v653_v12, %v3628_v60  ;;  %vm3693_vm2 = vcmp.eq.s32.totalorder %v709_v11, 1 }
  0x1e   :  { %v5484_v15 = vsel %vm3671_vm15, 4294967295, %v5483_v15  ;;  %vm3704_vm7 = vcmp.eq.s32.totalorder %v705_v16, 1  ;;  %v392_v6 = vadd.s32 4294967295, %v3588_v53  ;;  %v5504_v11 = vmov 0 }
  0x1f   :  { %vm3715_vm9 = vcmp.eq.s32.totalorder %v661_v18, 1  ;;  %v5506_v16 = vmov 0 }
  0x20   :  { %2985 = vmatmul.mubr.msk.f32.gmra.mxu0 %vm129_vm0, %v83_v36  ;;  %2992 = vmatmul.mubr.msk.f32.gmra.mxu1 %vm129_vm0, %v83_v36  ;;  %v5494_v36 = vmov 0 }
  0x21   :  { %239 = vmatprep.mubr.f32.mxu0 %v5413_v3  ;;  %346 = vmatprep.mubr.f32.mxu1 %v5413_v3 }
  0x24   :  { %2986 = vmatmul.mubr.msk.f32.gmra.mxu0 %vm129_vm0, %v84_v37  ;;  %2993 = vmatmul.mubr.msk.f32.gmra.mxu1 %vm129_vm0, %v84_v37  ;;  %v665_v37 = vrot.slane %v653_v12, %v3651_v7 }
  0x25   :  { %245 = vmatprep.mubr.f32.mxu0 %v5413_v3  ;;  %352 = vmatprep.mubr.f32.mxu1 %v5413_v3 }
  0x28   :  { %2987 = vmatmul.mubr.msk.f32.gmra.mxu0 %vm129_vm0, %v85_v38  ;;  %2994 = vmatmul.mubr.msk.f32.gmra.mxu1 %vm129_vm0, %v85_v38 }
  0x29   :  { %251 = vmatprep.mubr.f32.mxu0 %v5413_v3  ;;  %358 = vmatprep.mubr.f32.mxu1 %v5413_v3 }
  0x2c   :  { %2988 = vmatmul.mubr.msk.f32.gmra.mxu0 %vm129_vm0, %v86_v40  ;;  %2995 = vmatmul.mubr.msk.f32.gmra.mxu1 %vm129_vm0, %v86_v40  ;;  %vm5350_vm0 = vcmp.lt.s32.totalorder %v3645_v0, 16 }
  0x2d   :  { %793 = vmatprep.mubr.f32.mxu0 %v5413_v3  ;;  %864 = vmatprep.mubr.f32.mxu1 %v5413_v3  ;;  %vm612_vm10 = vmand %vm611_vm1, %vm5350_vm0 }
  0x2e   :  { %v613_v38 = vsel %vm612_vm10, 1, %v5415_v20  ;;  %vm3754_vm10 = vcmp.eq.s32.totalorder %v665_v37, 1 }
  0x2f   :  { %v629_v58 = vrot.slane %v613_v38, %v3648_v5 }
  0x91   :  { %v97_v22 = vpop.permute.xlu0 %96 }
  0x95   :  { %v102_v41 = vpop.permute.xlu0 %101 }
  0xd4   :  { %v217_v23 = vpop.f32.mrf.mxu0  ;;  %v324_v24 = vpop.f32.mrf.mxu1 }
  0xd5   :  { %v218_v25 = vadd.f32 %v217_v23, %v97_v22  ;;  %v325_v26 = vadd.f32 %v324_v24, %v97_v22  ;;  %v657_v23 = vrot.slane %v653_v12, %v3631_v62 }
  0xd6   :  { %v219_v27 = vpop.f32.mrf.mxu0  ;;  %v326_v31 = vpop.f32.mrf.mxu1 }
  0xd7   :  { %v3438_v28 = vmax.f32 %v218_v25, 0.0  ;;  %v3440_v29 = vmax.f32 %v325_v26, 0.0  ;;  %v220_v30 = vadd.f32 %v219_v27, %v97_v22  ;;  %v327_v33 = vadd.f32 %v326_v31, %v97_v22 }
  0xd8   :  { %v223_v39 = vpop.f32.mrf.mxu0  ;;  %v330_v43 = vpop.f32.mrf.mxu1  ;;  %v5487_v26 = vmov 0  ;;  %v5489_v27 = vmov 0  ;;  %v5491_v31 = vmov 0  ;;  %vm3726_vm1 = vcmp.eq.s32.totalorder %v657_v23, 1 }
  0xd9   :  { %682 = vrot.lane.b32.xlu0 %v3440_v29, %s3242_s29  ;;  %678 = vrot.lane.b32.xlu1 %v3438_v28, %s3242_s29  ;;  %v3446_v32 = vmax.f32 %v220_v30, 0.0  ;;  %v3452_v34 = vmax.f32 %v327_v33, 0.0  ;;  %v224_v42 = vadd.f32 %v223_v39, %v102_v41  ;;  %v331_v45 = vadd.f32 %v330_v43, %v102_v41  ;;  %v89_v43 = vld [vmem:[%s5477_s1 + $0x10] sm:$0xff] }
  0xda   :  { %v225_v46 = vpop.f32.mrf.mxu0  ;;  %v332_v49 = vpop.f32.mrf.mxu1  ;;  %v5488_v26 = vsel %vm3704_vm7, 4294967295, %v5487_v26  ;;  %v5490_v27 = vsel %vm3715_vm9, 4294967295, %v5489_v27  ;;  %v669_v30 = vrot.slane %v653_v12, %v3648_v5  ;;  %v5495_v36 = vsel %vm3726_vm1, 4294967295, %v5494_v36 }
  0xdb   :  { %v3541_v44 = vmax.f32 %v224_v42, 0.0  ;;  %v3547_v47 = vmax.f32 %v331_v45, 0.0  ;;  %v226_v48 = vadd.f32 %v225_v46, %v102_v41  ;;  %v333_v51 = vadd.f32 %v332_v49, %v102_v41 }
  0xdc   :  { %v5496_v41 = vmov 0  ;;  %v621_v42 = vrot.slane %v613_v38, %v3628_v60  ;;  %v617_v49 = vrot.slane %v613_v38, %v3631_v62 }
  0xdd   :  { %638 = vrot.lane.b32.xlu0 %v3438_v28, %s3243_s0  ;;  %680 = vrot.lane.b32.xlu1 %v3446_v32, %s3242_s29  ;;  %v3553_v50 = vmax.f32 %v226_v48, 0.0  ;;  %v3559_v52 = vmax.f32 %v333_v51, 0.0  ;;  %v5498_v48 = vmov 0 }
  0xde   :  { %v5499_v48 = vsel %vm3754_vm10, 4294967295, %v5498_v48  ;;  %vm3770_vm0 = vcmp.eq.s32.totalorder %v621_v42, 1 }
  0xdf   :  { %v5501_v57 = vsel %vm3770_vm0, 4294967295, %v5500_v57 }
  0xe1   :  { %642 = vrot.lane.b32.xlu0 %v3440_v29, %s3243_s0  ;;  %684 = vrot.lane.b32.xlu1 %v3452_v34, %s3242_s29 }
  0xe5   :  { %594 = vrot.lane.b32.xlu0 %v3438_v28, %s3244_s30  ;;  %640 = vrot.lane.b32.xlu1 %v3446_v32, %s3243_s0 }
  0xe9   :  { %598 = vrot.lane.b32.xlu0 %v3440_v29, %s3244_s30  ;;  %644 = vrot.lane.b32.xlu1 %v3452_v34, %s3243_s0 }
  0xed   :  { %554 = vrot.lane.b32.xlu0 %v3438_v28, %s3245_s21  ;;  %596 = vrot.lane.b32.xlu1 %v3446_v32, %s3244_s30 }
  0xf1   :  { %558 = vrot.lane.b32.xlu0 %v3440_v29, %s3245_s21  ;;  %600 = vrot.lane.b32.xlu1 %v3452_v34, %s3244_s30 }
  0xf5   :  { %511 = vrot.lane.b32.xlu0 %v3438_v28, %s3246_s3  ;;  %556 = vrot.lane.b32.xlu1 %v3446_v32, %s3245_s21 }
  0xf9   :  { %515 = vrot.lane.b32.xlu0 %v3440_v29, %s3246_s3  ;;  %560 = vrot.lane.b32.xlu1 %v3452_v34, %s3245_s21 }
  0xfd   :  { %468 = vrot.lane.b32.xlu0 %v3438_v28, %s3247_s24  ;;  %513 = vrot.lane.b32.xlu1 %v3446_v32, %s3246_s3 }
 0x101   :  { %472 = vrot.lane.b32.xlu0 %v3440_v29, %s3247_s24  ;;  %517 = vrot.lane.b32.xlu1 %v3452_v34, %s3246_s3 }
 0x105   :  { %426 = vrot.lane.b32.xlu0 %v3438_v28, %s3248_s26  ;;  %470 = vrot.lane.b32.xlu1 %v3446_v32, %s3247_s24 }
 0x109   :  { %430 = vrot.lane.b32.xlu0 %v3440_v29, %s3248_s26  ;;  %474 = vrot.lane.b32.xlu1 %v3452_v34, %s3247_s24 }
 0x10d   :  { %377 = vrot.lane.b32.xlu0 %v3438_v28, %s3249_s25  ;;  %428 = vrot.lane.b32.xlu1 %v3446_v32, %s3248_s26 }
 0x111   :  { %381 = vrot.lane.b32.xlu0 %v3440_v29, %s3249_s25  ;;  %432 = vrot.lane.b32.xlu1 %v3452_v34, %s3248_s26 }
 0x115   :  { %983 = vrot.lane.b32.xlu0 %v3541_v44, %s3242_s29  ;;  %379 = vrot.lane.b32.xlu1 %v3446_v32, %s3249_s25 }
 0x119   :  { %987 = vrot.lane.b32.xlu0 %v3547_v47, %s3242_s29  ;;  %383 = vrot.lane.b32.xlu1 %v3452_v34, %s3249_s25 }
 0x11d   :  { %967 = vrot.lane.b32.xlu0 %v3541_v44, %s3243_s0  ;;  %985 = vrot.lane.b32.xlu1 %v3553_v50, %s3242_s29 }
 0x121   :  { %971 = vrot.lane.b32.xlu0 %v3547_v47, %s3243_s0  ;;  %989 = vrot.lane.b32.xlu1 %v3559_v52, %s3242_s29 }
 0x125   :  { %951 = vrot.lane.b32.xlu0 %v3541_v44, %s3244_s30  ;;  %969 = vrot.lane.b32.xlu1 %v3553_v50, %s3243_s0 }
 0x129   :  { %955 = vrot.lane.b32.xlu0 %v3547_v47, %s3244_s30  ;;  %973 = vrot.lane.b32.xlu1 %v3559_v52, %s3243_s0 }
 0x12d   :  { %935 = vrot.lane.b32.xlu0 %v3541_v44, %s3245_s21  ;;  %953 = vrot.lane.b32.xlu1 %v3553_v50, %s3244_s30 }
 0x131   :  { %939 = vrot.lane.b32.xlu0 %v3547_v47, %s3245_s21  ;;  %957 = vrot.lane.b32.xlu1 %v3559_v52, %s3244_s30 }
 0x135   :  { %919 = vrot.lane.b32.xlu0 %v3541_v44, %s3246_s3  ;;  %937 = vrot.lane.b32.xlu1 %v3553_v50, %s3245_s21 }
 0x139   :  { %923 = vrot.lane.b32.xlu0 %v3547_v47, %s3246_s3  ;;  %941 = vrot.lane.b32.xlu1 %v3559_v52, %s3245_s21 }
 0x13d   :  { %903 = vrot.lane.b32.xlu0 %v3541_v44, %s3247_s24  ;;  %921 = vrot.lane.b32.xlu1 %v3553_v50, %s3246_s3 }
 0x141   :  { %907 = vrot.lane.b32.xlu0 %v3547_v47, %s3247_s24  ;;  %925 = vrot.lane.b32.xlu1 %v3559_v52, %s3246_s3 }
 0x145   :  { %887 = vrot.lane.b32.xlu0 %v3541_v44, %s3248_s26  ;;  %905 = vrot.lane.b32.xlu1 %v3553_v50, %s3247_s24 }
 0x149   :  { %891 = vrot.lane.b32.xlu0 %v3547_v47, %s3248_s26  ;;  %909 = vrot.lane.b32.xlu1 %v3559_v52, %s3247_s24 }
 0x14b   :  { %v683_v1 = vpop.permute.xlu0 %682  ;;  %v679_v2 = vpop.permute.xlu1 %678 }
 0x14d   :  { %871 = vrot.lane.b32.xlu0 %v3541_v44, %s3249_s25  ;;  %889 = vrot.lane.b32.xlu1 %v3553_v50, %s3248_s26 }
 0x14f   :  { %v639_v8 = vpop.permute.xlu0 %638  ;;  %v681_v9 = vpop.permute.xlu1 %680 }
 0x150   :  { %v689_v13 = vsel %vm5347_vm12, %v679_v2, %v681_v9  ;;  %v688_v14 = vsel %vm5347_vm12, %v681_v9, %v683_v1 }
 0x151   :  { %875 = vrot.lane.b32.xlu0 %v3547_v47, %s3249_s25  ;;  %893 = vrot.lane.b32.xlu1 %v3559_v52, %s3248_s26 }
 0x152   :  { %2996 = vmatprep.subr.msk.mxu0 %vm3661_vm14, %v688_v14 }
 0x153   :  { %2997 = vmatpush1.msk.msra.mxu0 %vm3671_vm15, %v689_v13  ;;  %v643_v19 = vpop.permute.xlu0 %642  ;;  %v685_v21 = vpop.permute.xlu1 %684 }
 0x154   :  { %v687_v24 = vsel %vm5347_vm12, %v683_v1, %v685_v21  ;;  %v690_v25 = vsel %vm5347_vm12, %v685_v21, %v679_v2  ;;  %vm3720_vm12 = vmand %vm524_vm4, %vm525_vm6  ;;  %vm3746_vm6 = vcmp.eq.s32.totalorder %v669_v30, 1  ;;  %v5502_v1 = vmov 0 }
 0x155   :  { %1003 = vperm.xlu0 %3234, %v1000_v17   ;;  %873 = vrot.lane.b32.xlu1 %v3553_v50, %s3249_s25  ;;  %v5492_v31 = vsel %vm3720_vm12, 4294967295, %v5491_v31  ;;  %vm567_vm4 = vmand %vm3720_vm12, %vm5349_vm3  ;;  %v5497_v41 = vsel %vm3746_vm6, 4294967295, %v5496_v41  ;;  %vm5353_vm3 = vcmp.lt.s32.totalorder %v3637_v63, 113  ;;  %v625_v2 = vrot.slane %v613_v38, %v3651_v7 }
 0x156   :  { %3013 = vmatprep.subr.msk.mxu1 %vm3693_vm2, %v690_v25  ;;  %5493 = vst [vmem:[#allocation2_spill] sm:$0xff] %v5492_v31  ;;  %vm568_vm8 = vmand %vm567_vm4, %vm5352_vm5  ;;  %v5511_v21 = vmov 0 }
 0x157   :  { %3014 = vmatpush1.msk.msra.mxu1 %vm3704_vm7, %v687_v24  ;;  %v595_v33 = vpop.permute.xlu0 %594  ;;  %v641_v35 = vpop.permute.xlu1 %640  ;;  %v569_v4 = vsel %vm568_vm8, 1, %v5415_v20  ;;  %vm527_vm4 = vmand %vm3720_vm12, %vm5356_vm13  ;;  %vm3794_vm8 = vcmp.eq.s32.totalorder %v629_v58, 1  ;;  %vm3799_vm5 = vcmp.eq.s32.totalorder %v625_v2, 1  ;;  %vm5508_vm13 = vcmp.lt.s32.totalorder %v3637_v63, 113 }
 0x158   :  { %v649_v39 = vsel %vm5351_vm11, %v639_v8, %v641_v35  ;;  %v648_v40 = vsel %vm5351_vm11, %v641_v35, %v643_v19  ;;  %v5505_v11 = vsel %vm3794_vm8, 4294967295, %v5504_v11  ;;  %v577_v12 = vrot.slane %v569_v4, %v3628_v60  ;;  %vm5509_vm12 = vmmov %vm5508_vm13 }
 0x159   :  { %877 = vrot.lane.b32.xlu1 %v3559_v52, %s3249_s25  ;;  %2998 = vmatprep.subr.msk.mxu0 %vm3715_vm9, %v648_v40  ;;  %v5507_v16 = vsel %vm3799_vm5, 4294967295, %v5506_v16  ;;  %v573_v17 = vrot.slane %v569_v4, %v3631_v62  ;;  %v585_v23 = vrot.slane %v569_v4, %v3648_v5  ;;  %v581_v35 = vrot.slane %v569_v4, %v3651_v7 }
 0x15a   :  { %2999 = vmatpush1.msk.msra.mxu0 %vm3726_vm1, %v649_v39  ;;  %vm3815_vm1 = vcmp.eq.s32.totalorder %v577_v12, 1  ;;  %v5518_v40 = vmov 0  ;;  %v5530_v4 = vmov 0 }
 0x15b   :  { %v599_v45 = vpop.permute.xlu0 %598  ;;  %v645_v46 = vpop.permute.xlu1 %644  ;;  %v5512_v21 = vsel %vm3815_vm1, 4294967295, %v5511_v21 }
 0x15c   :  { %v647_v51 = vsel %vm5351_vm11, %v643_v19, %v645_v46  ;;  %v650_v55 = vsel %vm5351_vm11, %v645_v46, %v639_v8  ;;  %vm3775_vm11 = vcmp.eq.s32.totalorder %v617_v49, 1  ;;  %v5520_v46 = vmov 0 }
 0x15d   :  { %3015 = vmatprep.subr.msk.mxu1 %vm3746_vm6, %v650_v55  ;;  %106 = vperm.xlu1 %3235, %v89_v43   ;;  %v5503_v1 = vsel %vm3775_vm11, 4294967295, %v5502_v1  ;;  %vm5371_vm6 = vcmp.lt.s32.totalorder %v3637_v63, 127 }
 0x15e   :  { %3016 = vmatpush1.msk.msra.mxu1 %vm3754_vm10, %v647_v51 }
 0x15f   :  { %v555_v59 = vpop.permute.xlu0 %554  ;;  %v597_v61 = vpop.permute.xlu1 %596 }
 0x160   :  { %v605_v8 = vsel %vm5353_vm3, %v595_v33, %v597_v61  ;;  %v604_v9 = vsel %vm5353_vm3, %v597_v61, %v599_v45  ;;  %vm393_vm3 = vcmp.ge.s32.totalorder %v392_v6, 0 }
 0x161   :  { %3000 = vmatprep.subr.msk.mxu0 %vm3770_vm0, %v604_v9  ;;  %vm394_vm0 = vcmp.lt.s32.totalorder %v392_v6, 16  ;;  %v5533_v9 = vmov 0 }
 0x162   :  { %3001 = vmatpush1.msk.msra.mxu0 %vm3775_vm11, %v605_v8  ;;  %vm5510_vm11 = vcmp.lt.s32.totalorder %v3645_v0, 16 }
 0x163   :  { %v559_v13 = vpop.permute.xlu0 %558  ;;  %v601_v14 = vpop.permute.xlu1 %600  ;;  %vm528_vm10 = vmand %vm527_vm4, %vm5510_vm11  ;;  %vm3842_vm11 = vcmp.eq.s32.totalorder %v585_v23, 1  ;;  %vm5522_vm4 = vcmp.lt.s32.totalorder %v3601_v56, 16 }
 0x164   :  { %v603_v18 = vsel %vm5508_vm13, %v599_v45, %v601_v14  ;;  %v606_v19 = vsel %vm5509_vm12, %v601_v14, %v595_v33  ;;  %vm3820_vm13 = vmand %vm393_vm3, %vm394_vm0  ;;  %vm3824_vm12 = vcmp.eq.s32.totalorder %v573_v17, 1  ;;  %v5515_v33 = vmov 0 }
 0x165   :  { %3017 = vmatprep.subr.msk.mxu1 %vm3794_vm8, %v606_v19  ;;  %v5516_v33 = vsel %vm3824_vm12, 4294967295, %v5515_v33  ;;  %v529_v37 = vsel %vm528_vm10, 1, %v5415_v20  ;;  %vm5517_vm3 = vcmp.ge.s32.totalorder %v3601_v56, 0  ;;  %v5519_v40 = vsel %vm3842_vm11, 4294967295, %v5518_v40 }
 0x166   :  { %3018 = vmatpush1.msk.msra.mxu1 %vm3799_vm5, %v603_v18  ;;  %vm483_vm0 = vmand %vm3820_vm13, %vm5517_vm3  ;;  %v537_v42 = vrot.slane %v529_v37, %v3628_v60  ;;  %vm3848_vm10 = vcmp.eq.s32.totalorder %v581_v35, 1  ;;  %v545_v55 = vrot.slane %v529_v37, %v3648_v5  ;;  %v5537_v17 = vmov 0 }
 0x167   :  { %v512_v25 = vpop.permute.xlu0 %511  ;;  %v557_v30 = vpop.permute.xlu1 %556  ;;  %v5521_v46 = vsel %vm3848_vm10, 4294967295, %v5520_v46  ;;  %vm485_vm3 = vmand %vm483_vm0, %vm5522_vm4  ;;  %vm5526_vm0 = vcmp.ge.s32.totalorder %v3593_v54, 0 }
 0x168   :  { %v565_v38 = vsel %vm5371_vm6, %v555_v59, %v557_v30  ;;  %v564_v39 = vsel %vm5371_vm6, %v557_v30, %v559_v13  ;;  %v486_v61 = vsel %vm485_vm3, 1, %v5415_v20  ;;  %vm440_vm4 = vmand %vm3820_vm13, %vm5526_vm0  ;;  %vm5536_vm0 = vcmp.lt.s32.totalorder %v3593_v54, 16 }
 0x169   :  { %3002 = vmatprep.subr.msk.mxu0 %vm3815_vm1, %v564_v39  ;;  %vm3864_vm1 = vcmp.eq.s32.totalorder %v537_v42, 1  ;;  %v490_v18 = vrot.slane %v486_v61, %v3631_v62  ;;  %v502_v19 = vrot.slane %v486_v61, %v3648_v5  ;;  %v498_v30 = vrot.slane %v486_v61, %v3651_v7 }
 0x16a   :  { %3003 = vmatpush1.msk.msra.mxu0 %vm3824_vm12, %v565_v38  ;;  %vm5380_vm12 = vcmp.lt.s32.totalorder %v3637_v63, 1  ;;  %v5541_v38 = vmov 0  ;;  %v5544_v39 = vmov 0 }
 0x16b   :  { %v516_v43 = vpop.permute.xlu0 %515  ;;  %751 = vmatprep.subr.mxu0 %v3446_v32  ;;  %v561_v45 = vpop.permute.xlu1 %560  ;;  %v5523_v32 = vmov 0 }
 0x16c   :  { %v563_v49 = vsel %vm5371_vm6, %v559_v13, %v561_v45  ;;  %752 = vmatpush1.msra.mxu0 %v3438_v28  ;;  %v566_v51 = vsel %vm5371_vm6, %v561_v45, %v555_v59  ;;  %v5524_v32 = vsel %vm3864_vm1, 4294967295, %v5523_v32  ;;  %v533_v28 = vrot.slane %v529_v37, %v3631_v62 }
 0x16d   :  { %3019 = vmatprep.subr.msk.mxu1 %vm3842_vm11, %v566_v51  ;;  %5525 = vst [vmem:[#allocation3_spill] sm:$0xff] %v5524_v32  ;;  %v541_v59 = vrot.slane %v529_v37, %v3651_v7  ;;  %vm5387_vm11 = vcmp.lt.s32.totalorder %v3637_v63, 15 }
 0x16e   :  { %3020 = vmatpush1.msk.msra.mxu1 %vm3848_vm10, %v563_v49  ;;  %vm3882_vm6 = vcmp.eq.s32.totalorder %v533_v28, 1  ;;  %vm3886_vm10 = vcmp.eq.s32.totalorder %v545_v55, 1  ;;  %v5547_v49 = vmov 0  ;;  %v5551_v55 = vmov 0 }
 0x16f   :  { %v469_v58 = vpop.permute.xlu0 %468  ;;  %822 = vmatprep.subr.mxu1 %v3452_v34  ;;  %v514_v56 = vpop.permute.xlu1 %513  ;;  %v5527_v34 = vmov 0  ;;  %v5531_v4 = vsel %vm3886_vm10, 4294967295, %v5530_v4  ;;  %vm3891_vm3 = vcmp.eq.s32.totalorder %v541_v59, 1 }
 0x170   :  { %823 = vmatpush1.msra.mxu1 %v3440_v29  ;;  %v522_v2 = vsel %vm5380_vm12, %v512_v25, %v514_v56  ;;  %v5528_v34 = vsel %vm3882_vm6, 4294967295, %v5527_v34  ;;  %5532 = vst [vmem:[#allocation5_spill] sm:$0xff] %v5531_v4  ;;  %v494_v29 = vrot.slane %v486_v61, %v3628_v60  ;;  %v5534_v9 = vsel %vm3891_vm3, 4294967295, %v5533_v9 }
 0x171   :  { %3004 = vmatprep.subr.msk.mxu0 %vm3864_vm1, %v522_v2  ;;  %5529 = vst [vmem:[#allocation4_spill] sm:$0xff] %v5528_v34  ;;  %5535 = vst [vmem:[#allocation6_spill] sm:$0xff] %v5534_v9  ;;  %v521_v14 = vsel %vm5380_vm12, %v514_v56, %v516_v43 }
 0x172   :  { %vm442_vm1 = vmand %vm440_vm4, %vm5536_vm0  ;;  %vm3910_vm5 = vcmp.eq.s32.totalorder %v494_v29, 1  ;;  %vm5540_vm4 = vcmp.ge.s32.totalorder %v3645_v0, 0 }
 0x173   :  { %v473_v6 = vpop.permute.xlu0 %472  ;;  %v518_v8 = vpop.permute.xlu1 %517  ;;  %v5538_v17 = vsel %vm3910_vm5, 4294967295, %v5537_v17  ;;  %v443_v35 = vsel %vm442_vm1, 1, %v5415_v20  ;;  %vm398_vm0 = vmand %vm3820_vm13, %vm5540_vm4  ;;  %vm3935_vm1 = vcmp.eq.s32.totalorder %v498_v30, 1  ;;  %vm5550_vm13 = vcmp.lt.s32.totalorder %v3645_v0, 16 }
 0x174   :  { %v523_v12 = vsel %vm5380_vm12, %v518_v8, %v512_v25  ;;  %v520_v13 = vsel %vm5380_vm12, %v516_v43, %v518_v8  ;;  %5539 = vst [vmem:[#allocation7_spill] sm:$0xff] %v5538_v17  ;;  %vm3926_vm12 = vcmp.eq.s32.totalorder %v490_v18, 1  ;;  %v451_v42 = vrot.slane %v443_v35, %v3628_v60  ;;  %vm400_vm4 = vmand %vm398_vm0, %vm5550_vm13 }
 0x175   :  { %3005 = vmatpush1.msk.msra.mxu0 %vm3882_vm6, %v523_v12  ;;  %3021 = vmatprep.subr.msk.mxu1 %vm3886_vm10, %v520_v13  ;;  %v5542_v38 = vsel %vm3926_vm12, 4294967295, %v5541_v38  ;;  %v5548_v49 = vsel %vm3935_vm1, 4294967295, %v5547_v49  ;;  %v447_v0 = vrot.slane %v443_v35, %v3631_v62  ;;  %v455_v61 = vrot.slane %v443_v35, %v3651_v7 }
 0x176   :  { %3022 = vmatpush1.msk.msra.mxu1 %vm3891_vm3, %v521_v14  ;;  %5543 = vst [vmem:[#allocation8_spill] sm:$0xff] %v5542_v38  ;;  %vm3930_vm3 = vcmp.eq.s32.totalorder %v502_v19, 1  ;;  %5549 = vst [vmem:[#allocation10_spill] sm:$0xff] %v5548_v49  ;;  %vm3954_vm10 = vcmp.eq.s32.totalorder %v451_v42, 1  ;;  %v401_v2 = vsel %vm400_vm4, 1, %v5415_v20  ;;  %v5557_v8 = vmov 0 }
 0x177   :  { %v427_v23 = vpop.permute.xlu0 %426  ;;  %v471_v25 = vpop.permute.xlu1 %470  ;;  %v5545_v39 = vsel %vm3930_vm3, 4294967295, %v5544_v39  ;;  %v5552_v55 = vsel %vm3954_vm10, 4294967295, %v5551_v55  ;;  %vm3966_vm0 = vcmp.eq.s32.totalorder %v447_v0, 1  ;;  %v409_v12 = vrot.slane %v401_v2, %v3628_v60  ;;  %v3236_v38 = vld [vmem:[%s5326_s2] sm:$0xf] }
 0x178   :  { %v479_v37 = vsel %vm5387_vm11, %v469_v58, %v471_v25  ;;  %5546 = vst [vmem:[#allocation9_spill] sm:$0xff] %v5545_v39  ;;  %v478_v28 = vsel %vm5387_vm11, %v471_v25, %v473_v6  ;;  %5553 = vst [vmem:[#allocation11_spill] sm:$0xff] %v5552_v55  ;;  %v5560_v18 = vmov 0  ;;  %vm5395_vm4 = vcmp.lt.s32.totalorder %v3637_v63, 17 }
 0x179   :  { %3006 = vmatprep.subr.msk.mxu0 %vm3910_vm5, %v479_v37  ;;  %vm5390_vm5 = vcmp.lt.s32.totalorder %v3637_v63, 16  ;;  %v417_v37 = vrot.slane %v401_v2, %v3648_v5 }
 0x17b   :  { %v431_v43 = vpop.permute.xlu0 %430  ;;  %v475_v45 = vpop.permute.xlu1 %474 }
 0x17c   :  { %v480_v24 = vsel %vm5387_vm11, %v475_v45, %v469_v58  ;;  %v477_v51 = vsel %vm5387_vm11, %v473_v6, %v475_v45  ;;  %v459_v58 = vrot.slane %v443_v35, %v3648_v5  ;;  %v5554_v6 = vmov 0 }
 0x17d   :  { %3007 = vmatpush1.msk.msra.mxu0 %vm3926_vm12, %v480_v24  ;;  %3023 = vmatprep.subr.msk.mxu1 %vm3930_vm3, %v477_v51  ;;  %v5555_v6 = vsel %vm3966_vm0, 4294967295, %v5554_v6  ;;  %vm3975_vm11 = vcmp.eq.s32.totalorder %v455_v61, 1  ;;  %v5563_v35 = vmov 0  ;;  %v413_v45 = vrot.slane %v401_v2, %v3651_v7  ;;  %v718_v61 = vld [vmem:[%s5328_s5] sm:$0xff]  ;;  %s3256_s5 = smov 32  }
 0x17e   :  { %3024 = vmatpush1.msk.msra.mxu1 %vm3935_vm1, %v478_v28  ;;  %5556 = vst [vmem:[#allocation12_spill] sm:$0xff] %v5555_v6  ;;  %vm3970_vm13 = vcmp.eq.s32.totalorder %v459_v58, 1  ;;  %v5561_v18 = vsel %vm3975_vm11, 4294967295, %v5560_v18  ;;  %v5566_v51 = vmov 0  ;;  %v5569_v28 = vmov 0 }
 0x17f   :  { %v378_v56 = vpop.permute.xlu0 %377  ;;  %v429_v59 = vpop.permute.xlu1 %428  ;;  %v5558_v8 = vsel %vm3970_vm13, 4294967295, %v5557_v8  ;;  %5562 = vst [vmem:[#allocation14_spill] sm:$0xff] %v5561_v18 }
 0x180   :  { %v437_v29 = vsel %vm5390_vm5, %v427_v23, %v429_v59  ;;  %5559 = vst [vmem:[#allocation13_spill] sm:$0xff] %v5558_v8  ;;  %v436_v30 = vsel %vm5390_vm5, %v429_v59, %v431_v43  ;;  %v5572_v59 = vmov 0 }
 0x181   :  { %3008 = vmatprep.subr.msk.mxu0 %vm3954_vm10, %v437_v29  ;;  %vm3992_vm10 = vcmp.eq.s32.totalorder %v409_v12, 1 }
 0x182   :  { %v5564_v35 = vsel %vm3992_vm10, 4294967295, %v5563_v35 }
 0x183   :  { %v382_v13 = vpop.permute.xlu0 %381  ;;  %v433_v14 = vpop.permute.xlu1 %432  ;;  %5565 = vst [vmem:[#allocation15_spill] sm:$0xff] %v5564_v35 }
 0x184   :  { %v438_v19 = vsel %vm5390_vm5, %v433_v14, %v427_v23  ;;  %v435_v25 = vsel %vm5390_vm5, %v431_v43, %v433_v14  ;;  %v405_v23 = vrot.slane %v401_v2, %v3631_v62 }
 0x185   :  { %3009 = vmatpush1.msk.msra.mxu0 %vm3966_vm0, %v438_v19  ;;  %3025 = vmatprep.subr.msk.mxu1 %vm3970_vm13, %v435_v25  ;;  %vm4011_vm13 = vcmp.eq.s32.totalorder %v413_v45, 1 }
 0x186   :  { %3026 = vmatpush1.msk.msra.mxu1 %vm3975_vm11, %v436_v30  ;;  %vm4003_vm5 = vcmp.eq.s32.totalorder %v405_v23, 1  ;;  %vm4007_vm11 = vcmp.eq.s32.totalorder %v417_v37, 1  ;;  %v5573_v59 = vsel %vm4011_vm13, 4294967295, %v5572_v59 }
 0x187   :  { %v984_v42 = vpop.permute.xlu0 %983  ;;  %v380_v43 = vpop.permute.xlu1 %379  ;;  %v5567_v51 = vsel %vm4003_vm5, 4294967295, %v5566_v51  ;;  %v5570_v28 = vsel %vm4007_vm11, 4294967295, %v5569_v28  ;;  %5574 = vst [vmem:[#allocation18_spill] sm:$0xff] %v5573_v59 }
 0x188   :  { %v390_v24 = vsel %vm5395_vm4, %v378_v56, %v380_v43  ;;  %5568 = vst [vmem:[#allocation16_spill] sm:$0xff] %v5567_v51  ;;  %5571 = vst [vmem:[#allocation17_spill] sm:$0xff] %v5570_v28  ;;  %vm5402_vm4 = vcmask 588800   ;;  %v1378_v28 = vadd.s32 2, %v3588_v53  ;;  %v4362_v51 = vadd.s32 2, %v3593_v54 }
 0x189   :  { %3010 = vmatprep.subr.msk.mxu0 %vm3992_vm10, %v390_v24  ;;  %vm5575_vm10 = vcmp.lt.s32.totalorder %v3637_v63, 17 }
 0x18a   :  { %vm5576_vm0 = vmmov %vm5575_vm10 }
 0x18b   :  { %v988_v0 = vpop.permute.xlu0 %987  ;;  %v384_v58 = vpop.permute.xlu1 %383  ;;  %vm5577_vm1 = vmmov %vm5576_vm0 }
 0x18c   :  { %v391_v2 = vsel %vm5575_vm10, %v384_v58, %v378_v56  ;;  %v388_v29 = vsel %vm5576_vm0, %v382_v13, %v384_v58  ;;  %v389_v12 = vsel %vm5577_vm1, %v380_v43, %v382_v13  ;;  %vm5578_vm10 = vcmp.lt.s32.totalorder %v3637_v63, 111 }
 0x18d   :  { %3011 = vmatpush1.msk.msra.mxu0 %vm4003_vm5, %v391_v2  ;;  %3027 = vmatprep.subr.msk.mxu1 %vm4007_vm11, %v388_v29  ;;  %vm5579_vm1 = vmmov %vm5578_vm10 }
 0x18e   :  { %3028 = vmatpush1.msk.msra.mxu1 %vm4011_vm13, %v389_v12  ;;  %3012 = vmatmul.mubr.msk.f32.vlgmr.msra.gmra.mxu0 %vm5402_vm4, %v718_v61  ;;  %vm5580_vm0 = vmmov %vm5579_vm1 }
 0x18f   :  { %v968_v14 = vpop.permute.xlu0 %967  ;;  %v986_v19 = vpop.permute.xlu1 %985  ;;  %3029 = vmatmul.mubr.msk.f32.vlgmr.msra.gmra.mxu1 %vm5402_vm4, %v718_v61  ;;  %1073 = vmatprep.mubr.f32.mxu0 %v5413_v3  ;;  %vm5581_vm4 = vmmov %vm5580_vm0 }
 0x190   :  { %v993_v56 = vsel %vm5578_vm10, %v984_v42, %v986_v19  ;;  %v992_v13 = vsel %vm5579_vm1, %v986_v19, %v988_v0  ;;  %1144 = vmatprep.mubr.f32.mxu1 %v5413_v3  ;;  %vm5582_vm10 = vcmp.lt.s32.totalorder %v3637_v63, 112 }
 0x191   :  { %3030 = vmatprep.subr.msk.mxu0 %vm3661_vm14, %v992_v13  ;;  %vm5583_vm1 = vmmov %vm5582_vm10 }
 0x192   :  { %3031 = vmatpush1.msk.msra.mxu0 %vm3671_vm15, %v993_v56  ;;  %vm5587_vm15 = vnez %v5497_v41 }
 0x193   :  { %v972_v25 = vpop.permute.xlu0 %971  ;;  %v990_v30 = vpop.permute.xlu1 %989 }
 0x194   :  { %v991_v23 = vsel %vm5580_vm0, %v988_v0, %v990_v30  ;;  %v994_v37 = vsel %vm5581_vm4, %v990_v30, %v984_v42  ;;  %vm5584_vm0 = vnez %v5495_v36  ;;  %vm5585_vm4 = vmmov %vm5583_vm1 }
 0x195   :  { %3047 = vmatprep.subr.msk.mxu1 %vm3693_vm2, %v994_v37 }
 0x196   :  { %3048 = vmatpush1.msk.msra.mxu1 %vm3704_vm7, %v991_v23  ;;  %vm5586_vm7 = vmmov %vm5583_vm1 }
 0x197   :  { %v952_v43 = vpop.permute.xlu0 %951  ;;  %v970_v45 = vpop.permute.xlu1 %969 }
 0x198   :  { %v977_v24 = vsel %vm5582_vm10, %v968_v14, %v970_v45  ;;  %v976_v58 = vsel %vm5583_vm1, %v970_v45, %v972_v25  ;;  %vm5588_vm10 = vnez %v5499_v48  ;;  %vm5589_vm1 = vcmp.lt.s32.totalorder %v3637_v63, 113 }
 0x199   :  { %3032 = vmatprep.subr.msk.mxu0 %vm3715_vm9, %v976_v58  ;;  %vm5591_vm9 = vnez %v5501_v57 }
 0x19a   :  { %3033 = vmatpush1.msk.msra.mxu0 %vm5584_vm0, %v977_v24  ;;  %vm5590_vm0 = vmmov %vm5589_vm1 }
 0x19b   :  { %v956_v42 = vpop.permute.xlu0 %955  ;;  %v974_v0 = vpop.permute.xlu1 %973 }
 0x19c   :  { %v975_v61 = vsel %vm5585_vm4, %v972_v25, %v974_v0  ;;  %v978_v2 = vsel %vm5586_vm7, %v974_v0, %v968_v14  ;;  %vm5592_vm4 = vnez %v5503_v1  ;;  %vm5593_vm7 = vmmov %vm5590_vm0 }
 0x19d   :  { %3049 = vmatprep.subr.msk.mxu1 %vm5587_vm15, %v978_v2 }
 0x19e   :  { %3050 = vmatpush1.msk.msra.mxu1 %vm5588_vm10, %v975_v61  ;;  %vm5594_vm10 = vmmov %vm5590_vm0 }
 0x19f   :  { %v936_v29 = vpop.permute.xlu0 %935  ;;  %v954_v12 = vpop.permute.xlu1 %953 }
 0x1a0   :  { %v961_v19 = vsel %vm5589_vm1, %v952_v43, %v954_v12  ;;  %v960_v56 = vsel %vm5590_vm0, %v954_v12, %v956_v42  ;;  %vm5595_vm1 = vnez %v5507_v16  ;;  %vm5596_vm0 = vcmp.lt.s32.totalorder %v3637_v63, 127 }
 0x1a1   :  { %3034 = vmatprep.subr.msk.mxu0 %vm5591_vm9, %v960_v56  ;;  %vm5598_vm9 = vnez %v5512_v21 }
 0x1a2   :  { %3035 = vmatpush1.msk.msra.mxu0 %vm5592_vm4, %v961_v19  ;;  %vm5597_vm4 = vmmov %vm5596_vm0 }
 0x1a3   :  { %v940_v14 = vpop.permute.xlu0 %939  ;;  %v958_v13 = vpop.permute.xlu1 %957 }
 0x1a4   :  { %v959_v25 = vsel %vm5593_vm7, %v956_v42, %v958_v13  ;;  %v962_v30 = vsel %vm5594_vm10, %v958_v13, %v952_v43  ;;  %vm5599_vm7 = vnez %v5516_v33  ;;  %vm5600_vm10 = vmmov %vm5596_vm0 }
 0x1a5   :  { %3051 = vmatprep.subr.msk.mxu1 %vm3794_vm8, %v962_v30 }
 0x1a6   :  { %3052 = vmatpush1.msk.msra.mxu1 %vm5595_vm1, %v959_v25  ;;  %vm5602_vm1 = vnez %v5521_v46 }
 0x1a7   :  { %v920_v23 = vpop.permute.xlu0 %919  ;;  %v938_v37 = vpop.permute.xlu1 %937 }
 0x1a8   :  { %v945_v45 = vsel %vm5596_vm0, %v936_v29, %v938_v37  ;;  %v944_v24 = vsel %vm5597_vm4, %v938_v37, %v940_v14  ;;  %vm5601_vm4 = vnez %v5519_v40 }
 0x1a9   :  { %3036 = vmatprep.subr.msk.mxu0 %vm5598_vm9, %v944_v24  ;;  %vm5608_vm9 = vnez %v5531_v4 }
 0x1aa   :  { %3037 = vmatpush1.msk.msra.mxu0 %vm5599_vm7, %v945_v45  ;;  %vm5603_vm7 = vcmp.lt.s32.totalorder %v3637_v63, 1 }
 0x1ab   :  { %v924_v43 = vpop.permute.xlu0 %923  ;;  %1031 = vmatprep.subr.mxu0 %v3553_v50  ;;  %v942_v58 = vpop.permute.xlu1 %941 }
 0x1ac   :  { %v943_v42 = vsel %vm5600_vm10, %v940_v14, %v942_v58  ;;  %1032 = vmatpush1.msra.mxu0 %v3541_v44  ;;  %v946_v0 = vsel %vm5596_vm0, %v942_v58, %v936_v29  ;;  %vm5604_vm10 = vnez %v5524_v32  ;;  %vm5605_vm0 = vmmov %vm5603_vm7 }
 0x1ad   :  { %3053 = vmatprep.subr.msk.mxu1 %vm5601_vm4, %v946_v0  ;;  %vm5606_vm4 = vmmov %vm5605_vm0 }
 0x1ae   :  { %3054 = vmatpush1.msk.msra.mxu1 %vm5602_vm1, %v943_v42  ;;  %vm5607_vm1 = vmmov %vm5605_vm0 }
 0x1af   :  { %v904_v61 = vpop.permute.xlu0 %903  ;;  %1102 = vmatprep.subr.mxu1 %v3559_v52  ;;  %v922_v2 = vpop.permute.xlu1 %921 }
 0x1b0   :  { %1103 = vmatpush1.msra.mxu1 %v3547_v47  ;;  %v929_v50 = vsel %vm5603_vm7, %v920_v23, %v922_v2  ;;  %v928_v52 = vsel %vm5607_vm1, %v922_v2, %v924_v43  ;;  %vm5609_vm7 = vnez %v5534_v9  ;;  %v4397_v9 = vadd.s32 4294967294, %v3236_v38 }
 0x1b1   :  { %3038 = vmatprep.subr.msk.mxu0 %vm5604_vm10, %v929_v50  ;;  %vm5610_vm10 = vcmp.lt.s32.totalorder %v3637_v63, 15 }
 0x1b2   :  { %vm5612_vm1 = vmmov %vm5610_vm10 }
 0x1b3   :  { %v908_v44 = vpop.permute.xlu0 %907  ;;  %v926_v29 = vpop.permute.xlu1 %925 }
 0x1b4   :  { %v930_v12 = vsel %vm5605_vm0, %v926_v29, %v920_v23  ;;  %v927_v19 = vsel %vm5606_vm4, %v924_v43, %v926_v29  ;;  %vm5611_vm0 = vnez %v5538_v17  ;;  %vm5613_vm4 = vmmov %vm5612_vm1 }
 0x1b5   :  { %3039 = vmatpush1.msk.msra.mxu0 %vm3882_vm6, %v930_v12  ;;  %3055 = vmatprep.subr.msk.mxu1 %vm5608_vm9, %v927_v19  ;;  %vm5614_vm9 = vmmov %vm5612_vm1  ;;  %v999_v12 = vld [vmem:[%s5329_s7] sm:$0xff]  ;;  %s3250_s7 = smov 94  }
 0x1b6   :  { %3056 = vmatpush1.msk.msra.mxu1 %vm5609_vm7, %v928_v52  ;;  %vm5616_vm7 = vcmp.lt.s32.totalorder %v3637_v63, 16 }
 0x1b7   :  { %v906_v47 = vpop.permute.xlu1 %905  ;;  %v888_v14 = vpop.permute.xlu0 %887 }
 0x1b8   :  { %v913_v56 = vsel %vm5610_vm10, %v904_v61, %v906_v47  ;;  %v912_v23 = vsel %vm5614_vm9, %v906_v47, %v908_v44  ;;  %vm5615_vm10 = vnez %v5548_v49  ;;  %vm5618_vm9 = vmmov %vm5616_vm7 }
 0x1b9   :  { %3040 = vmatprep.subr.msk.mxu0 %vm5611_vm0, %v913_v56  ;;  %v229_v56 = vpop.f32.mrf.mxu0 }
 0x1bb   :  { %v910_v13 = vpop.permute.xlu1 %909  ;;  %v892_v37 = vpop.permute.xlu0 %891 }
 0x1bc   :  { %v914_v25 = vsel %vm5612_vm1, %v910_v13, %v904_v61  ;;  %v911_v30 = vsel %vm5613_vm4, %v908_v44, %v910_v13  ;;  %vm5617_vm1 = vnez %v5552_v55  ;;  %vm5619_vm4 = vmmov %vm5616_vm7  ;;  %v231_v13 = vpop.f32.mrf.mxu0 }
 0x1bd   :  { %3041 = vmatpush1.msk.msra.mxu0 %vm3926_vm12, %v914_v25  ;;  %3057 = vmatprep.subr.msk.mxu1 %vm3930_vm3, %v911_v30  ;;  %vm5620_vm3 = vmmov %vm5619_vm4  ;;  %vm5622_vm12 = vnez %v5558_v8 }
 0x1be   :  { %3058 = vmatpush1.msk.msra.mxu1 %vm5615_vm10, %v912_v23  ;;  %vm5621_vm10 = vnez %v5555_v6  ;;  %v5658_v6 = vmov 0  }
 0x1bf   :  { %v890_v45 = vpop.permute.xlu1 %889  ;;  %v872_v0 = vpop.permute.xlu0 %871 }
 0x1c0   :  { %v897_v24 = vsel %vm5616_vm7, %v888_v14, %v890_v45  ;;  %v896_v61 = vsel %vm5620_vm3, %v890_v45, %v892_v37  ;;  %vm5623_vm7 = vnez %v5561_v18 }
 0x1c1   :  { %3042 = vmatprep.subr.msk.mxu0 %vm5617_vm1, %v897_v24  ;;  %vm5624_vm1 = vcmp.lt.s32.totalorder %v3637_v63, 17 }
 0x1c2   :  { %vm5626_vm3 = vmmov %vm5624_vm1 }
 0x1c3   :  { %v894_v43 = vpop.permute.xlu1 %893  ;;  %v876_v44 = vpop.permute.xlu0 %875 }
 0x1c4   :  { %v898_v58 = vsel %vm5618_vm9, %v894_v43, %v888_v14  ;;  %v895_v42 = vsel %vm5619_vm4, %v892_v37, %v894_v43  ;;  %vm5625_vm9 = vnez %v5564_v35  ;;  %vm5627_vm4 = vmmov %vm5624_vm1  ;;  %v336_v14 = vpop.f32.mrf.mxu1 }
 0x1c5   :  { %3043 = vmatpush1.msk.msra.mxu0 %vm5621_vm10, %v898_v58  ;;  %3059 = vmatprep.subr.msk.mxu1 %vm5622_vm12, %v895_v42 }
 0x1c6   :  { %3060 = vmatpush1.msk.msra.mxu1 %vm5623_vm7, %v896_v61  ;;  %vm5628_vm7 = vmmov %vm5624_vm1  ;;  %v338_v25 = vpop.f32.mrf.mxu1  ;;  %v4225_v61 = vpop.f32.mrf.mxu0 }
 0x1c7   :  { %v874_v2 = vpop.permute.xlu1 %873  ;;  %5632 = vst [vmem:[#allocation20_spill] sm:$0xff] %v4225_v61  ;;  %v1770_v61 = vld [vmem:[%s5330_s12] sm:$0xff] }
 0x1c8   :  { %v881_v50 = vsel %vm5624_vm1, %v872_v0, %v874_v2  ;;  %v880_v47 = vsel %vm5628_vm7, %v874_v2, %v876_v44  ;;  %vm5629_vm1 = vcmask 588800   ;;  %v4227_v2 = vpop.f32.mrf.mxu1  ;;  %vm1379_vm7 = vcmp.ge.s32.totalorder %v1378_v28, 0 }
 0x1c9   :  { %3044 = vmatprep.subr.msk.mxu0 %vm5625_vm9, %v881_v50  ;;  %vm5630_vm9 = vmmov %vm5629_vm1  ;;  %5633 = vst [vmem:[#allocation21_spill] sm:$0xff] %v4227_v2  ;;  %v4229_v50 = vpop.f32.mrf.mxu0 }
 0x1ca   :  { %5634 = vst [vmem:[#allocation22_spill] sm:$0xff] %v4229_v50 }
 0x1cb   :  { %v878_v29 = vpop.permute.xlu1 %877 }
 0x1cc   :  { %v882_v19 = vsel %vm5626_vm3, %v878_v29, %v872_v0  ;;  %v879_v52 = vsel %vm5627_vm4, %v876_v44, %v878_v29  ;;  %v4231_v44 = vpop.f32.mrf.mxu1  ;;  %v4233_v29 = vpop.f32.mrf.mxu0  ;;  %vm5454_vm3 = vcmp.ge.s32.totalorder %v4362_v51, 0 }
 0x1cd   :  { %3045 = vmatpush1.msk.msra.mxu0 %vm4003_vm5, %v882_v19  ;;  %3061 = vmatprep.subr.msk.mxu1 %vm4007_vm11, %v879_v52  ;;  %5635 = vst [vmem:[#allocation23_spill] sm:$0xff] %v4231_v44  ;;  %5636 = vst [vmem:[#allocation24_spill] sm:$0xff] %v4233_v29 }
 0x1ce   :  { %3046 = vmatmul.mubr.msk.f32.vlgmr.msra.gmra.mxu0 %vm5629_vm1, %v999_v12  ;;  %3062 = vmatpush1.msk.msra.mxu1 %vm4011_vm13, %v880_v47  ;;  %v4237_v19 = vpop.f32.mrf.mxu0  ;;  %vm5453_vm1 = vcmp.lt.s32.totalorder %v4362_v51, 16 }
 0x1cf   :  { %3063 = vmatmul.mubr.msk.f32.vlgmr.msra.gmra.mxu1 %vm5630_vm9, %v999_v12  ;;  %1563 = vmatprep.mubr.f32.mxu0 %v5413_v3  ;;  %v4235_v12 = vpop.f32.mrf.mxu1  ;;  %5638 = vst [vmem:[#allocation26_spill] sm:$0xff] %v4237_v19  ;;  %vm1380_vm9 = vcmp.lt.s32.totalorder %v1378_v28, 16 }
 0x1d0   :  { %1634 = vmatprep.mubr.f32.mxu1 %v5413_v3  ;;  %5637 = vst [vmem:[#allocation25_spill] sm:$0xff] %v4235_v12  ;;  %v4241_v47 = vpop.f32.mrf.mxu0  ;;  %vm4369_vm4 = vmand %vm1379_vm7, %vm1380_vm9  ;;  %vm5660_vm7 = vcmp.ge.s32.totalorder %v3593_v54, 0 }
 0x1d1   :  { %v4239_v52 = vpop.f32.mrf.mxu1  ;;  %5640 = vst [vmem:[#allocation28_spill] sm:$0xff] %v4241_v47  ;;  %vm1462_vm13 = vmand %vm4369_vm4, %vm5454_vm3  ;;  %vm5464_vm3 = vcmp.ge.s32.totalorder %v4397_v9, 0 }
 0x1d2   :  { %5639 = vst [vmem:[#allocation27_spill] sm:$0xff] %v4239_v52  ;;  %vm1463_vm11 = vmand %vm1462_vm13, %vm5453_vm1 }
 0x1d3   :  { %v1464_v49 = vsel %vm1463_vm11, 1, %v5658_v6  ;;  %vm1422_vm9 = vmand %vm4369_vm4, %vm5660_vm7  ;;  %vm5661_vm11 = vcmp.lt.s32.totalorder %v3593_v54, 16  ;;  %vm1457_vm7 = vcmp.lt.s32.totalorder %v3637_v63, 94 }
 0x1d4   :  { %v1472_v39 = vrot.slane %v1464_v49, %v3628_v60  ;;  %v1480_v4 = vrot.slane %v1464_v49, %v3648_v5  ;;  %vm1423_vm13 = vmand %vm1422_vm9, %vm5661_vm11  ;;  %v1476_v34 = vrot.slane %v1464_v49, %v3651_v7  ;;  %vm5462_vm11 = vcmp.lt.s32.totalorder %v4397_v9, 16 }
 0x1d5   :  { %v1424_v38 = vsel %vm1423_vm13, 1, %v5658_v6  ;;  %vm1382_vm10 = vmand %vm4369_vm4, %vm5464_vm3 }
 0x1d6   :  { %vm1482_vm1 = vcmp.eq.s32.totalorder %v1472_v39, 1  ;;  %vm1484_vm12 = vcmp.eq.s32.totalorder %v1480_v4, 1  ;;  %vm1483_vm9 = vcmp.eq.s32.totalorder %v1476_v34, 1  ;;  %v1428_v34 = vrot.slane %v1424_v38, %v3631_v62 }
 0x1d8   :  { %v107_v30 = vpop.permute.xlu1 %106  ;;  %vm1441_vm13 = vcmp.eq.s32.totalorder %v1428_v34, 1 }
 0x1d9   :  { %v230_v23 = vadd.f32 %v229_v56, %v107_v30  ;;  %v232_v37 = vadd.f32 %v231_v13, %v107_v30  ;;  %v337_v45 = vadd.f32 %v336_v14, %v107_v30  ;;  %v339_v24 = vadd.f32 %v338_v25, %v107_v30  ;;  %v4243_v56 = vpop.f32.mrf.mxu1  ;;  %v4245_v14 = vpop.f32.mrf.mxu0 }
 0x1da   :  { %5641 = vst [vmem:[#allocation29_spill] sm:$0xff] %v4243_v56  ;;  %5642 = vst [vmem:[#allocation30_spill] sm:$0xff] %v4245_v14  ;;  %v1004_v56 = vpop.permute.xlu0 %1003 }
 0x1db   :  { %v4173_v43 = vmax.f32 %v230_v23, 0.0  ;;  %v4175_v58 = vmax.f32 %v232_v37, 0.0  ;;  %v4177_v42 = vmax.f32 %v337_v45, 0.0  ;;  %v4179_v0 = vmax.f32 %v339_v24, 0.0  ;;  %v4247_v13 = vpop.f32.mrf.mxu1  ;;  %v4249_v25 = vpop.f32.mrf.mxu0 }
 0x1dc   :  { %5643 = vst [vmem:[#allocation31_spill] sm:$0xff] %v4247_v13  ;;  %5644 = vst [vmem:[#allocation32_spill] sm:$0xff] %v4249_v25 }
 0x1dd   :  { %5631 = vst [vmem:[#allocation19_spill] sm:$0xff] %v4177_v42  ;;  %1755 = vrot.lane.b32.xlu1 %v4175_v58, %s3242_s29  ;;  %1753 = vrot.lane.b32.xlu0 %v4173_v43, %s3242_s29  ;;  %v4251_v30 = vpop.f32.mrf.mxu1  ;;  %v4253_v23 = vpop.f32.mrf.mxu0 }
 0x1de   :  { %5645 = vst [vmem:[#allocation33_spill] sm:$0xff] %v4251_v30  ;;  %5646 = vst [vmem:[#allocation34_spill] sm:$0xff] %v4253_v23 }
 0x1df   :  { %v4255_v37 = vpop.f32.mrf.mxu1 }
 0x1e0   :  { %5647 = vst [vmem:[#allocation35_spill] sm:$0xff] %v4255_v37 }
 0x1e1   :  { %1759 = vrot.lane.b32.xlu1 %v4179_v0, %s3242_s29  ;;  %1757 = vrot.lane.b32.xlu0 %v4177_v42, %s3242_s29 }
 0x1e5   :  { %1739 = vrot.lane.b32.xlu1 %v4175_v58, %s3243_s0  ;;  %1737 = vrot.lane.b32.xlu0 %v4173_v43, %s3243_s0 }
 0x1e9   :  { %1743 = vrot.lane.b32.xlu1 %v4179_v0, %s3243_s0  ;;  %1741 = vrot.lane.b32.xlu0 %v4177_v42, %s3243_s0 }
 0x1ed   :  { %1723 = vrot.lane.b32.xlu1 %v4175_v58, %s3244_s30  ;;  %1721 = vrot.lane.b32.xlu0 %v4173_v43, %s3244_s30 }
 0x1f1   :  { %1727 = vrot.lane.b32.xlu1 %v4179_v0, %s3244_s30  ;;  %1725 = vrot.lane.b32.xlu0 %v4177_v42, %s3244_s30 }
 0x1f5   :  { %1707 = vrot.lane.b32.xlu1 %v4175_v58, %s3245_s21  ;;  %1705 = vrot.lane.b32.xlu0 %v4173_v43, %s3245_s21 }
 0x1f9   :  { %1711 = vrot.lane.b32.xlu1 %v4179_v0, %s3245_s21  ;;  %1709 = vrot.lane.b32.xlu0 %v4177_v42, %s3245_s21 }
 0x1fd   :  { %1691 = vrot.lane.b32.xlu1 %v4175_v58, %s3246_s3  ;;  %1689 = vrot.lane.b32.xlu0 %v4173_v43, %s3246_s3 }
 0x201   :  { %1695 = vrot.lane.b32.xlu1 %v4179_v0, %s3246_s3  ;;  %1693 = vrot.lane.b32.xlu0 %v4177_v42, %s3246_s3 }
 0x205   :  { %1675 = vrot.lane.b32.xlu1 %v4175_v58, %s3247_s24  ;;  %1673 = vrot.lane.b32.xlu0 %v4173_v43, %s3247_s24 }
 0x24e   :  { %v4257_v45 = vpop.f32.mrf.mxu0 }
 0x24f   :  { %5648 = vst [vmem:[#allocation36_spill] sm:$0xff] %v4257_v45  ;;  %v4259_v24 = vpop.f32.mrf.mxu1 }
 0x250   :  { %5649 = vst [vmem:[#allocation37_spill] sm:$0xff] %v4259_v24  ;;  %v4261_v3 = vpop.f32.mrf.mxu0 }
 0x251   :  { %5650 = vst [vmem:[#allocation38_spill] sm:$0xff] %v4261_v3  ;;  %v4263_v20 = vpop.f32.mrf.mxu1 }
 0x252   :  { %5651 = vst [vmem:[#allocation39_spill] sm:$0xff] %v4263_v20 }
 0x28e   :  { %v1075_v14 = vpop.f32.mrf.mxu0 }
 0x28f   :  { %v1076_v47 = vadd.f32 %v1075_v14, %v1004_v56  ;;  %v1146_v13 = vpop.f32.mrf.mxu1 }
 0x290   :  { %v1077_v52 = vpop.f32.mrf.mxu0  ;;  %v1147_v30 = vadd.f32 %v1146_v13, %v1004_v56 }
 0x291   :  { %v4265_v25 = vmax.f32 %v1076_v47, 0.0  ;;  %v1078_v19 = vadd.f32 %v1077_v52, %v1004_v56  ;;  %v1148_v23 = vpop.f32.mrf.mxu1  ;;  %v4301_v52 = vpop.permute.xlu1 %1755 }
 0x292   :  { %v1149_v37 = vadd.f32 %v1148_v23, %v1004_v56  ;;  %v4270_v29 = vmax.f32 %v1147_v30, 0.0 }
 0x293   :  { %v4267_v12 = vmax.f32 %v1078_v19, 0.0  ;;  %1449 = vrot.lane.b32.xlu0 %v4265_v25, %s3250_s7  ;;  %v4298_v19 = vpop.permute.xlu0 %1753 }
 0x294   :  { %v4273_v44 = vmax.f32 %v1149_v37, 0.0 }
 0x295   :  { %1451 = vrot.lane.b32.xlu1 %v4267_v12, %s3250_s7  ;;  %v4308_v56 = vpop.permute.xlu1 %1759 }
 0x297   :  { %1453 = vrot.lane.b32.xlu0 %v4270_v29, %s3250_s7  ;;  %v4305_v47 = vpop.permute.xlu0 %1757 }
 0x299   :  { %1455 = vrot.lane.b32.xlu1 %v4273_v44, %s3250_s7  ;;  %v4315_v13 = vpop.permute.xlu1 %1739  ;;  %s3265_s7 = smov 51  }
 0x29b   :  { %1409 = vrot.lane.b32.xlu0 %v4265_v25, %s3251_s23  ;;  %v4312_v14 = vpop.permute.xlu0 %1737 }
 0x29d   :  { %1411 = vrot.lane.b32.xlu1 %v4267_v12, %s3251_s23  ;;  %v4325_v23 = vpop.permute.xlu1 %1743 }
 0x29f   :  { %1413 = vrot.lane.b32.xlu0 %v4270_v29, %s3251_s23  ;;  %v4321_v30 = vpop.permute.xlu0 %1741 }
 0x2a1   :  { %1415 = vrot.lane.b32.xlu1 %v4273_v44, %s3251_s23  ;;  %v4335_v50 = vpop.permute.xlu1 %1723 }
 0x2a3   :  { %1365 = vrot.lane.b32.xlu0 %v4265_v25, %s3252_s8  ;;  %v4331_v37 = vpop.permute.xlu0 %1721 }
 0x2a5   :  { %1367 = vrot.lane.b32.xlu1 %v4267_v12, %s3252_s8  ;;  %v4348_v24 = vpop.permute.xlu1 %1727 }
 0x2a7   :  { %1369 = vrot.lane.b32.xlu0 %v4270_v29, %s3252_s8  ;;  %v4341_v2 = vpop.permute.xlu0 %1725 }
 0x2a9   :  { %1371 = vrot.lane.b32.xlu1 %v4273_v44, %s3252_s8  ;;  %v4354_v45 = vpop.permute.xlu1 %1707 }
 0x2ab   :  { %1325 = vrot.lane.b32.xlu0 %v4265_v25, %s3253_s28  ;;  %v4352_v20 = vpop.permute.xlu0 %1705 }
 0x2ad   :  { %1327 = vrot.lane.b32.xlu1 %v4267_v12, %s3253_s28  ;;  %v4358_v59 = vpop.permute.xlu1 %1711 }
 0x2af   :  { %1329 = vrot.lane.b32.xlu0 %v4270_v29, %s3253_s28  ;;  %v4356_v3 = vpop.permute.xlu0 %1709 }
 0x2b1   :  { %1331 = vrot.lane.b32.xlu1 %v4273_v44, %s3253_s28  ;;  %v4366_v35 = vpop.permute.xlu1 %1691 }
 0x2b3   :  { %1285 = vrot.lane.b32.xlu0 %v4265_v25, %s3254_s4  ;;  %v4364_v18 = vpop.permute.xlu0 %1689 }
 0x2b4   :  { %5652 = vst [vmem:[#allocation40_spill] sm:$0xff] %v4364_v18 }
 0x2b5   :  { %1287 = vrot.lane.b32.xlu1 %v4267_v12, %s3254_s4  ;;  %v4380_v53 = vpop.permute.xlu1 %1695 }
 0x2b6   :  { %5656 = vst [vmem:[#allocation42_spill] sm:$0xff] %v4380_v53 }
 0x2b7   :  { %1289 = vrot.lane.b32.xlu0 %v4270_v29, %s3254_s4  ;;  %v4373_v8 = vpop.permute.xlu0 %1693 }
 0x2b8   :  { %5655 = vst [vmem:[#allocation41_spill] sm:$0xff] %v4373_v8 }
 0x2b9   :  { %1291 = vrot.lane.b32.xlu1 %v4273_v44, %s3254_s4  ;;  %v4387_v55 = vpop.permute.xlu1 %1675 }
 0x2ba   :  { %5659 = vst [vmem:[#allocation44_spill] sm:$0xff] %v4387_v55 }
 0x2bb   :  { %1242 = vrot.lane.b32.xlu0 %v4265_v25, %s3255_s20  ;;  %v4384_v28 = vpop.permute.xlu0 %1673 }
 0x2bc   :  { %5657 = vst [vmem:[#allocation43_spill] sm:$0xff] %v4384_v28  ;;  %v1468_v28 = vrot.slane %v1464_v49, %v3631_v62  ;;  %v1432_v49 = vrot.slane %v1424_v38, %v3628_v60 }
 0x2bd   :  { %1244 = vrot.lane.b32.xlu1 %v4267_v12, %s3255_s20 }
 0x2be   :  { %vm1481_vm5 = vcmp.eq.s32.totalorder %v1468_v28, 1  ;;  %v1436_v28 = vrot.slane %v1424_v38, %v3651_v7  ;;  %vm1442_vm4 = vcmp.eq.s32.totalorder %v1432_v49, 1 }
 0x2bf   :  { %1246 = vrot.lane.b32.xlu0 %v4270_v29, %s3255_s20 }
 0x2c1   :  { %1248 = vrot.lane.b32.xlu1 %v4273_v44, %s3255_s20 }
 0x2c3   :  { %1202 = vrot.lane.b32.xlu0 %v4265_v25, %s3256_s5 }
 0x2c5   :  { %1204 = vrot.lane.b32.xlu1 %v4267_v12, %s3256_s5 }
 0x2c7   :  { %1206 = vrot.lane.b32.xlu0 %v4270_v29, %s3256_s5 }
 0x2c9   :  { %1208 = vrot.lane.b32.xlu1 %v4273_v44, %s3256_s5 }
 0x2cb   :  { %1155 = vrot.lane.b32.xlu0 %v4265_v25, %s3257_s27 }
 0x2cd   :  { %1157 = vrot.lane.b32.xlu1 %v4267_v12, %s3257_s27 }
 0x2cf   :  { %1159 = vrot.lane.b32.xlu0 %v4270_v29, %s3257_s27 }
 0x2d1   :  { %1161 = vrot.lane.b32.xlu1 %v4273_v44, %s3257_s27 }
 0x2d3   :  { %1677 = vrot.lane.b32.xlu0 %v4177_v42, %s3247_s24 }
 0x2d5   :  { %1679 = vrot.lane.b32.xlu1 %v4179_v0, %s3247_s24 }
 0x2d7   :  { %1657 = vrot.lane.b32.xlu0 %v4173_v43, %s3248_s26 }
 0x2d9   :  { %1659 = vrot.lane.b32.xlu1 %v4175_v58, %s3248_s26 }
 0x2db   :  { %1661 = vrot.lane.b32.xlu0 %v4177_v42, %s3248_s26 }
 0x2dd   :  { %1663 = vrot.lane.b32.xlu1 %v4179_v0, %s3248_s26 }
 0x2df   :  { %1641 = vrot.lane.b32.xlu0 %v4173_v43, %s3249_s25 }
 0x2e1   :  { %1643 = vrot.lane.b32.xlu1 %v4175_v58, %s3249_s25 }
 0x2e3   :  { %1645 = vrot.lane.b32.xlu0 %v4177_v42, %s3249_s25 }
 0x2e5   :  { %1647 = vrot.lane.b32.xlu1 %v4179_v0, %s3249_s25 }
 0x2e7   :  { %1773 = vperm.xlu0 %3234, %v1770_v61  }
 0x305   :  { %v1450_v17 = vpop.permute.xlu0 %1449 }
 0x307   :  { %v1452_v55 = vpop.permute.xlu1 %1451 }
 0x308   :  { %v1460_v32 = vsel %vm1457_vm7, %v1450_v17, %v1452_v55 }
 0x309   :  { %v1454_v8 = vpop.permute.xlu0 %1453 }
 0x30a   :  { %v1459_v42 = vsel %vm1457_vm7, %v1452_v55, %v1454_v8 }
 0x30b   :  { %v1456_v53 = vpop.permute.xlu1 %1455  ;;  %3064 = vmatprep.subr.msk.mxu0 %vm1482_vm1, %v1459_v42  ;;  %v1440_v42 = vrot.slane %v1424_v38, %v3648_v5  ;;  %vm1383_vm1 = vmand %vm1382_vm10, %vm5462_vm11  ;;  %vm5663_vm10 = vnez %v5492_v31 }
 0x30c   :  { %v1458_v39 = vsel %vm1457_vm7, %v1454_v8, %v1456_v53  ;;  %3065 = vmatpush1.msk.msra.mxu0 %vm1481_vm5, %v1460_v32  ;;  %v1461_v4 = vsel %vm1457_vm7, %v1456_v53, %v1450_v17  ;;  %vm1417_vm5 = vcmp.lt.s32.totalorder %v3637_v63, 96  ;;  %v1384_v17 = vsel %vm1383_vm1, 1, %v5658_v6 }
 0x30d   :  { %3081 = vmatprep.subr.msk.mxu1 %vm1484_vm12, %v1461_v4  ;;  %v1410_v55 = vpop.permute.xlu0 %1409  ;;  %vm1444_vm12 = vcmp.eq.s32.totalorder %v1440_v42, 1  ;;  %vm1443_vm7 = vcmp.eq.s32.totalorder %v1436_v28, 1  ;;  %v1392_v49 = vrot.slane %v1384_v17, %v3628_v60  ;;  %v1388_v18 = vrot.slane %v1384_v17, %v3631_v62 }
 0x30e   :  { %3082 = vmatpush1.msk.msra.mxu1 %vm1483_vm9, %v1458_v39  ;;  %vm5662_vm9 = vcmp.ge.s32.totalorder %v4362_v51, 0  ;;  %v1400_v42 = vrot.slane %v1384_v17, %v3648_v5  ;;  %vm5664_vm1 = vcmp.lt.s32.totalorder %v4362_v51, 16  ;;  %v1396_v28 = vrot.slane %v1384_v17, %v3651_v7 }
 0x30f   :  { %v1412_v61 = vpop.permute.xlu1 %1411  ;;  %vm1338_vm11 = vmand %vm5663_vm10, %vm5662_vm9 }
 0x310   :  { %v1420_v53 = vsel %vm1417_vm5, %v1410_v55, %v1412_v61  ;;  %vm1403_vm9 = vcmp.eq.s32.totalorder %v1396_v28, 1 }
 0x311   :  { %v1414_v32 = vpop.permute.xlu0 %1413 }
 0x312   :  { %v1419_v8 = vsel %vm1417_vm5, %v1412_v61, %v1414_v32 }
 0x313   :  { %v1416_v4 = vpop.permute.xlu1 %1415  ;;  %3066 = vmatprep.subr.msk.mxu0 %vm1442_vm4, %v1419_v8  ;;  %vm1339_vm4 = vmand %vm1338_vm11, %vm5664_vm1 }
 0x314   :  { %v1418_v39 = vsel %vm1417_vm5, %v1414_v32, %v1416_v4  ;;  %3067 = vmatpush1.msk.msra.mxu0 %vm1441_vm13, %v1420_v53  ;;  %v1421_v38 = vsel %vm1417_vm5, %v1416_v4, %v1410_v55  ;;  %v4441_v32 = vld [vmem:[%s5478_s22] sm:$0xf]  ;;  %vm1373_vm5 = vcmp.lt.s32.totalorder %v3637_v63, 98  ;;  %vm1402_vm13 = vcmp.eq.s32.totalorder %v1392_v49, 1  ;;  %vm1298_vm11 = vmand %vm5663_vm10, %vm5464_vm3 }
 0x315   :  { %3083 = vmatprep.subr.msk.mxu1 %vm1444_vm12, %v1421_v38  ;;  %v1366_v34 = vpop.permute.xlu0 %1365  ;;  %5665 = vst [vmem:[#allocation45_spill] sm:$0xff] %v4441_v32  ;;  %v1168_v55 = vadd.s32 4294967294, %v4441_v32  ;;  %vm1401_vm12 = vcmp.eq.s32.totalorder %v1388_v18, 1  ;;  %v1340_v53 = vsel %vm1339_vm4, 1, %v5658_v6  ;;  %vm5666_vm4 = vcmp.lt.s32.totalorder %v4397_v9, 16 }
 0x316   :  { %3084 = vmatpush1.msk.msra.mxu1 %vm1443_vm7, %v1418_v39  ;;  %vm1404_vm7 = vcmp.eq.s32.totalorder %v1400_v42, 1  ;;  %v1348_v49 = vrot.slane %v1340_v53, %v3628_v60  ;;  %vm1299_vm3 = vmand %vm1298_vm11, %vm5666_vm4  ;;  %v1356_v28 = vrot.slane %v1340_v53, %v3648_v5 }
 0x317   :  { %v1368_v61 = vpop.permute.xlu1 %1367  ;;  %vm1169_vm1 = vcmp.ge.s32.totalorder %v1168_v55, 0  ;;  %vm1170_vm0 = vcmp.lt.s32.totalorder %v1168_v55, 16 }
 0x318   :  { %v1376_v4 = vsel %vm1373_vm5, %v1366_v34, %v1368_v61 }
 0x319   :  { %v1370_v8 = vpop.permute.xlu0 %1369 }
 0x31a   :  { %v1375_v17 = vsel %vm1373_vm5, %v1368_v61, %v1370_v8  ;;  %v1344_v61 = vrot.slane %v1340_v53, %v3631_v62 }
 0x31b   :  { %v1372_v39 = vpop.permute.xlu1 %1371  ;;  %3068 = vmatprep.subr.msk.mxu0 %vm1402_vm13, %v1375_v17  ;;  %vm4463_vm13 = vmand %vm1169_vm1, %vm1170_vm0  ;;  %v1352_v17 = vrot.slane %v1340_v53, %v3651_v7  ;;  %vm1360_vm0 = vcmp.eq.s32.totalorder %v1356_v28, 1 }
 0x31c   :  { %v1374_v18 = vsel %vm1373_vm5, %v1370_v8, %v1372_v39  ;;  %3069 = vmatpush1.msk.msra.mxu0 %vm1401_vm12, %v1376_v4  ;;  %v1377_v38 = vsel %vm1373_vm5, %v1372_v39, %v1366_v34  ;;  %v1300_v34 = vsel %vm1299_vm3, 1, %v5658_v6  ;;  %vm1333_vm5 = vcmp.lt.s32.totalorder %v3637_v63, 126 }
 0x31d   :  { %3085 = vmatprep.subr.msk.mxu1 %vm1404_vm7, %v1377_v38  ;;  %v1326_v42 = vpop.permute.xlu0 %1325  ;;  %vm1358_vm12 = vcmp.eq.s32.totalorder %v1348_v49, 1  ;;  %vm1357_vm11 = vcmp.eq.s32.totalorder %v1344_v61, 1  ;;  %vm5669_vm7 = vcmp.ge.s32.totalorder %v4362_v51, 0  ;;  %vm1359_vm1 = vcmp.eq.s32.totalorder %v1352_v17, 1 }
 0x31e   :  { %3086 = vmatpush1.msk.msra.mxu1 %vm1403_vm9, %v1374_v18  ;;  %vm1257_vm9 = vmand %vm4463_vm13, %vm5669_vm7  ;;  %v1308_v18 = vrot.slane %v1300_v34, %v3628_v60  ;;  %vm5670_vm3 = vcmp.lt.s32.totalorder %v4362_v51, 16  ;;  %vm1293_vm7 = vcmp.lt.s32.totalorder %v3637_v63, 2  ;;  %v1304_v61 = vrot.slane %v1300_v34, %v3631_v62 }
 0x31f   :  { %v1328_v8 = vpop.permute.xlu1 %1327  ;;  %vm1259_vm4 = vmand %vm1257_vm9, %vm5670_vm3  ;;  %v1316_v28 = vrot.slane %v1300_v34, %v3648_v5  ;;  %vm1250_vm3 = vcmp.lt.s32.totalorder %v3637_v63, 30 }
 0x320   :  { %v1336_v38 = vsel %vm1333_vm5, %v1326_v42, %v1328_v8  ;;  %vm1318_vm10 = vcmp.eq.s32.totalorder %v1308_v18, 1  ;;  %v1260_v51 = vsel %vm1259_vm4, 1, %v5658_v6 }
 0x321   :  { %v1330_v4 = vpop.permute.xlu0 %1329  ;;  %vm1320_vm9 = vcmp.eq.s32.totalorder %v1316_v28, 1 }
 0x322   :  { %v1335_v39 = vsel %vm1333_vm5, %v1328_v8, %v1330_v4 }
 0x323   :  { %v1332_v31 = vpop.permute.xlu1 %1331  ;;  %3070 = vmatprep.subr.msk.mxu0 %vm1358_vm12, %v1335_v39  ;;  %v1276_v39 = vrot.slane %v1260_v51, %v3648_v5 }
 0x324   :  { %v1334_v53 = vsel %vm1333_vm5, %v1330_v4, %v1332_v31  ;;  %3071 = vmatpush1.msk.msra.mxu0 %vm1357_vm11, %v1336_v38  ;;  %v1337_v32 = vsel %vm1333_vm5, %v1332_v31, %v1326_v42  ;;  %v1312_v31 = vrot.slane %v1300_v34, %v3651_v7  ;;  %vm5671_vm5 = vcmp.ge.s32.totalorder %v3593_v54, 0 }
 0x325   :  { %1521 = vmatprep.subr.mxu0 %v4267_v12  ;;  %3087 = vmatprep.subr.msk.mxu1 %vm1360_vm0, %v1337_v32  ;;  %v1286_v49 = vpop.permute.xlu0 %1285  ;;  %vm1215_vm12 = vmand %vm4463_vm13, %vm5671_vm5  ;;  %vm1317_vm11 = vcmp.eq.s32.totalorder %v1304_v61, 1  ;;  %v1264_v4 = vrot.slane %v1260_v51, %v3631_v62  ;;  %v1272_v38 = vrot.slane %v1260_v51, %v3651_v7 }
 0x326   :  { %1522 = vmatpush1.msra.mxu0 %v4265_v25  ;;  %3088 = vmatpush1.msk.msra.mxu1 %vm1359_vm1, %v1334_v53  ;;  %vm1319_vm0 = vcmp.eq.s32.totalorder %v1312_v31, 1 }
 0x327   :  { %v1288_v8 = vpop.permute.xlu1 %1287  ;;  %1592 = vmatprep.subr.mxu1 %v4273_v44  ;;  %v1268_v44 = vrot.slane %v1260_v51, %v3628_v60 }
 0x328   :  { %1593 = vmatpush1.msra.mxu1 %v4270_v29  ;;  %v1296_v12 = vsel %vm1293_vm7, %v1286_v49, %v1288_v8 }
 0x329   :  { %3072 = vmatprep.subr.msk.mxu0 %vm1318_vm10, %v1296_v12  ;;  %v1290_v25 = vpop.permute.xlu0 %1289  ;;  %vm5672_vm10 = vcmp.lt.s32.totalorder %v3593_v54, 16  ;;  %vm1278_vm4 = vcmp.eq.s32.totalorder %v1268_v44, 1 }
 0x32a   :  { %vm1216_vm1 = vmand %vm1215_vm12, %vm5672_vm10  ;;  %v1295_v17 = vsel %vm1293_vm7, %v1288_v8, %v1290_v25  ;;  %vm1277_vm12 = vcmp.eq.s32.totalorder %v1264_v4, 1 }
 0x32b   :  { %v1292_v32 = vpop.permute.xlu1 %1291  ;;  %v1217_v53 = vsel %vm1216_vm1, 1, %v5658_v6 }
 0x32c   :  { %v1297_v42 = vsel %vm1293_vm7, %v1292_v32, %v1286_v49  ;;  %v1294_v29 = vsel %vm1293_vm7, %v1290_v25, %v1292_v32  ;;  %vm5673_vm7 = vcmp.ge.s32.totalorder %v4397_v9, 0  ;;  %v1225_v28 = vrot.slane %v1217_v53, %v3628_v60 }
 0x32d   :  { %3073 = vmatpush1.msk.msra.mxu0 %vm1317_vm11, %v1297_v42  ;;  %3089 = vmatprep.subr.msk.mxu1 %vm1320_vm9, %v1294_v29  ;;  %v1243_v34 = vpop.permute.xlu0 %1242  ;;  %vm1174_vm5 = vmand %vm4463_vm13, %vm5673_vm7  ;;  %vm1280_vm11 = vcmp.eq.s32.totalorder %v1276_v39, 1  ;;  %vm1279_vm9 = vcmp.eq.s32.totalorder %v1272_v38, 1  ;;  %vm1210_vm13 = vcmp.lt.s32.totalorder %v3637_v63, 32  ;;  %v1221_v25 = vrot.slane %v1217_v53, %v3631_v62 }
 0x32e   :  { %3090 = vmatpush1.msk.msra.mxu1 %vm1319_vm0, %v1295_v17  ;;  %vm5674_vm0 = vcmp.lt.s32.totalorder %v4397_v9, 16  ;;  %vm1235_vm1 = vcmp.eq.s32.totalorder %v1225_v28, 1  ;;  %v1233_v44 = vrot.slane %v1217_v53, %v3648_v5  ;;  %v1229_v42 = vrot.slane %v1217_v53, %v3651_v7 }
 0x32f   :  { %v1245_v18 = vpop.permute.xlu1 %1244  ;;  %vm1176_vm10 = vmand %vm1174_vm5, %vm5674_vm0  ;;  %vm1163_vm5 = vcmp.lt.s32.totalorder %v3637_v63, 34 }
 0x330   :  { %v1253_v49 = vsel %vm1250_vm3, %v1243_v34, %v1245_v18  ;;  %v1177_v9 = vsel %vm1176_vm10, 1, %v5658_v6  ;;  %vm1236_vm7 = vcmp.eq.s32.totalorder %v1229_v42, 1  ;;  %vm5675_vm10 = vcmp.lt.s32.totalorder %v3637_v63, 111 }
 0x331   :  { %3074 = vmatprep.subr.msk.mxu0 %vm1278_vm4, %v1253_v49  ;;  %v1247_v61 = vpop.permute.xlu0 %1246  ;;  %vm1237_vm4 = vcmp.eq.s32.totalorder %v1233_v44, 1  ;;  %v1181_v49 = vrot.slane %v1177_v9, %v3631_v62  ;;  %v1489_v44 = vld [vmem:[%s5331_s9] sm:$0xff] }
 0x332   :  { %v1252_v12 = vsel %vm1250_vm3, %v1245_v18, %v1247_v61 }
 0x333   :  { %v1249_v8 = vpop.permute.xlu1 %1248 }
 0x334   :  { %v1251_v31 = vsel %vm1250_vm3, %v1247_v61, %v1249_v8  ;;  %v1254_v51 = vsel %vm1250_vm3, %v1249_v8, %v1243_v34  ;;  %vm1234_vm3 = vcmp.eq.s32.totalorder %v1221_v25, 1  ;;  %v1185_v34 = vrot.slane %v1177_v9, %v3628_v60 }
 0x335   :  { %3075 = vmatpush1.msk.msra.mxu0 %vm1277_vm12, %v1254_v51  ;;  %3091 = vmatprep.subr.msk.mxu1 %vm1280_vm11, %v1251_v31  ;;  %v1203_v55 = vpop.permute.xlu0 %1202  ;;  %v1193_v61 = vrot.slane %v1177_v9, %v3648_v5  ;;  %v1189_v8 = vrot.slane %v1177_v9, %v3651_v7  ;;  %vm1194_vm11 = vcmp.eq.s32.totalorder %v1181_v49, 1  ;;  %v1762_v9 = vsel %vm5675_vm10, %v4301_v52, %v4305_v47  ;;  %v5708_v49 = vld [vmem:[#allocation3_spill] sm:$0xff] }
 0x336   :  { %3092 = vmatpush1.msk.msra.mxu1 %vm1279_vm9, %v1252_v12  ;;  %vm1195_vm12 = vcmp.eq.s32.totalorder %v1185_v34, 1 }
 0x337   :  { %v1205_v32 = vpop.permute.xlu1 %1204  ;;  %vm1197_vm9 = vcmp.eq.s32.totalorder %v1193_v61, 1  ;;  %vm1196_vm0 = vcmp.eq.s32.totalorder %v1189_v8, 1  ;;  %v5711_v61 = vld [vmem:[#allocation41_spill] sm:$0xff]  ;;  %v5714_v8 = vld [vmem:[#allocation4_spill] sm:$0xff] }
 0x338   :  { %v1213_v29 = vsel %vm1210_vm13, %v1203_v55, %v1205_v32 }
 0x339   :  { %3076 = vmatprep.subr.msk.mxu0 %vm1235_vm1, %v1213_v29  ;;  %v1207_v17 = vpop.permute.xlu0 %1206  ;;  %vm5677_vm1 = vmmov %vm5675_vm10 }
 0x33a   :  { %v1212_v38 = vsel %vm1210_vm13, %v1205_v32, %v1207_v17 }
 0x33b   :  { %v1209_v4 = vpop.permute.xlu1 %1208 }
 0x33c   :  { %v1211_v39 = vsel %vm1210_vm13, %v1207_v17, %v1209_v4  ;;  %v1214_v18 = vsel %vm1210_vm13, %v1209_v4, %v1203_v55  ;;  %vm5676_vm13 = vmmov %vm5675_vm10  ;;  %v1763_v17 = vsel %vm5677_vm1, %v4298_v19, %v4301_v52 }
 0x33d   :  { %3077 = vmatpush1.msk.msra.mxu0 %vm1234_vm3, %v1214_v18  ;;  %3093 = vmatprep.subr.msk.mxu1 %vm1237_vm4, %v1211_v39  ;;  %v1156_v53 = vpop.permute.xlu0 %1155  ;;  %v1764_v29 = vsel %vm5676_vm13, %v4308_v56, %v4298_v19  ;;  %vm5678_vm3 = vcmask 588800   ;;  %vm5679_vm4 = vmmov %vm5677_vm1  ;;  %vm5688_vm1 = vnez %v5495_v36 }
 0x33e   :  { %3094 = vmatpush1.msk.msra.mxu1 %vm1236_vm7, %v1212_v38  ;;  %v1761_v4 = vsel %vm5679_vm4, %v4305_v47, %v4308_v56  ;;  %vm5680_vm7 = vnez %v5484_v15 }
 0x33f   :  { %v1158_v28 = vpop.permute.xlu1 %1157 }
 0x340   :  { %v1166_v31 = vsel %vm1163_vm5, %v1156_v53, %v1158_v28 }
 0x341   :  { %3078 = vmatprep.subr.msk.mxu0 %vm1195_vm12, %v1166_v31  ;;  %v1160_v51 = vpop.permute.xlu0 %1159  ;;  %vm5682_vm12 = vcmp.lt.s32.totalorder %v3637_v63, 112  ;;  %v5715_v31 = vld [vmem:[#allocation5_spill] sm:$0xff] }
 0x342   :  { %v1165_v32 = vsel %vm1163_vm5, %v1158_v28, %v1160_v51  ;;  %v1746_v19 = vsel %vm5682_vm12, %v4315_v13, %v4321_v30 }
 0x343   :  { %v1162_v12 = vpop.permute.xlu1 %1161 }
 0x344   :  { %v1164_v55 = vsel %vm1163_vm5, %v1160_v51, %v1162_v12  ;;  %v1167_v25 = vsel %vm1163_vm5, %v1162_v12, %v1156_v53  ;;  %vm5681_vm5 = vmmov %vm5678_vm3  ;;  %v5717_v51 = vld [vmem:[#allocation44_spill] sm:$0xff]  ;;  %v5718_v12 = vld [vmem:[#allocation43_spill] sm:$0xff] }
 0x345   :  { %3079 = vmatpush1.msk.msra.mxu0 %vm1194_vm11, %v1167_v25  ;;  %3095 = vmatprep.subr.msk.mxu1 %vm1197_vm9, %v1164_v55  ;;  %v1678_v42 = vpop.permute.xlu0 %1677  ;;  %vm5683_vm11 = vmmov %vm5682_vm12  ;;  %vm5684_vm9 = vnez %v5490_v27  ;;  %vm5692_vm12 = vnez %v5499_v48 }
 0x346   :  { %3096 = vmatpush1.msk.msra.mxu1 %vm1196_vm0, %v1165_v32  ;;  %3098 = vmatprep.subr.msk.mxu0 %vm3661_vm14, %v1762_v9  ;;  %v1747_v52 = vsel %vm5683_vm11, %v4312_v14, %v4315_v13  ;;  %vm5685_vm0 = vnez %v5488_v26  ;;  %vm5686_vm10 = vmmov %vm5683_vm11  ;;  %v5722_v32 = vld [vmem:[#allocation7_spill] sm:$0xff] }
 0x347   :  { %v1680_v34 = vpop.permute.xlu1 %1679  ;;  %3080 = vmatmul.mubr.msk.f32.vlgmr.msra.gmra.mxu0 %vm5678_vm3, %v1489_v44  ;;  %3115 = vmatprep.subr.msk.mxu1 %vm3693_vm2, %v1764_v29  ;;  %v1748_v47 = vsel %vm5686_vm10, %v4325_v23, %v4312_v14  ;;  %vm5687_vm13 = vmmov %vm5686_vm10  ;;  %vm5689_vm3 = vcmp.lt.s32.totalorder %v3637_v63, 113 }
 0x348   :  { %3099 = vmatpush1.msk.msra.mxu0 %vm5680_vm7, %v1763_v17  ;;  %3097 = vmatmul.mubr.msk.f32.vlgmr.msra.gmra.mxu1 %vm5681_vm5, %v1489_v44  ;;  %v1745_v39 = vsel %vm5687_vm13, %v4321_v30, %v4325_v23  ;;  %v1730_v13 = vsel %vm5689_vm3, %v4335_v50, %v4341_v2  ;;  %vm5690_vm4 = vmmov %vm5689_vm3  ;;  %vm5691_vm5 = vnez %v5501_v57  ;;  %vm5695_vm13 = vnez %v5503_v1 }
 0x349   :  { %3100 = vmatprep.subr.msk.mxu0 %vm5684_vm9, %v1746_v19  ;;  %3116 = vmatpush1.msk.msra.mxu1 %vm5685_vm0, %v1761_v4  ;;  %v1658_v56 = vpop.permute.xlu0 %1657  ;;  %v1731_v14 = vsel %vm5690_vm4, %v4331_v37, %v4335_v50  ;;  %vm5693_vm11 = vmmov %vm5689_vm3  ;;  %v5729_v19 = vld [vmem:[#allocation8_spill] sm:$0xff] }
 0x34a   :  { %3101 = vmatpush1.msk.msra.mxu0 %vm5688_vm1, %v1747_v52  ;;  %3117 = vmatprep.subr.msk.mxu1 %vm5587_vm15, %v1748_v47  ;;  %v1732_v23 = vsel %vm5693_vm11, %v4348_v24, %v4331_v37  ;;  %vm5694_vm10 = vmmov %vm5689_vm3  ;;  %vm5696_vm3 = vcmp.lt.s32.totalorder %v3637_v63, 127  ;;  %vm5698_vm11 = vnez %v5512_v21 }
 0x34b   :  { %3102 = vmatprep.subr.msk.mxu0 %vm5691_vm5, %v1730_v13  ;;  %3118 = vmatpush1.msk.msra.mxu1 %vm5692_vm12, %v1745_v39  ;;  %v1660_v30 = vpop.permute.xlu1 %1659  ;;  %v1729_v18 = vsel %vm5694_vm10, %v4341_v2, %v4348_v24  ;;  %v1714_v50 = vsel %vm5696_vm3, %v4354_v45, %v4356_v3  ;;  %vm5697_vm4 = vmmov %vm5696_vm3  ;;  %vm5699_vm10 = vnez %v5507_v16  ;;  %v1713_v38 = vsel %vm5696_vm3, %v4356_v3, %v4358_v59  ;;  %v5735_v39 = vld [vmem:[#allocation11_spill] sm:$0xff] }
 0x34c   :  { %3103 = vmatpush1.msk.msra.mxu0 %vm5695_vm13, %v1731_v14  ;;  %3119 = vmatprep.subr.msk.mxu1 %vm3794_vm8, %v1732_v23  ;;  %v1715_v37 = vsel %vm5697_vm4, %v4352_v20, %v4354_v45  ;;  %vm5700_vm8 = vmmov %vm5696_vm3  ;;  %vm5701_vm13 = vnez %v5516_v33  ;;  %vm5702_vm4 = vnez %v5519_v40  ;;  %v5740_v14 = vld [vmem:[#allocation12_spill] sm:$0xff]  ;;  %v5742_v23 = vld [vmem:[#allocation13_spill] sm:$0xff] }
 0x34d   :  { %3104 = vmatprep.subr.msk.mxu0 %vm5698_vm11, %v1714_v50  ;;  %3120 = vmatpush1.msk.msra.mxu1 %vm5699_vm10, %v1729_v18  ;;  %v1716_v2 = vsel %vm5700_vm8, %v4358_v59, %v4352_v20  ;;  %v1662_v24 = vpop.permute.xlu0 %1661  ;;  %vm5703_vm11 = vnez %v5521_v46  ;;  %v5704_v20 = vld [vmem:[#allocation40_spill] sm:$0xff]  ;;  %vm5705_vm8 = vcmp.lt.s32.totalorder %v3637_v63, 1  ;;  %v5706_v59 = vld [vmem:[#allocation42_spill] sm:$0xff]  ;;  %vm5730_vm10 = vnez %v5729_v19  ;;  %v5744_v50 = vld [vmem:[#allocation15_spill] sm:$0xff] }
 0x34e   :  { %3105 = vmatpush1.msk.msra.mxu0 %vm5701_vm13, %v1715_v37  ;;  %3121 = vmatprep.subr.msk.mxu1 %vm5702_vm4, %v1716_v2  ;;  %v1699_v3 = vsel %vm5705_vm8, %v5704_v20, %v4366_v35  ;;  %vm5707_vm3 = vmmov %vm5705_vm8  ;;  %vm5709_vm4 = vnez %v5708_v49  ;;  %v1769_v2 = vld [vmem:[%s5332_s11] sm:$0xff] }
 0x34f   :  { %1801 = vmatprep.subr.mxu0 %v4175_v58  ;;  %3122 = vmatpush1.msk.msra.mxu1 %vm5703_vm11, %v1713_v38  ;;  %v1664_v45 = vpop.permute.xlu1 %1663  ;;  %v1700_v53 = vsel %vm5707_vm3, %v5706_v59, %v5704_v20  ;;  %v5710_v58 = vld [vmem:[#allocation19_spill] sm:$0xff]  ;;  %vm5712_vm11 = vmmov %vm5707_vm3  ;;  %v5750_v38 = vmov 0.0   ;;  %v5752_v20 = vld [vmem:[#allocation16_spill] sm:$0xff] }
 0x350   :  { %1802 = vmatpush1.msra.mxu0 %v4173_v43  ;;  %1872 = vmatprep.subr.mxu1 %v4179_v0  ;;  %v1697_v43 = vsel %vm5712_vm11, %v5711_v61, %v5706_v59  ;;  %vm5713_vm8 = vmmov %vm5707_vm3  ;;  %vm5716_vm3 = vnez %v5715_v31  ;;  %v5757_v59 = vld [vmem:[#allocation18_spill] sm:$0xff] }
 0x351   :  { %3106 = vmatprep.subr.msk.mxu0 %vm5709_vm4, %v1699_v3  ;;  %1873 = vmatpush1.msra.mxu1 %v5710_v58  ;;  %v1642_v0 = vpop.permute.xlu0 %1641  ;;  %v1698_v28 = vsel %vm5713_vm8, %v4366_v35, %v5711_v61  ;;  %vm5719_vm4 = vcmp.lt.s32.totalorder %v3637_v63, 15  ;;  %vm5723_vm8 = vnez %v5722_v32  ;;  %v5724_v35 = vld [vmem:[#allocation6_spill] sm:$0xff]  ;;  %v5754_v3 = vld [vmem:[#allocation17_spill] sm:$0xff] }
 0x352   :  { %3107 = vmatpush1.msk.msra.mxu0 %vm3882_vm6, %v1700_v53  ;;  %3123 = vmatprep.subr.msk.mxu1 %vm5716_vm3, %v1697_v43  ;;  %v1683_v55 = vsel %vm5719_vm4, %v5718_v12, %v5717_v51  ;;  %vm5720_vm13 = vmmov %vm5719_vm4  ;;  %vm5725_vm6 = vnez %v5724_v35 }
 0x353   :  { %v1681_v25 = vsel %vm5720_vm13, %v1678_v42, %v1680_v34  ;;  %vm5721_vm11 = vmmov %vm5719_vm4  ;;  %3108 = vmatprep.subr.msk.mxu0 %vm5723_vm8, %v1683_v55  ;;  %3124 = vmatpush1.msk.msra.mxu1 %vm5725_vm6, %v1698_v28  ;;  %v1644_v9 = vpop.permute.xlu1 %1643  ;;  %vm5728_vm13 = vcmp.lt.s32.totalorder %v3637_v63, 17 }
 0x354   :  { %v1684_v44 = vsel %vm5721_vm11, %v1680_v34, %v5718_v12  ;;  %vm5726_vm3 = vmmov %vm5719_vm4  ;;  %vm5727_vm4 = vcmp.lt.s32.totalorder %v3637_v63, 16  ;;  %v1651_v4 = vsel %vm5728_vm13, %v1642_v0, %v1644_v9  ;;  %v5731_v34 = vld [vmem:[#allocation9_spill] sm:$0xff]  ;;  %1843 = vmatprep.mubr.f32.mxu0 %v5750_v38  ;;  %1914 = vmatprep.mubr.f32.mxu1 %v5750_v38 }
 0x355   :  { %v1682_v29 = vsel %vm5726_vm3, %v5717_v51, %v1678_v42  ;;  %v1667_v17 = vsel %vm5727_vm4, %v1658_v56, %v1660_v30  ;;  %3109 = vmatpush1.msk.msra.mxu0 %vm5730_vm10, %v1684_v44  ;;  %vm5732_vm11 = vnez %v5731_v34  ;;  %vm5733_vm8 = vmmov %vm5727_vm4  ;;  %vm5736_vm3 = vnez %v5735_v39  ;;  %v5737_v42 = vld [vmem:[#allocation10_spill] sm:$0xff]  ;;  %v1646_v18 = vpop.permute.xlu0 %1645 }
 0x356   :  { %3125 = vmatprep.subr.msk.mxu1 %vm5732_vm11, %v1681_v25  ;;  %v1665_v52 = vsel %vm5733_vm8, %v1662_v24, %v1664_v45  ;;  %vm5734_vm6 = vmmov %vm5727_vm4  ;;  %3110 = vmatprep.subr.msk.mxu0 %vm5736_vm3, %v1667_v17  ;;  %vm5738_vm4 = vnez %v5737_v42  ;;  %vm5741_vm10 = vnez %v5740_v14  ;;  %vm5743_vm11 = vnez %v5742_v23 }
 0x357   :  { %v1668_v47 = vsel %vm5734_vm6, %v1664_v45, %v1658_v56  ;;  %3126 = vmatpush1.msk.msra.mxu1 %vm5738_vm4, %v1682_v29  ;;  %vm5739_vm13 = vmmov %vm5734_vm6  ;;  %vm5745_vm8 = vnez %v5744_v50  ;;  %v5746_v56 = vld [vmem:[#allocation14_spill] sm:$0xff]  ;;  %v1648_v37 = vpop.permute.xlu1 %1647  ;;  %vm5756_vm3 = vcmask 588800  }
 0x358   :  { %v1666_v13 = vsel %vm5739_vm13, %v1660_v30, %v1662_v24  ;;  %3111 = vmatpush1.msk.msra.mxu0 %vm5741_vm10, %v1668_v47  ;;  %3127 = vmatprep.subr.msk.mxu1 %vm5743_vm11, %v1665_v52  ;;  %vm5747_vm6 = vnez %v5746_v56  ;;  %vm5748_vm13 = vcmp.lt.s32.totalorder %v3637_v63, 17  ;;  %vm5755_vm11 = vnez %v5754_v3  ;;  %vm5759_vm4 = vmmov %vm5756_vm3 }
 0x359   :  { %3112 = vmatprep.subr.msk.mxu0 %vm5745_vm8, %v1651_v4  ;;  %3128 = vmatpush1.msk.msra.mxu1 %vm5747_vm6, %v1666_v13  ;;  %v1649_v30 = vsel %vm5748_vm13, %v1646_v18, %v1648_v37  ;;  %vm5749_vm10 = vmmov %vm5748_vm13  ;;  %vm5753_vm6 = vnez %v5752_v20  ;;  %vm5758_vm13 = vnez %v5757_v59  ;;  %v2054_v13 = vld [vmem:[%s5333_s14] sm:$0xff] }
 0x35a   :  { %v1652_v24 = vsel %vm5749_vm10, %v1648_v37, %v1642_v0  ;;  %vm5751_vm8 = vmmov %vm5749_vm10  ;;  %3129 = vmatprep.subr.msk.mxu1 %vm5755_vm11, %v1649_v30  ;;  %vm5760_vm10 = vcmp.lt.s32.totalorder %v3637_v63, 111 }
 0x35b   :  { %v1650_v45 = vsel %vm5751_vm8, %v1644_v9, %v1646_v18  ;;  %3113 = vmatpush1.msk.msra.mxu0 %vm5753_vm6, %v1652_v24 }
 0x35c   :  { %3114 = vmatmul.mubr.msk.f32.vlgmr.msra.gmra.mxu0 %vm5756_vm3, %v1769_v2  ;;  %3130 = vmatpush1.msk.msra.mxu1 %vm5758_vm13, %v1650_v45  ;;  %vm5761_vm3 = vmmov %vm5760_vm10 }
 0x35d   :  { %3131 = vmatmul.mubr.msk.f32.vlgmr.msra.gmra.mxu1 %vm5759_vm4, %v1769_v2  ;;  %2127 = vmatprep.mubr.f32.mxu0 %v5750_v38  ;;  %vm5762_vm4 = vmmov %vm5761_vm3 }
 0x35e   :  { %2198 = vmatprep.mubr.f32.mxu1 %v5750_v38  ;;  %vm5763_vm8 = vmmov %vm5761_vm3 }
 0x362   :  { %v1774_v0 = vpop.permute.xlu0 %1773 }
 0x407   :  { %v4737_v53 = vpop.f32.mrf.mxu0 }
 0x408   :  { %v4739_v58 = vpop.f32.mrf.mxu1 }
 0x409   :  { %v4741_v61 = vpop.f32.mrf.mxu0 }
 0x40a   :  { %v4743_v43 = vpop.f32.mrf.mxu1 }
 0x41c   :  { %v1845_v28 = vpop.f32.mrf.mxu0 }
 0x41d   :  { %v1846_v51 = vadd.f32 %v1845_v28, %v1774_v0  ;;  %v1916_v12 = vpop.f32.mrf.mxu1 }
 0x41e   :  { %v1847_v55 = vpop.f32.mrf.mxu0  ;;  %v1917_v44 = vadd.f32 %v1916_v12, %v1774_v0 }
 0x41f   :  { %v4745_v25 = vmax.f32 %v1846_v51, 0.0  ;;  %v1848_v9 = vadd.f32 %v1847_v55, %v1774_v0  ;;  %v1918_v29 = vpop.f32.mrf.mxu1 }
 0x420   :  { %v1919_v4 = vadd.f32 %v1918_v29, %v1774_v0  ;;  %v4751_v52 = vmax.f32 %v1917_v44, 0.0 }
 0x421   :  { %v4747_v17 = vmax.f32 %v1848_v9, 0.0  ;;  %2037 = vrot.lane.b32.xlu1 %v4745_v25, %s3242_s29 }
 0x422   :  { %v4755_v47 = vmax.f32 %v1919_v4, 0.0 }
 0x423   :  { %2039 = vrot.lane.b32.xlu0 %v4747_v17, %s3242_s29 }
 0x425   :  { %2041 = vrot.lane.b32.xlu1 %v4751_v52, %s3242_s29 }
 0x427   :  { %2043 = vrot.lane.b32.xlu0 %v4755_v47, %s3242_s29 }
 0x429   :  { %2021 = vrot.lane.b32.xlu1 %v4745_v25, %s3243_s0 }
 0x42b   :  { %2023 = vrot.lane.b32.xlu0 %v4747_v17, %s3243_s0 }
 0x42d   :  { %2025 = vrot.lane.b32.xlu1 %v4751_v52, %s3243_s0 }
 0x42f   :  { %2027 = vrot.lane.b32.xlu0 %v4755_v47, %s3243_s0 }
 0x431   :  { %2005 = vrot.lane.b32.xlu1 %v4745_v25, %s3244_s30 }
 0x433   :  { %2007 = vrot.lane.b32.xlu0 %v4747_v17, %s3244_s30 }
 0x435   :  { %2009 = vrot.lane.b32.xlu1 %v4751_v52, %s3244_s30 }
 0x437   :  { %2011 = vrot.lane.b32.xlu0 %v4755_v47, %s3244_s30  ;;  %s3259_s30 = smov 80  }
 0x439   :  { %1989 = vrot.lane.b32.xlu1 %v4745_v25, %s3245_s21 }
 0x43b   :  { %1991 = vrot.lane.b32.xlu0 %v4747_v17, %s3245_s21 }
 0x43d   :  { %1993 = vrot.lane.b32.xlu1 %v4751_v52, %s3245_s21 }
 0x43f   :  { %1995 = vrot.lane.b32.xlu0 %v4755_v47, %s3245_s21  ;;  %s3260_s21 = smov 83  }
 0x441   :  { %1973 = vrot.lane.b32.xlu1 %v4745_v25, %s3246_s3 }
 0x443   :  { %1975 = vrot.lane.b32.xlu0 %v4747_v17, %s3246_s3 }
 0x445   :  { %1977 = vrot.lane.b32.xlu1 %v4751_v52, %s3246_s3 }
 0x447   :  { %1979 = vrot.lane.b32.xlu0 %v4755_v47, %s3246_s3  ;;  %s3261_s3 = smov 125  }
 0x449   :  { %1957 = vrot.lane.b32.xlu1 %v4745_v25, %s3247_s24 }
 0x44b   :  { %1959 = vrot.lane.b32.xlu0 %v4747_v17, %s3247_s24 }
 0x44d   :  { %1961 = vrot.lane.b32.xlu1 %v4751_v52, %s3247_s24 }
 0x44f   :  { %1963 = vrot.lane.b32.xlu0 %v4755_v47, %s3247_s24  ;;  %s3262_s24 = smov 3  }
 0x451   :  { %1941 = vrot.lane.b32.xlu1 %v4745_v25, %s3248_s26 }
 0x453   :  { %1943 = vrot.lane.b32.xlu0 %v4747_v17, %s3248_s26 }
 0x455   :  { %1945 = vrot.lane.b32.xlu1 %v4751_v52, %s3248_s26 }
 0x457   :  { %1947 = vrot.lane.b32.xlu0 %v4755_v47, %s3248_s26  ;;  %s3263_s26 = smov 45  }
 0x459   :  { %1925 = vrot.lane.b32.xlu1 %v4745_v25, %s3249_s25 }
 0x45b   :  { %1927 = vrot.lane.b32.xlu0 %v4747_v17, %s3249_s25 }
 0x45d   :  { %1929 = vrot.lane.b32.xlu1 %v4751_v52, %s3249_s25 }
 0x45f   :  { %1931 = vrot.lane.b32.xlu0 %v4755_v47, %s3249_s25  ;;  %s3264_s25 = smov 48  }
 0x461   :  { %2057 = vperm.xlu1 %3235, %v2054_v13  }
 0x493   :  { %v2038_v18 = vpop.permute.xlu1 %2037 }
 0x495   :  { %v2040_v37 = vpop.permute.xlu0 %2039 }
 0x496   :  { %v2047_v24 = vsel %vm5761_vm3, %v2038_v18, %v2040_v37  ;;  %vm5773_vm3 = vnez %v5505_v11 }
 0x497   :  { %v2042_v2 = vpop.permute.xlu1 %2041 }
 0x498   :  { %v2046_v30 = vsel %vm5760_vm10, %v2040_v37, %v2042_v2 }
 0x499   :  { %v2044_v45 = vpop.permute.xlu0 %2043  ;;  %3132 = vmatprep.subr.msk.mxu0 %vm3661_vm14, %v2046_v30  ;;  %vm5764_vm14 = vcmp.lt.s32.totalorder %v3637_v63, 112 }
 0x49a   :  { %v2045_v0 = vsel %vm5762_vm4, %v2042_v2, %v2044_v45  ;;  %v2048_v28 = vsel %vm5763_vm8, %v2044_v45, %v2038_v18  ;;  %3133 = vmatpush1.msk.msra.mxu0 %vm5680_vm7, %v2047_v24  ;;  %vm5765_vm10 = vmmov %vm5764_vm14  ;;  %vm5774_vm4 = vnez %v5507_v16 }
 0x49b   :  { %3149 = vmatprep.subr.msk.mxu1 %vm3693_vm2, %v2048_v28  ;;  %v2022_v51 = vpop.permute.xlu1 %2021  ;;  %vm5766_vm7 = vmmov %vm5765_vm10 }
 0x49c   :  { %3150 = vmatpush1.msk.msra.mxu1 %vm5685_vm0, %v2045_v0  ;;  %vm5767_vm2 = vmmov %vm5766_vm7 }
 0x49d   :  { %v2024_v12 = vpop.permute.xlu0 %2023 }
 0x49e   :  { %v2031_v44 = vsel %vm5765_vm10, %v2022_v51, %v2024_v12 }
 0x49f   :  { %v2026_v55 = vpop.permute.xlu1 %2025 }
 0x4a0   :  { %v2030_v10 = vsel %vm5764_vm14, %v2024_v12, %v2026_v55  ;;  %vm5777_vm14 = vnez %v5512_v21 }
 0x4a1   :  { %v2028_v9 = vpop.permute.xlu0 %2027  ;;  %3134 = vmatprep.subr.msk.mxu0 %vm5684_vm9, %v2030_v10  ;;  %vm5768_vm9 = vcmp.lt.s32.totalorder %v3637_v63, 113 }
 0x4a2   :  { %v2029_v15 = vsel %vm5766_vm7, %v2026_v55, %v2028_v9  ;;  %v2032_v22 = vsel %vm5767_vm2, %v2028_v9, %v2022_v51  ;;  %3135 = vmatpush1.msk.msra.mxu0 %vm5688_vm1, %v2031_v44  ;;  %vm5769_vm0 = vmmov %vm5768_vm9  ;;  %vm5780_vm2 = vnez %v5516_v33 }
 0x4a3   :  { %3151 = vmatprep.subr.msk.mxu1 %vm5587_vm15, %v2032_v22  ;;  %v2006_v26 = vpop.permute.xlu1 %2005  ;;  %vm5770_vm1 = vmmov %vm5769_vm0 }
 0x4a4   :  { %3152 = vmatpush1.msk.msra.mxu1 %vm5692_vm12, %v2029_v15  ;;  %vm5771_vm15 = vmmov %vm5769_vm0  ;;  %vm5772_vm12 = vnez %v5503_v1 }
 0x4a5   :  { %v2008_v29 = vpop.permute.xlu0 %2007 }
 0x4a6   :  { %v2015_v13 = vsel %vm5769_vm0, %v2006_v26, %v2008_v29  ;;  %vm5782_vm0 = vnez %v5521_v46 }
 0x4a7   :  { %v2010_v4 = vpop.permute.xlu1 %2009 }
 0x4a8   :  { %v2014_v27 = vsel %vm5768_vm9, %v2008_v29, %v2010_v4  ;;  %vm5781_vm9 = vnez %v5519_v40 }
 0x4a9   :  { %v2012_v18 = vpop.permute.xlu0 %2011  ;;  %3136 = vmatprep.subr.msk.mxu0 %vm5691_vm5, %v2014_v27  ;;  %vm5775_vm5 = vcmp.lt.s32.totalorder %v3637_v63, 127 }
 0x4aa   :  { %v2013_v36 = vsel %vm5770_vm1, %v2010_v4, %v2012_v18  ;;  %v2016_v41 = vsel %vm5771_vm15, %v2012_v18, %v2006_v26  ;;  %3137 = vmatpush1.msk.msra.mxu0 %vm5772_vm12, %v2015_v13  ;;  %vm5776_vm8 = vmmov %vm5775_vm5  ;;  %vm5783_vm1 = vcmp.lt.s32.totalorder %v3637_v63, 1  ;;  %vm5784_vm15 = vnez %v5708_v49 }
 0x4ab   :  { %3153 = vmatprep.subr.msk.mxu1 %vm5773_vm3, %v2016_v41  ;;  %v1990_v48 = vpop.permute.xlu1 %1989  ;;  %vm5778_vm10 = vmmov %vm5775_vm5 }
 0x4ac   :  { %3154 = vmatpush1.msk.msra.mxu1 %vm5774_vm4, %v2013_v36  ;;  %vm5779_vm7 = vmmov %vm5775_vm5 }
 0x4ad   :  { %v1992_v37 = vpop.permute.xlu0 %1991  ;;  %vm5785_vm12 = vmmov %vm5783_vm1 }
 0x4ae   :  { %v1999_v30 = vsel %vm5776_vm8, %v1990_v48, %v1992_v37  ;;  %vm5786_vm3 = vmmov %vm5783_vm1  ;;  %vm5789_vm8 = vnez %v5715_v31 }
 0x4af   :  { %v1994_v2 = vpop.permute.xlu1 %1993  ;;  %vm5787_vm4 = vmmov %vm5783_vm1 }
 0x4b0   :  { %v1998_v57 = vsel %vm5775_vm5, %v1992_v37, %v1994_v2  ;;  %vm5788_vm5 = vnez %v5714_v8 }
 0x4b1   :  { %v1996_v24 = vpop.permute.xlu0 %1995  ;;  %3138 = vmatprep.subr.msk.mxu0 %vm5777_vm14, %v1998_v57  ;;  %vm5790_vm14 = vnez %v5724_v35  ;;  %v1490_v57 = vld [vmem:[%s5336_s10] sm:$0xff] }
 0x4b2   :  { %v1997_v1 = vsel %vm5778_vm10, %v1994_v2, %v1996_v24  ;;  %v2000_v11 = vsel %vm5779_vm7, %v1996_v24, %v1990_v48  ;;  %3139 = vmatpush1.msk.msra.mxu0 %vm5780_vm2, %v1999_v30  ;;  %vm5791_vm10 = vcmp.lt.s32.totalorder %v3637_v63, 15  ;;  %vm5792_vm7 = vnez %v5722_v32  ;;  %v2544_v2 = vld [vmem:[%s5335_s16] sm:$0xff] }
 0x4b3   :  { %2085 = vmatprep.subr.mxu0 %v4747_v17  ;;  %3155 = vmatprep.subr.msk.mxu1 %vm5781_vm9, %v2000_v11  ;;  %v1974_v16 = vpop.permute.xlu1 %1973  ;;  %vm5793_vm2 = vmmov %vm5791_vm10  ;;  %v719_v30 = vld [vmem:[%s5337_s6] sm:$0xff]  ;;  %v2701_v11 = vld [vmem:[%s5338_s18 + $0x10] sm:$0xff] }
 0x4b4   :  { %2086 = vmatpush1.msra.mxu0 %v4745_v25  ;;  %3156 = vmatpush1.msk.msra.mxu1 %vm5782_vm0, %v1997_v1  ;;  %vm5794_vm9 = vmmov %vm5793_vm2  ;;  %v2699_v24 = vld [vmem:[%s5338_s18] sm:$0xff]  ;;  %v2700_v1 = vld [vmem:[%s5338_s18 + $0x8] sm:$0xff] }
 0x4b5   :  { %v1976_v21 = vpop.permute.xlu0 %1975  ;;  %2156 = vmatprep.subr.mxu1 %v4755_v47  ;;  %vm5795_vm0 = vmmov %vm5793_vm2 }
 0x4b6   :  { %v1983_v45 = vsel %vm5783_vm1, %v1974_v16, %v1976_v21  ;;  %2157 = vmatpush1.msra.mxu1 %v4751_v52  ;;  %vm5796_vm1 = vnez %v5729_v19 }
 0x4b7   :  { %3140 = vmatprep.subr.msk.mxu0 %vm5784_vm15, %v1983_v45  ;;  %v1978_v33 = vpop.permute.xlu1 %1977  ;;  %vm5797_vm15 = vnez %v5731_v34  ;;  %v91_v45 = vld [vmem:[%s5477_s1 + $0x20] sm:$0xff] }
 0x4b8   :  { %v1982_v25 = vsel %vm5787_vm4, %v1976_v21, %v1978_v33  ;;  %vm5800_vm4 = vnez %v5735_v39  ;;  %v90_v21 = vld [vmem:[%s5477_s1 + $0x18] sm:$0xff] }
 0x4b9   :  { %v1980_v40 = vpop.permute.xlu0 %1979 }
 0x4ba   :  { %v1981_v17 = vsel %vm5785_vm12, %v1978_v33, %v1980_v40  ;;  %v1984_v46 = vsel %vm5786_vm3, %v1980_v40, %v1974_v16  ;;  %vm5798_vm12 = vnez %v5737_v42  ;;  %vm5799_vm3 = vcmp.lt.s32.totalorder %v3637_v63, 16  ;;  %v2702_v16 = vld [vmem:[%s5338_s18 + $0x18] sm:$0xff]  ;;  %v92_v33 = vld [vmem:[%s5477_s1 + $0x28] sm:$0xff]  ;;  %v93_v40 = vld [vmem:[%s5477_s1 + $0x30] sm:$0xff] }
 0x4bb   :  { %3141 = vmatpush1.msk.msra.mxu0 %vm5788_vm5, %v1984_v46  ;;  %3157 = vmatprep.subr.msk.mxu1 %vm5789_vm8, %v1981_v17  ;;  %v1958_v52 = vpop.permute.xlu1 %1957  ;;  %vm5801_vm5 = vmmov %vm5799_vm3  ;;  %v5814_v17 = vld [vmem:[#allocation45_spill] sm:$0xff] }
 0x4bc   :  { %3158 = vmatpush1.msk.msra.mxu1 %vm5790_vm14, %v1982_v25  ;;  %vm5802_vm8 = vmmov %vm5799_vm3  ;;  %v2432_v46 = vadd.s32 3, %v5814_v17  ;;  %v3238_v25 = vld [vmem:[%s5326_s2] sm:$0xf] }
 0x4bd   :  { %v1960_v49 = vpop.permute.xlu0 %1959  ;;  %vm5803_vm14 = vmmov %vm5799_vm3 }
 0x4be   :  { %v1967_v47 = vsel %vm5791_vm10, %v1958_v52, %v1960_v49  ;;  %vm5804_vm10 = vnez %v5740_v14  ;;  %v2053_v14 = vld [vmem:[%s5334_s13] sm:$0xff]  ;;  %s3258_s13 = smov 77  }
 0x4bf   :  { %3142 = vmatprep.subr.msk.mxu0 %vm5792_vm7, %v1967_v47  ;;  %v1962_v0 = vpop.permute.xlu1 %1961  ;;  %vm5805_vm7 = vnez %v5742_v23 }
 0x4c0   :  { %v1966_v51 = vsel %vm5795_vm0, %v1960_v49, %v1962_v0  ;;  %vm5808_vm0 = vnez %v5744_v50 }
 0x4c1   :  { %v1964_v28 = vpop.permute.xlu0 %1963 }
 0x4c2   :  { %v1965_v8 = vsel %vm5793_vm2, %v1962_v0, %v1964_v28  ;;  %v1968_v31 = vsel %vm5794_vm9, %v1964_v28, %v1958_v52  ;;  %vm5806_vm2 = vnez %v5746_v56  ;;  %vm5807_vm9 = vcmp.lt.s32.totalorder %v3637_v63, 17 }
 0x4c3   :  { %3143 = vmatpush1.msk.msra.mxu0 %vm5796_vm1, %v1968_v31  ;;  %3159 = vmatprep.subr.msk.mxu1 %vm5797_vm15, %v1965_v8  ;;  %v1942_v35 = vpop.permute.xlu1 %1941  ;;  %vm5809_vm1 = vmmov %vm5807_vm9  ;;  %v5036_v52 = vadd.s32 3, %v3238_v25  ;;  %v5056_v28 = vadd.s32 4294967293, %v3238_v25 }
 0x4c4   :  { %3160 = vmatpush1.msk.msra.mxu1 %vm5798_vm12, %v1966_v51  ;;  %vm5810_vm15 = vmmov %vm5809_vm1 }
 0x4c5   :  { %v1944_v32 = vpop.permute.xlu0 %1943  ;;  %vm5811_vm12 = vmmov %vm5809_vm1 }
 0x4c6   :  { %v1951_v12 = vsel %vm5799_vm3, %v1942_v35, %v1944_v32  ;;  %vm5812_vm3 = vcmask 588800  }
 0x4c7   :  { %3144 = vmatprep.subr.msk.mxu0 %vm5800_vm4, %v1951_v12  ;;  %v1946_v55 = vpop.permute.xlu1 %1945  ;;  %vm5813_vm4 = vmmov %vm5812_vm3 }
 0x4c8   :  { %v1950_v44 = vsel %vm5803_vm14, %v1944_v32, %v1946_v55 }
 0x4c9   :  { %v1948_v10 = vpop.permute.xlu0 %1947 }
 0x4ca   :  { %v1949_v19 = vsel %vm5801_vm5, %v1946_v55, %v1948_v10  ;;  %v1952_v34 = vsel %vm5802_vm8, %v1948_v10, %v1942_v35  ;;  %vm2312_vm8 = vcmp.lt.s32.totalorder %v5036_v52, 16 }
 0x4cb   :  { %3145 = vmatpush1.msk.msra.mxu0 %vm5804_vm10, %v1952_v34  ;;  %3161 = vmatprep.subr.msk.mxu1 %vm5805_vm7, %v1949_v19  ;;  %v1926_v42 = vpop.permute.xlu1 %1925  ;;  %vm5817_vm7 = vcmp.ge.s32.totalorder %v3593_v54, 0 }
 0x4cc   :  { %3162 = vmatpush1.msk.msra.mxu1 %vm5806_vm2, %v1950_v44 }
 0x4cd   :  { %v1928_v39 = vpop.permute.xlu0 %1927 }
 0x4ce   :  { %v1935_v9 = vsel %vm5807_vm9, %v1926_v42, %v1928_v39  ;;  %vm5818_vm9 = vcmp.lt.s32.totalorder %v3593_v54, 16 }
 0x4cf   :  { %3146 = vmatprep.subr.msk.mxu0 %vm5808_vm0, %v1935_v9  ;;  %v1930_v15 = vpop.permute.xlu1 %1929 }
 0x4d0   :  { %v1934_v26 = vsel %vm5811_vm12, %v1928_v39, %v1930_v15  ;;  %vm2227_vm12 = vcmp.ge.s32.totalorder %v5056_v28, 0 }
 0x4d1   :  { %v1932_v22 = vpop.permute.xlu0 %1931 }
 0x4d2   :  { %v1933_v23 = vsel %vm5809_vm1, %v1930_v15, %v1932_v22  ;;  %v1936_v56 = vsel %vm5810_vm15, %v1932_v22, %v1926_v42  ;;  %vm2511_vm1 = vcmp.lt.s32.totalorder %v3637_v63, 77 }
 0x4d3   :  { %3147 = vmatpush1.msk.msra.mxu0 %vm5753_vm6, %v1936_v56  ;;  %3163 = vmatprep.subr.msk.mxu1 %vm5755_vm11, %v1933_v23  ;;  %vm2433_vm11 = vcmp.ge.s32.totalorder %v2432_v46, 0  ;;  %vm2434_vm6 = vcmp.lt.s32.totalorder %v2432_v46, 16 }
 0x4d4   :  { %3148 = vmatmul.mubr.msk.f32.vlgmr.msra.gmra.mxu0 %vm5812_vm3, %v2053_v14  ;;  %3164 = vmatpush1.msk.msra.mxu1 %vm5758_vm13, %v1934_v26  ;;  %vm2310_vm13 = vcmp.ge.s32.totalorder %v5036_v52, 0  ;;  %vm5039_vm5 = vmand %vm2433_vm11, %vm2434_vm6  ;;  %vm2229_vm6 = vcmp.lt.s32.totalorder %v5056_v28, 16 }
 0x4d5   :  { %3165 = vmatmul.mubr.msk.f32.vlgmr.msra.gmra.mxu1 %vm5813_vm4, %v2053_v14  ;;  %2617 = vmatprep.mubr.f32.mxu0 %v5750_v38  ;;  %vm2516_vm14 = vmand %vm5039_vm5, %vm2310_vm13 }
 0x4d6   :  { %2688 = vmatprep.mubr.f32.mxu1 %v5750_v38  ;;  %vm2517_vm10 = vmand %vm2516_vm14, %vm2312_vm8 }
 0x4d7   :  { %v2518_v47 = vsel %vm2517_vm10, 1, %v5658_v6  ;;  %vm2476_vm2 = vmand %vm5039_vm5, %vm5817_vm7 }
 0x4d8   :  { %v2526_v0 = vrot.slane %v2518_v47, %v3628_v60  ;;  %v2522_v31 = vrot.slane %v2518_v47, %v3631_v62  ;;  %v2534_v51 = vrot.slane %v2518_v47, %v3648_v5  ;;  %vm2477_vm0 = vmand %vm2476_vm2, %vm5818_vm9  ;;  %v2530_v32 = vrot.slane %v2518_v47, %v3651_v7 }
 0x4d9   :  { %v2478_v55 = vsel %vm2477_vm0, 1, %v5658_v6  ;;  %vm2436_vm14 = vmand %vm5039_vm5, %vm2227_vm12  ;;  %vm2471_vm5 = vcmp.lt.s32.totalorder %v3637_v63, 80 }
 0x4da   :  { %vm2536_vm15 = vcmp.eq.s32.totalorder %v2526_v0, 1  ;;  %vm2535_vm3 = vcmp.eq.s32.totalorder %v2522_v31, 1  ;;  %vm2538_vm4 = vcmp.eq.s32.totalorder %v2534_v51, 1  ;;  %vm2537_vm11 = vcmp.eq.s32.totalorder %v2530_v32, 1  ;;  %vm2437_vm10 = vmand %vm2436_vm14, %vm2229_vm6 }
 0x4db   :  { %v2486_v39 = vrot.slane %v2478_v55, %v3628_v60  ;;  %v2482_v15 = vrot.slane %v2478_v55, %v3631_v62  ;;  %v2494_v22 = vrot.slane %v2478_v55, %v3648_v5  ;;  %v2490_v23 = vrot.slane %v2478_v55, %v3651_v7 }
 0x4dc   :  { %v2058_v50 = vpop.permute.xlu1 %2057  ;;  %v2438_v26 = vsel %vm2437_vm10, 1, %v5658_v6 }
 0x4dd   :  { %vm2496_vm7 = vcmp.eq.s32.totalorder %v2486_v39, 1  ;;  %vm2495_vm2 = vcmp.eq.s32.totalorder %v2482_v15, 1  ;;  %vm2498_vm9 = vcmp.eq.s32.totalorder %v2494_v22, 1  ;;  %vm2497_vm0 = vcmp.eq.s32.totalorder %v2490_v23, 1 }
 0x594   :  { %v2129_v29 = vpop.f32.mrf.mxu0 }
 0x595   :  { %v2130_v4 = vadd.f32 %v2129_v29, %v2058_v50  ;;  %v2200_v27 = vpop.f32.mrf.mxu1 }
 0x596   :  { %v2131_v20 = vpop.f32.mrf.mxu0  ;;  %v2201_v3 = vadd.f32 %v2200_v27, %v2058_v50  ;;  %v5819_v27 = vld [vmem:[#allocation2_spill] sm:$0xff] }
 0x597   :  { %v4959_v13 = vmax.f32 %v2130_v4, 0.0  ;;  %v2132_v18 = vadd.f32 %v2131_v20, %v2058_v50  ;;  %v2202_v36 = vpop.f32.mrf.mxu1 }
 0x598   :  { %v2203_v59 = vadd.f32 %v2202_v36, %v2058_v50  ;;  %v4964_v48 = vmax.f32 %v2201_v3, 0.0 }
 0x599   :  { %v4961_v41 = vmax.f32 %v2132_v18, 0.0  ;;  %2503 = vrot.lane.b32.xlu0 %v4959_v13, %s3258_s13  ;;  %v2446_v18 = vrot.slane %v2438_v26, %v3628_v60 }
 0x59a   :  { %v4967_v37 = vmax.f32 %v2203_v59, 0.0  ;;  %v2442_v59 = vrot.slane %v2438_v26, %v3631_v62 }
 0x59b   :  { %2505 = vrot.lane.b32.xlu1 %v4961_v41, %s3258_s13 }
 0x59c   :  { %vm2455_vm14 = vcmp.eq.s32.totalorder %v2442_v59, 1 }
 0x59d   :  { %2507 = vrot.lane.b32.xlu0 %v4964_v48, %s3258_s13 }
 0x59f   :  { %2509 = vrot.lane.b32.xlu1 %v4967_v37, %s3258_s13 }
 0x5a1   :  { %2463 = vrot.lane.b32.xlu0 %v4959_v13, %s3259_s30 }
 0x5a3   :  { %2465 = vrot.lane.b32.xlu1 %v4961_v41, %s3259_s30 }
 0x5a5   :  { %2467 = vrot.lane.b32.xlu0 %v4964_v48, %s3259_s30 }
 0x5a7   :  { %2469 = vrot.lane.b32.xlu1 %v4967_v37, %s3259_s30 }
 0x5a9   :  { %2419 = vrot.lane.b32.xlu0 %v4959_v13, %s3260_s21 }
 0x5ab   :  { %2421 = vrot.lane.b32.xlu1 %v4961_v41, %s3260_s21 }
 0x5ad   :  { %2423 = vrot.lane.b32.xlu0 %v4964_v48, %s3260_s21 }
 0x5af   :  { %2425 = vrot.lane.b32.xlu1 %v4967_v37, %s3260_s21 }
 0x5b1   :  { %2379 = vrot.lane.b32.xlu0 %v4959_v13, %s3261_s3 }
 0x5b3   :  { %2381 = vrot.lane.b32.xlu1 %v4961_v41, %s3261_s3 }
 0x5b5   :  { %2383 = vrot.lane.b32.xlu0 %v4964_v48, %s3261_s3 }
 0x5b7   :  { %2385 = vrot.lane.b32.xlu1 %v4967_v37, %s3261_s3 }
 0x5b9   :  { %2339 = vrot.lane.b32.xlu0 %v4959_v13, %s3262_s24 }
 0x5bb   :  { %2341 = vrot.lane.b32.xlu1 %v4961_v41, %s3262_s24 }
 0x5bd   :  { %2343 = vrot.lane.b32.xlu0 %v4964_v48, %s3262_s24 }
 0x5bf   :  { %2345 = vrot.lane.b32.xlu1 %v4967_v37, %s3262_s24 }
 0x5c1   :  { %2296 = vrot.lane.b32.xlu0 %v4959_v13, %s3263_s26 }
 0x5c3   :  { %2298 = vrot.lane.b32.xlu1 %v4961_v41, %s3263_s26 }
 0x5c5   :  { %2300 = vrot.lane.b32.xlu0 %v4964_v48, %s3263_s26 }
 0x5c7   :  { %2302 = vrot.lane.b32.xlu1 %v4967_v37, %s3263_s26 }
 0x5c9   :  { %2256 = vrot.lane.b32.xlu0 %v4959_v13, %s3264_s25 }
 0x5cb   :  { %2258 = vrot.lane.b32.xlu1 %v4961_v41, %s3264_s25 }
 0x5cd   :  { %2260 = vrot.lane.b32.xlu0 %v4964_v48, %s3264_s25 }
 0x5cf   :  { %2262 = vrot.lane.b32.xlu1 %v4967_v37, %s3264_s25 }
 0x5d1   :  { %2209 = vrot.lane.b32.xlu0 %v4959_v13, %s3265_s7 }
 0x5d3   :  { %2211 = vrot.lane.b32.xlu1 %v4961_v41, %s3265_s7 }
 0x5d5   :  { %2213 = vrot.lane.b32.xlu0 %v4964_v48, %s3265_s7 }
 0x5d7   :  { %2215 = vrot.lane.b32.xlu1 %v4967_v37, %s3265_s7 }
 0x5d9   :  { %2547 = vperm.xlu0 %3234, %v2544_v2   ;;  %v2454_v2 = vrot.slane %v2438_v26, %v3648_v5 }
 0x5db   :  { %1493 = vperm.xlu1 %3235, %v1490_v57  }
 0x5dd   :  { %722 = vperm.xlu0 %3234, %v719_v30   ;;  %v2450_v30 = vrot.slane %v2438_v26, %v3651_v7 }
 0x5df   :  { %2705 = vperm.xlu1 %3235, %v2699_v24   ;;  %v3239_v24 = vld [vmem:[%s5478_s22] sm:$0xf] }
 0x5e1   :  { %2710 = vperm.xlu0 %3234, %v2700_v1   ;;  %v2222_v1 = vadd.s32 4294967293, %v3239_v24 }
 0x5e3   :  { %2715 = vperm.xlu1 %3235, %v2701_v11  }
 0x5e5   :  { %2720 = vperm.xlu0 %3234, %v2702_v16  }
 0x5e7   :  { %111 = vperm.xlu1 %3235, %v90_v21  }
 0x5e9   :  { %116 = vperm.xlu0 %3234, %v91_v45  }
 0x5eb   :  { %121 = vperm.xlu1 %3235, %v92_v33  }
 0x5ed   :  { %126 = vperm.xlu0 %3234, %v93_v40  }
 0x60b   :  { %v2504_v8 = vpop.permute.xlu0 %2503 }
 0x60d   :  { %v2506_v35 = vpop.permute.xlu1 %2505 }
 0x60e   :  { %v2514_v19 = vsel %vm2511_vm1, %v2504_v8, %v2506_v35 }
 0x60f   :  { %v2508_v12 = vpop.permute.xlu0 %2507 }
 0x610   :  { %v2513_v10 = vsel %vm2511_vm1, %v2506_v35, %v2508_v12 }
 0x611   :  { %v2510_v34 = vpop.permute.xlu1 %2509  ;;  %3166 = vmatprep.subr.msk.mxu0 %vm2536_vm15, %v2513_v10 }
 0x612   :  { %v2512_v44 = vsel %vm2511_vm1, %v2508_v12, %v2510_v34  ;;  %v2515_v42 = vsel %vm2511_vm1, %v2510_v34, %v2504_v8  ;;  %3167 = vmatpush1.msk.msra.mxu0 %vm2535_vm3, %v2514_v19  ;;  %vm5820_vm1 = vnez %v5819_v27 }
 0x613   :  { %3183 = vmatprep.subr.msk.mxu1 %vm2538_vm4, %v2515_v42  ;;  %v2464_v9 = vpop.permute.xlu0 %2463  ;;  %vm2392_vm15 = vmand %vm5820_vm1, %vm2310_vm13  ;;  %vm2427_vm4 = vcmp.lt.s32.totalorder %v3637_v63, 83 }
 0x614   :  { %3184 = vmatpush1.msk.msra.mxu1 %vm2537_vm11, %v2512_v44  ;;  %vm2393_vm3 = vmand %vm2392_vm15, %vm2312_vm8  ;;  %vm2456_vm11 = vcmp.eq.s32.totalorder %v2446_v18, 1  ;;  %vm2387_vm15 = vcmp.lt.s32.totalorder %v3637_v63, 125 }
 0x615   :  { %v2466_v14 = vpop.permute.xlu1 %2465  ;;  %v2394_v16 = vsel %vm2393_vm3, 1, %v5658_v6  ;;  %vm2352_vm10 = vmand %vm5820_vm1, %vm2227_vm12 }
 0x616   :  { %v2474_v29 = vsel %vm2471_vm5, %v2464_v9, %v2466_v14  ;;  %v2402_v46 = vrot.slane %v2394_v16, %v3628_v60  ;;  %v2398_v49 = vrot.slane %v2394_v16, %v3631_v62  ;;  %v2410_v47 = vrot.slane %v2394_v16, %v3648_v5 }
 0x617   :  { %v2468_v56 = vpop.permute.xlu0 %2467  ;;  %v2406_v31 = vrot.slane %v2394_v16, %v3651_v7 }
 0x618   :  { %v2473_v50 = vsel %vm2471_vm5, %v2466_v14, %v2468_v56  ;;  %vm2412_vm3 = vcmp.eq.s32.totalorder %v2402_v46, 1 }
 0x619   :  { %v2470_v4 = vpop.permute.xlu1 %2469  ;;  %3168 = vmatprep.subr.msk.mxu0 %vm2496_vm7, %v2473_v50  ;;  %vm2457_vm7 = vcmp.eq.s32.totalorder %v2450_v30, 1 }
 0x61a   :  { %v2472_v20 = vsel %vm2471_vm5, %v2468_v56, %v2470_v4  ;;  %v2475_v3 = vsel %vm2471_vm5, %v2470_v4, %v2464_v9  ;;  %3169 = vmatpush1.msk.msra.mxu0 %vm2495_vm2, %v2474_v29  ;;  %vm2458_vm5 = vcmp.eq.s32.totalorder %v2454_v2, 1  ;;  %vm2223_vm2 = vcmp.ge.s32.totalorder %v2222_v1, 0 }
 0x61b   :  { %3185 = vmatprep.subr.msk.mxu1 %vm2498_vm9, %v2475_v3  ;;  %v2420_v36 = vpop.permute.xlu0 %2419  ;;  %vm2224_vm9 = vcmp.lt.s32.totalorder %v2222_v1, 16 }
 0x61c   :  { %3186 = vmatpush1.msk.msra.mxu1 %vm2497_vm0, %v2472_v20  ;;  %vm2353_vm0 = vmand %vm2352_vm10, %vm2229_vm6  ;;  %vm2413_vm10 = vcmp.eq.s32.totalorder %v2406_v31, 1 }
 0x61d   :  { %v2422_v57 = vpop.permute.xlu1 %2421  ;;  %vm5103_vm1 = vmand %vm2223_vm2, %vm2224_vm9  ;;  %v2354_v51 = vsel %vm2353_vm0, 1, %v5658_v6 }
 0x61e   :  { %v2430_v45 = vsel %vm2427_vm4, %v2420_v36, %v2422_v57  ;;  %v2362_v12 = vrot.slane %v2354_v51, %v3628_v60  ;;  %v2358_v42 = vrot.slane %v2354_v51, %v3631_v62  ;;  %v2370_v39 = vrot.slane %v2354_v51, %v3648_v5 }
 0x61f   :  { %v2424_v11 = vpop.permute.xlu0 %2423  ;;  %v2366_v52 = vrot.slane %v2354_v51, %v3651_v7  ;;  %v2543_v51 = vld [vmem:[%s5339_s15] sm:$0xff] }
 0x620   :  { %v2429_v21 = vsel %vm2427_vm4, %v2422_v57, %v2424_v11  ;;  %vm2371_vm9 = vcmp.eq.s32.totalorder %v2358_v42, 1  ;;  %vm2374_vm0 = vcmp.eq.s32.totalorder %v2370_v39, 1 }
 0x621   :  { %v2426_v33 = vpop.permute.xlu1 %2425  ;;  %3170 = vmatprep.subr.msk.mxu0 %vm2456_vm11, %v2429_v21  ;;  %vm2311_vm11 = vmand %vm5103_vm1, %vm2310_vm13  ;;  %vm2347_vm13 = vcmp.lt.s32.totalorder %v3637_v63, 3 }
 0x622   :  { %v2428_v40 = vsel %vm2427_vm4, %v2424_v11, %v2426_v33  ;;  %v2431_v17 = vsel %vm2427_vm4, %v2426_v33, %v2420_v36  ;;  %3171 = vmatpush1.msk.msra.mxu0 %vm2455_vm14, %v2430_v45  ;;  %vm2411_vm4 = vcmp.eq.s32.totalorder %v2398_v49, 1  ;;  %vm2414_vm14 = vcmp.eq.s32.totalorder %v2410_v47, 1 }
 0x623   :  { %3187 = vmatprep.subr.msk.mxu1 %vm2458_vm5, %v2431_v17  ;;  %v2380_v25 = vpop.permute.xlu0 %2379  ;;  %vm2313_vm5 = vmand %vm2311_vm11, %vm2312_vm8  ;;  %vm5823_vm8 = vcmp.ge.s32.totalorder %v3593_v54, 0  ;;  %vm2304_vm11 = vcmp.lt.s32.totalorder %v3637_v63, 45 }
 0x624   :  { %3188 = vmatpush1.msk.msra.mxu1 %vm2457_vm7, %v2428_v40  ;;  %vm2372_vm7 = vcmp.eq.s32.totalorder %v2362_v12, 1  ;;  %v2314_v15 = vsel %vm2313_vm5, 1, %v5658_v6  ;;  %vm2269_vm2 = vmand %vm5103_vm1, %vm5823_vm8 }
 0x625   :  { %v2382_v8 = vpop.permute.xlu1 %2381  ;;  %v2318_v26 = vrot.slane %v2314_v15, %v3631_v62  ;;  %v2330_v50 = vrot.slane %v2314_v15, %v3648_v5  ;;  %v2326_v4 = vrot.slane %v2314_v15, %v3651_v7 }
 0x626   :  { %v2390_v55 = vsel %vm2387_vm15, %v2380_v25, %v2382_v8 }
 0x627   :  { %v2384_v35 = vpop.permute.xlu0 %2383  ;;  %vm2331_vm5 = vcmp.eq.s32.totalorder %v2318_v26, 1  ;;  %v2698_v26 = vld [vmem:[%s5340_s17 + $0x18] sm:$0xff] }
 0x628   :  { %v2389_v32 = vsel %vm2387_vm15, %v2382_v8, %v2384_v35 }
 0x629   :  { %v2386_v10 = vpop.permute.xlu1 %2385  ;;  %3172 = vmatprep.subr.msk.mxu0 %vm2412_vm3, %v2389_v32  ;;  %vm5824_vm3 = vcmp.lt.s32.totalorder %v3593_v54, 16 }
 0x62a   :  { %v2388_v19 = vsel %vm2387_vm15, %v2384_v35, %v2386_v10  ;;  %v2391_v34 = vsel %vm2387_vm15, %v2386_v10, %v2380_v25  ;;  %3173 = vmatpush1.msk.msra.mxu0 %vm2411_vm4, %v2390_v55  ;;  %vm2373_vm15 = vcmp.eq.s32.totalorder %v2366_v52, 1  ;;  %vm2270_vm4 = vmand %vm2269_vm2, %vm5824_vm3 }
 0x62b   :  { %2575 = vmatprep.subr.mxu0 %v4961_v41  ;;  %3189 = vmatprep.subr.msk.mxu1 %vm2414_vm14, %v2391_v34  ;;  %v2340_v44 = vpop.permute.xlu0 %2339  ;;  %v2271_v54 = vsel %vm2270_vm4, 1, %v5658_v6 }
 0x62c   :  { %2576 = vmatpush1.msra.mxu0 %v4959_v13  ;;  %3190 = vmatpush1.msk.msra.mxu1 %vm2413_vm10, %v2388_v19  ;;  %vm2228_vm10 = vmand %vm5103_vm1, %vm2227_vm12  ;;  %v2279_v3 = vrot.slane %v2271_v54, %v3628_v60  ;;  %vm2264_vm12 = vcmp.lt.s32.totalorder %v3637_v63, 48  ;;  %v2275_v30 = vrot.slane %v2271_v54, %v3631_v62  ;;  %v2287_v24 = vrot.slane %v2271_v54, %v3648_v5 }
 0x62d   :  { %v2342_v9 = vpop.permute.xlu1 %2341  ;;  %2646 = vmatprep.subr.mxu1 %v4967_v37  ;;  %v2322_v37 = vrot.slane %v2314_v15, %v3628_v60  ;;  %vm2230_vm8 = vmand %vm2228_vm10, %vm2229_vm6  ;;  %v2283_v11 = vrot.slane %v2271_v54, %v3651_v7 }
 0x62e   :  { %v2350_v41 = vsel %vm2347_vm13, %v2340_v44, %v2342_v9  ;;  %2647 = vmatpush1.msra.mxu1 %v4964_v48  ;;  %vm2289_vm1 = vcmp.eq.s32.totalorder %v2279_v3, 1  ;;  %v2231_v28 = vsel %vm2230_vm8, 1, %v5658_v6  ;;  %vm2288_vm6 = vcmp.eq.s32.totalorder %v2275_v30, 1 }
 0x62f   :  { %3174 = vmatprep.subr.msk.mxu0 %vm2372_vm7, %v2350_v41  ;;  %v2344_v13 = vpop.permute.xlu0 %2343  ;;  %vm2332_vm14 = vcmp.eq.s32.totalorder %v2322_v37, 1  ;;  %vm2333_vm7 = vcmp.eq.s32.totalorder %v2326_v4, 1  ;;  %vm2291_vm2 = vcmp.eq.s32.totalorder %v2287_v24, 1  ;;  %v2239_v45 = vrot.slane %v2231_v28, %v3628_v60  ;;  %v5833_v24 = vld [vmem:[#allocation22_spill] sm:$0xff] }
 0x630   :  { %v2349_v48 = vsel %vm2347_vm13, %v2342_v9, %v2344_v13  ;;  %v2235_v60 = vrot.slane %v2231_v28, %v3631_v62  ;;  %v2247_v25 = vrot.slane %v2231_v28, %v3648_v5  ;;  %v2243_v47 = vrot.slane %v2231_v28, %v3651_v7 }
 0x631   :  { %v2346_v22 = vpop.permute.xlu1 %2345 }
 0x632   :  { %v2348_v14 = vsel %vm2347_vm13, %v2344_v13, %v2346_v22  ;;  %v2351_v23 = vsel %vm2347_vm13, %v2346_v22, %v2340_v44  ;;  %vm2334_vm13 = vcmp.eq.s32.totalorder %v2330_v50, 1  ;;  %vm2248_vm3 = vcmp.eq.s32.totalorder %v2235_v60, 1  ;;  %v5827_v13 = vld [vmem:[#allocation38_spill] sm:$0xff]  ;;  %v5828_v22 = vld [vmem:[#allocation36_spill] sm:$0xff] }
 0x633   :  { %3175 = vmatpush1.msk.msra.mxu0 %vm2371_vm9, %v2351_v23  ;;  %3191 = vmatprep.subr.msk.mxu1 %vm2374_vm0, %v2348_v14  ;;  %v2297_v56 = vpop.permute.xlu0 %2296  ;;  %vm2290_vm9 = vcmp.eq.s32.totalorder %v2283_v11, 1  ;;  %vm2217_vm0 = vcmp.lt.s32.totalorder %v3637_v63, 51  ;;  %vm2251_vm4 = vcmp.eq.s32.totalorder %v2247_v25, 1  ;;  %v5829_v23 = vld [vmem:[#allocation39_spill] sm:$0xff] }
 0x634   :  { %3192 = vmatpush1.msk.msra.mxu1 %vm2373_vm15, %v2349_v48  ;;  %vm2249_vm15 = vcmp.eq.s32.totalorder %v2239_v45, 1  ;;  %v5834_v11 = vld [vmem:[#allocation23_spill] sm:$0xff] }
 0x635   :  { %v2299_v29 = vpop.permute.xlu1 %2298  ;;  %v5838_v25 = vld [vmem:[#allocation27_spill] sm:$0xff] }
 0x636   :  { %v2307_v27 = vsel %vm2304_vm11, %v2297_v56, %v2299_v29 }
 0x637   :  { %3176 = vmatprep.subr.msk.mxu0 %vm2332_vm14, %v2307_v27  ;;  %v2301_v20 = vpop.permute.xlu0 %2300  ;;  %vm5825_vm14 = vcmask 588800  }
 0x638   :  { %v2306_v2 = vsel %vm2304_vm11, %v2299_v29, %v2301_v20  ;;  %vm5826_vm10 = vmmov %vm5825_vm14 }
 0x639   :  { %v2303_v18 = vpop.permute.xlu1 %2302 }
 0x63a   :  { %v2305_v36 = vsel %vm2304_vm11, %v2301_v20, %v2303_v18  ;;  %v2308_v59 = vsel %vm2304_vm11, %v2303_v18, %v2297_v56  ;;  %vm2250_vm11 = vcmp.eq.s32.totalorder %v2243_v47, 1  ;;  %v5831_v18 = vld [vmem:[#allocation20_spill] sm:$0xff] }
 0x63b   :  { %3177 = vmatpush1.msk.msra.mxu0 %vm2331_vm5, %v2308_v59  ;;  %3193 = vmatprep.subr.msk.mxu1 %vm2334_vm13, %v2305_v36  ;;  %v2257_v57 = vpop.permute.xlu0 %2256  ;;  %vm2723_vm5 = vcmask 195584   ;;  %v5839_v47 = vld [vmem:[#allocation28_spill] sm:$0xff] }
 0x63c   :  { %3194 = vmatpush1.msk.msra.mxu1 %vm2333_vm7, %v2306_v2  ;;  %v5832_v2 = vld [vmem:[#allocation21_spill] sm:$0xff] }
 0x63d   :  { %v2259_v1 = vpop.permute.xlu1 %2258 }
 0x63e   :  { %v2267_v16 = vsel %vm2264_vm12, %v2257_v57, %v2259_v1 }
 0x63f   :  { %3178 = vmatprep.subr.msk.mxu0 %vm2289_vm1, %v2267_v16  ;;  %v2261_v21 = vpop.permute.xlu0 %2260  ;;  %v5835_v16 = vld [vmem:[#allocation24_spill] sm:$0xff] }
 0x640   :  { %v2266_v6 = vsel %vm2264_vm12, %v2259_v1, %v2261_v21 }
 0x641   :  { %v2263_v33 = vpop.permute.xlu1 %2262 }
 0x642   :  { %v2265_v40 = vsel %vm2264_vm12, %v2261_v21, %v2263_v33  ;;  %v2268_v17 = vsel %vm2264_vm12, %v2263_v33, %v2257_v57 }
 0x643   :  { %3179 = vmatpush1.msk.msra.mxu0 %vm2288_vm6, %v2268_v17  ;;  %3195 = vmatprep.subr.msk.mxu1 %vm2291_vm2, %v2265_v40  ;;  %v2210_v46 = vpop.permute.xlu0 %2209  ;;  %v5836_v17 = vld [vmem:[#allocation25_spill] sm:$0xff] }
 0x644   :  { %3196 = vmatpush1.msk.msra.mxu1 %vm2290_vm9, %v2266_v6 }
 0x645   :  { %v2212_v49 = vpop.permute.xlu1 %2211 }
 0x646   :  { %v2220_v0 = vsel %vm2217_vm0, %v2210_v46, %v2212_v49 }
 0x647   :  { %3180 = vmatprep.subr.msk.mxu0 %vm2249_vm15, %v2220_v0  ;;  %v2214_v8 = vpop.permute.xlu0 %2213 }
 0x648   :  { %v2219_v7 = vsel %vm2217_vm0, %v2212_v49, %v2214_v8 }
 0x649   :  { %v2216_v31 = vpop.permute.xlu1 %2215 }
 0x64a   :  { %v2218_v62 = vsel %vm2217_vm0, %v2214_v8, %v2216_v31  ;;  %v2221_v5 = vsel %vm2217_vm0, %v2216_v31, %v2210_v46  ;;  %v5837_v46 = vld [vmem:[#allocation26_spill] sm:$0xff] }
 0x64b   :  { %3181 = vmatpush1.msk.msra.mxu0 %vm2248_vm3, %v2221_v5  ;;  %3197 = vmatprep.subr.msk.mxu1 %vm2251_vm4, %v2218_v62  ;;  %v5840_v8 = vld [vmem:[#allocation30_spill] sm:$0xff] }
 0x64c   :  { %3182 = vmatmul.mubr.msk.f32.vlgmr.msra.gmra.mxu0 %vm5825_vm14, %v2543_v51  ;;  %3198 = vmatpush1.msk.msra.mxu1 %vm2250_vm11, %v2219_v7  ;;  %v5841_v7 = vld [vmem:[#allocation29_spill] sm:$0xff] }
 0x64d   :  { %3199 = vmatmul.mubr.msk.f32.vlgmr.msra.gmra.mxu1 %vm5826_vm10, %v2543_v51  ;;  %2800 = vmatprep.mubr.f32.mxu0 %v5750_v38 }
 0x64e   :  { %2889 = vmatprep.mubr.f32.mxu1 %v5750_v38 }
 0x654   :  { %v2548_v35 = vpop.permute.xlu0 %2547 }
 0x656   :  { %v1494_v55 = vpop.permute.xlu1 %1493 }
 0x657   :  { %v1568_v9 = vadd.f32 %v4741_v61, %v1494_v55  ;;  %v1566_v52 = vadd.f32 %v4737_v53, %v1494_v55  ;;  %v1639_v15 = vadd.f32 %v4743_v43, %v1494_v55  ;;  %v1637_v41 = vadd.f32 %v4739_v58, %v1494_v55  ;;  %v2695_v53 = vld [vmem:[%s5340_s17] sm:$0xff]  ;;  %v5830_v61 = vld [vmem:[#allocation37_spill] sm:$0xff]  ;;  %v2696_v58 = vld [vmem:[%s5340_s17 + $0x8] sm:$0xff] }
 0x658   :  { %v723_v63 = vpop.permute.xlu0 %722  ;;  %v2697_v43 = vld [vmem:[%s5340_s17 + $0x10] sm:$0xff] }
 0x659   :  { %v798_v37 = vadd.f32 %v5827_v13, %v723_v63  ;;  %v796_v14 = vadd.f32 %v5828_v22, %v723_v63  ;;  %v869_v48 = vadd.f32 %v5829_v23, %v723_v63  ;;  %v867_v56 = vadd.f32 %v5830_v61, %v723_v63 }
 0x65a   :  { %v2706_v50 = vpop.permute.xlu1 %2705 }
 0x65c   :  { %v2711_v29 = vpop.permute.xlu0 %2710 }
 0x65e   :  { %v5228_v4 = vpop.permute.xlu1 %2715 }
 0x660   :  { %v5230_v54 = vpop.permute.xlu0 %2720 }
 0x662   :  { %v112_v27 = vpop.permute.xlu1 %111 }
 0x663   :  { %v236_v36 = vadd.f32 %v5831_v18, %v112_v27  ;;  %v343_v57 = vadd.f32 %v5832_v2, %v112_v27  ;;  %v238_v1 = vadd.f32 %v5833_v24, %v112_v27  ;;  %v345_v28 = vadd.f32 %v5834_v11, %v112_v27 }
 0x664   :  { %v117_v20 = vpop.permute.xlu0 %116 }
 0x665   :  { %v242_v21 = vadd.f32 %v5835_v16, %v117_v20  ;;  %v349_v6 = vadd.f32 %v5836_v17, %v117_v20  ;;  %v244_v60 = vadd.f32 %v5837_v46, %v117_v20  ;;  %v351_v49 = vadd.f32 %v5838_v25, %v117_v20 }
 0x666   :  { %v122_v3 = vpop.permute.xlu1 %121 }
 0x667   :  { %v248_v0 = vadd.f32 %v5839_v47, %v122_v3  ;;  %v5244_v31 = vadd.f32 %v5840_v8, %v122_v3 }
 0x668   :  { %v5237_v45 = vpop.permute.xlu0 %126 }
 0x70c   :  { %v2619_v32 = vpop.f32.mrf.mxu0 }
 0x70d   :  { %v2690_v12 = vpop.f32.mrf.mxu1  ;;  %v2620_v44 = vadd.f32 %v2619_v32, %v2548_v35  ;;  %v5842_v32 = vld [vmem:[#allocation31_spill] sm:$0xff] }
 0x70e   :  { %v2621_v10 = vpop.f32.mrf.mxu0  ;;  %v2691_v39 = vadd.f32 %v2690_v12, %v2548_v35  ;;  %v5248_v12 = vadd.f32 %v5842_v32, %v122_v3 }
 0x70f   :  { %v2622_v19 = vadd.f32 %v2621_v10, %v2548_v35  ;;  %v2692_v34 = vpop.f32.mrf.mxu1 }
 0x710   :  { %v2693_v42 = vadd.f32 %v2692_v34, %v2548_v35  ;;  %v355_v35 = vadd.f32 %v5841_v7, %v122_v3  ;;  %v5843_v34 = vld [vmem:[#allocation32_spill] sm:$0xff] }
 0x711   :  { %2762 = vmatprep.subr.mxu0 %v2622_v19  ;;  %v5252_v63 = vadd.f32 %v5843_v34, %v5237_v45 }
 0x712   :  { %2763 = vmatpush1.msra.mxu0 %v2620_v44  ;;  %2851 = vmatprep.subr.mxu1 %v2693_v42 }
 0x713   :  { %2764 = vmatprep.subr.mxu0 %v1568_v9  ;;  %2852 = vmatpush1.msra.mxu1 %v2691_v39 }
 0x714   :  { %2765 = vmatpush1.msra.mxu0 %v1566_v52  ;;  %2853 = vmatprep.subr.mxu1 %v1639_v15  ;;  %v5844_v52 = vld [vmem:[#allocation33_spill] sm:$0xff] }
 0x715   :  { %2766 = vmatprep.subr.mxu0 %v798_v37  ;;  %2854 = vmatpush1.msra.mxu1 %v1637_v41  ;;  %v5256_v15 = vadd.f32 %v5844_v52, %v5237_v45  ;;  %v5846_v52 = vld [vmem:[#allocation35_spill] sm:$0xff] }
 0x716   :  { %2767 = vmatpush1.msra.mxu0 %v796_v14  ;;  %2855 = vmatprep.subr.mxu1 %v869_v48 }
 0x717   :  { %3200 = vmatmul.mubr.msk.f32.vlgmr.msra.gmra.mxu0 %vm2723_vm5, %v2695_v53  ;;  %2856 = vmatpush1.msra.mxu1 %v867_v56 }
 0x718   :  { %3204 = vmatmul.mubr.msk.f32.vlgmr.msra.gmra.mxu1 %vm2723_vm5, %v2695_v53  ;;  %2806 = vmatprep.mubr.f32.mxu0 %v5750_v38 }
 0x719   :  { %2895 = vmatprep.mubr.f32.mxu1 %v5750_v38 }
 0x71b   :  { %3201 = vmatmul.mubr.msk.f32.gmra.mxu0 %vm2723_vm5, %v2696_v58 }
 0x71c   :  { %3205 = vmatmul.mubr.msk.f32.gmra.mxu1 %vm2723_vm5, %v2696_v58  ;;  %2812 = vmatprep.mubr.f32.mxu0 %v5750_v38 }
 0x71d   :  { %2901 = vmatprep.mubr.f32.mxu1 %v5750_v38 }
 0x71f   :  { %3202 = vmatmul.mubr.msk.f32.gmra.mxu0 %vm2723_vm5, %v2697_v43 }
 0x720   :  { %3206 = vmatmul.mubr.msk.f32.gmra.mxu1 %vm2723_vm5, %v2697_v43  ;;  %2818 = vmatprep.mubr.f32.mxu0 %v5750_v38 }
 0x721   :  { %2907 = vmatprep.mubr.f32.mxu1 %v5750_v38 }
 0x723   :  { %3203 = vmatmul.mubr.msk.f32.gmra.mxu0 %vm2723_vm5, %v2698_v26 }
 0x724   :  { %3207 = vmatmul.mubr.msk.f32.gmra.mxu1 %vm2723_vm5, %v2698_v26 }
 0x7d7   :  { %v2802_v59 = vpop.f32.mrf.mxu0 }
 0x7d8   :  { %v2803_v30 = vadd.f32 %v2802_v59, %v2706_v50  ;;  %v2891_v38 = vpop.f32.mrf.mxu1 }
 0x7d9   :  { %v2892_v33 = vadd.f32 %v2891_v38, %v2706_v50  ;;  %v2804_v40 = vpop.f32.mrf.mxu0 }
 0x7da   :  { %v2914_v51 = vmul.f32 0.1, %v2803_v30  ;;  %v2805_v62 = vadd.f32 %v2804_v40, %v2706_v50  ;;  %v2893_v5 = vpop.f32.mrf.mxu1 }
 0x7db   :  { %v2916_v55 = vmul.f32 0.1, %v2892_v33  ;;  %v2894_v10 = vadd.f32 %v2893_v5, %v2706_v50  ;;  %v2808_v19 = vpop.f32.mrf.mxu0 }
 0x7dc   :  { %v2930_v44 = vadd.f32 %v2914_v51, %v236_v36  ;;  %v2915_v42 = vmul.f32 0.1, %v2805_v62  ;;  %v2809_v39 = vadd.f32 %v2808_v19, %v2711_v29  ;;  %v2897_v9 = vpop.f32.mrf.mxu1 }
 0x7dd   :  { %v2932_v41 = vadd.f32 %v2916_v55, %v343_v57  ;;  %v2917_v13 = vmul.f32 0.1, %v2894_v10  ;;  %v2898_v37 = vadd.f32 %v2897_v9, %v2711_v29  ;;  %v2810_v22 = vpop.f32.mrf.mxu0 }
 0x7de   :  { %v2946_v14 = vmax.f32 %v2930_v44, 0.0  ;;  %v2931_v23 = vadd.f32 %v2915_v42, %v238_v1  ;;  %v2918_v48 = vmul.f32 0.1, %v2809_v39  ;;  %v2811_v53 = vadd.f32 %v2810_v22, %v2711_v29  ;;  %v2899_v61 = vpop.f32.mrf.mxu1  ;;  %v5845_v44 = vld [vmem:[#allocation34_spill] sm:$0xff] }
 0x7df   :  { %v2948_v56 = vmax.f32 %v2932_v41, 0.0  ;;  %v2933_v58 = vadd.f32 %v2917_v13, %v345_v28  ;;  %v2920_v43 = vmul.f32 0.1, %v2898_v37  ;;  %v2900_v26 = vadd.f32 %v2899_v61, %v2711_v29  ;;  %v2814_v50 = vpop.f32.mrf.mxu0 }
 0x7e0   :  { %2962 = vst [vmem:[%s5341_s19] sm:$0xff] %v2946_v14  ;;  %v2947_v27 = vmax.f32 %v2931_v23, 0.0  ;;  %v2934_v20 = vadd.f32 %v2918_v48, %v242_v21  ;;  %v2919_v3 = vmul.f32 0.1, %v2811_v53  ;;  %v2815_v18 = vadd.f32 %v2814_v50, %v5228_v4  ;;  %v2903_v36 = vpop.f32.mrf.mxu1 }
 0x7e1   :  { %2964 = vst [vmem:[%s5341_s19 + $0x10] sm:$0xff] %v2948_v56  ;;  %v2949_v59 = vmax.f32 %v2933_v58, 0.0  ;;  %v2936_v2 = vadd.f32 %v2920_v43, %v349_v6  ;;  %v2921_v57 = vmul.f32 0.1, %v2900_v26  ;;  %v2904_v29 = vadd.f32 %v2903_v36, %v5228_v4  ;;  %v2816_v30 = vpop.f32.mrf.mxu0 }
 0x7e2   :  { %2963 = vst [vmem:[%s5341_s19 + $0x8] sm:$0xff] %v2947_v27  ;;  %v2950_v38 = vmax.f32 %v2934_v20, 0.0  ;;  %v2935_v24 = vadd.f32 %v2919_v3, %v244_v60  ;;  %v2922_v1 = vmul.f32 0.1, %v2815_v18  ;;  %v2817_v11 = vadd.f32 %v2816_v30, %v5228_v4  ;;  %v2905_v28 = vpop.f32.mrf.mxu1 }
 0x7e3   :  { %2965 = vst [vmem:[%s5341_s19 + $0x18] sm:$0xff] %v2949_v59  ;;  %v2952_v16 = vmax.f32 %v2936_v2, 0.0  ;;  %v2937_v21 = vadd.f32 %v2921_v57, %v351_v49  ;;  %v2924_v33 = vmul.f32 0.1, %v2904_v29  ;;  %v2906_v40 = vadd.f32 %v2905_v28, %v5228_v4  ;;  %v2820_v17 = vpop.f32.mrf.mxu0 }
 0x7e4   :  { %2966 = vst [vmem:[%s5341_s19 + $0x20] sm:$0xff] %v2950_v38  ;;  %v2951_v6 = vmax.f32 %v2935_v24, 0.0  ;;  %v2938_v46 = vadd.f32 %v2922_v1, %v248_v0  ;;  %v2923_v60 = vmul.f32 0.1, %v2817_v11  ;;  %v2821_v25 = vadd.f32 %v2820_v17, %v5230_v54  ;;  %v2909_v47 = vpop.f32.mrf.mxu1 }
 0x7e5   :  { %2968 = vst [vmem:[%s5341_s19 + $0x30] sm:$0xff] %v2952_v16  ;;  %v2953_v8 = vmax.f32 %v2937_v21, 0.0  ;;  %v2940_v49 = vadd.f32 %v2924_v33, %v355_v35  ;;  %v2925_v51 = vmul.f32 0.1, %v2906_v40  ;;  %v2910_v4 = vadd.f32 %v2909_v47, %v5230_v54  ;;  %v2822_v62 = vpop.f32.mrf.mxu0 }
 0x7e6   :  { %2967 = vst [vmem:[%s5341_s19 + $0x28] sm:$0xff] %v2951_v6  ;;  %v2954_v5 = vmax.f32 %v2938_v46, 0.0  ;;  %v2939_v0 = vadd.f32 %v2923_v60, %v5244_v31  ;;  %v2926_v7 = vmul.f32 0.1, %v2821_v25  ;;  %v2823_v32 = vadd.f32 %v2822_v62, %v5230_v54  ;;  %v2911_v55 = vpop.f32.mrf.mxu1 }
 0x7e7   :  { %2969 = vst [vmem:[%s5341_s19 + $0x38] sm:$0xff] %v2953_v8  ;;  %v2956_v35 = vmax.f32 %v2940_v49, 0.0  ;;  %v2941_v10 = vadd.f32 %v2925_v51, %v5248_v12  ;;  %v2928_v19 = vmul.f32 0.1, %v2910_v4  ;;  %v2912_v34 = vadd.f32 %v2911_v55, %v5230_v54 }
 0x7e8   :  { %v256_v42 = vadd.f32 %v5845_v44, %v5237_v45  ;;  %2970 = vst [vmem:[%s5341_s19 + $0x40] sm:$0xff] %v2954_v5  ;;  %v2955_v31 = vmax.f32 %v2939_v0, 0.0  ;;  %v2942_v39 = vadd.f32 %v2926_v7, %v5252_v63  ;;  %v2927_v9 = vmul.f32 0.1, %v2823_v32 }
 0x7e9   :  { %v363_v41 = vadd.f32 %v5846_v52, %v5237_v45  ;;  %2972 = vst [vmem:[%s5341_s19 + $0x50] sm:$0xff] %v2956_v35  ;;  %v2957_v12 = vmax.f32 %v2941_v10, 0.0  ;;  %v2944_v54 = vadd.f32 %v2928_v19, %v5256_v15  ;;  %v2929_v13 = vmul.f32 0.1, %v2912_v34 }
 0x7ea   :  { %2971 = vst [vmem:[%s5341_s19 + $0x48] sm:$0xff] %v2955_v31  ;;  %v2958_v37 = vmax.f32 %v2942_v39, 0.0  ;;  %v2943_v22 = vadd.f32 %v2927_v9, %v256_v42 }
 0x7eb   :  { %2973 = vst [vmem:[%s5341_s19 + $0x58] sm:$0xff] %v2957_v12  ;;  %v2960_v63 = vmax.f32 %v2944_v54, 0.0  ;;  %v2945_v45 = vadd.f32 %v2929_v13, %v363_v41 }
 0x7ec   :  { %2974 = vst [vmem:[%s5341_s19 + $0x60] sm:$0xff] %v2958_v37  ;;  %v2959_v14 = vmax.f32 %v2943_v22, 0.0 }
 0x7ed   :  { %2976 = vst [vmem:[%s5341_s19 + $0x70] sm:$0xff] %v2960_v63  ;;  %v2961_v15 = vmax.f32 %v2945_v45, 0.0 }
 0x7ee   :  { %2975 = vst [vmem:[%s5341_s19 + $0x68] sm:$0xff] %v2959_v14 }
 0x7ef   :  { %2977 = vst [vmem:[%s5341_s19 + $0x78] sm:$0xff] %v2961_v15 }

</bundles_post_ra>
